<compile_context>
chip_gen: v6e
topology: v6e:2x2x1
jax: 0.10.0
libtpu: 0.0.40
codegen_flags: <defaults>
</compile_context>

<pallas_src>
import functools

import jax
import jax.numpy as jnp
from jax import lax
from jax.experimental import pallas as pl
from jax.experimental.pallas import tpu as pltpu

EMBED_SIZE = 128
NUM_FILTERS = 100
F_PAD = 128                      # filters padded to one full lane tile
FILTER_SIZES = (3, 4, 5)
TOTAL_TAPS = sum(FILTER_SIZES)   # 12
OUTPUT_SIZE = 1
VOCAB_SIZE = 64                  # synthetic stand-in for len(vocab) + 1
VOCAB_PAD = 128                  # padded to one lane tile for the one-hot matmul


def _spamcnn_kernel(tok_ref, emb_ref, wconv_ref, bconv_ref, fcw_ref, fcb_ref,
                    out_ref, *, tb, seq_len):
    """Fused embed-gather + stacked conv matmul + time-max + bias/ReLU + FC."""
    L = seq_len
    n = tb * L

    # ---- Embedding gather as a one-hot bf16 MXU matmul (exact) -------------
    tok3 = tok_ref[...][:, :, None]                                  # (tb, L, 1) i32
    iota3 = lax.broadcasted_iota(jnp.int32, (tb, L, VOCAB_PAD), 2)
    onehot = (tok3 == iota3).astype(jnp.bfloat16).reshape(n, VOCAB_PAD)
    emb2d = jnp.dot(onehot, emb_ref[...],
                    preferred_element_type=jnp.float32
                    ).astype(jnp.bfloat16)                           # (n, E) bf16

    # ---- All taps of all branches in ONE stacked-N matmul ------------------
    y_all = jnp.dot(emb2d, wconv_ref[...],
                    preferred_element_type=jnp.float32)              # (n, 12*F_PAD) f32

    bconv = bconv_ref[...]                                           # (3, F_PAD) f32
    t_idx = lax.broadcasted_iota(jnp.int32, (tb, L, 1), 1)           # time index

    pooled_parts = []
    off = 0
    for b_idx, fs in enumerate(FILTER_SIZES):
        T = L - fs + 1
        acc = None
        for i in range(fs):
            tap = y_all[:, (off + i) * F_PAD:(off + i + 1) * F_PAD]  # (n, F_PAD)
            if i > 0:
                # Sublane rotate on the XLU: row t picks up row t+i (mod n).
                tap = pltpu.roll(tap, shift=n - i, axis=0)
            acc = tap if acc is None else acc + tap
        off += fs
        acc3 = acc.reshape(tb, L, F_PAD)
        # Rows t >= T hold rolled-in data from other samples: mask before max.
        acc3 = jnp.where(t_idx < T, acc3, -jnp.inf)
        pooled = jnp.max(acc3, axis=1)                               # (tb, F_PAD)
        # Bias + ReLU after the max (per-filter bias, monotone ReLU).
        pooled_parts.append(jnp.maximum(pooled + bconv[b_idx], 0.0))

    feat = jnp.concatenate(pooled_parts, axis=-1).astype(jnp.bfloat16)  # (tb, 3*F_PAD)

    # Dropout: identity at inference time.
    # Padded FC: only column 0 carries the real output; padded rows/cols are 0.
    out_ref[...] = (jnp.dot(feat, fcw_ref[...],
                            preferred_element_type=jnp.float32)
                    + fcb_ref[...])                                  # (tb, F_PAD) f32


def _const_spec(arr):
    nd = arr.ndim
    return pl.BlockSpec(arr.shape, lambda i, _nd=nd: (0,) * _nd)


def spam_cnn_forward(tokens, emb_table, conv_w_stacked, conv_b, fc_w, fc_b,
                     *, batch_tile=16):
    """tokens: (B, L) int32. Returns (B, 1) float32 (same as the PyTorch fc)."""
    B, L = tokens.shape
    E = emb_table.shape[-1]
    assert L >= max(FILTER_SIZES), "sequence shorter than largest filter"

    tb = min(batch_tile, B)
    assert B % tb == 0 and tb % 8 == 0, "batch tile must divide B, multiple of 8"
    grid = (B // tb,)

    kernel = functools.partial(_spamcnn_kernel, tb=tb, seq_len=L)
    weight_args = [emb_table, conv_w_stacked, conv_b, fc_w, fc_b]

    flops = (2 * B * L * VOCAB_PAD * E                       # one-hot gather matmul
             + 2 * B * L * E * TOTAL_TAPS * F_PAD            # stacked conv matmul
             + 2 * B * len(FILTER_SIZES) * F_PAD * F_PAD)    # padded FC
    bytes_accessed = (tokens.size * 4
                      + sum(int(a.size) * a.dtype.itemsize for a in weight_args)
                      + B * F_PAD * 4)

    out = pl.pallas_call(
        kernel,
        out_shape=jax.ShapeDtypeStruct((B, F_PAD), jnp.float32),
        grid=grid,
        in_specs=([pl.BlockSpec((tb, L), lambda i: (i, 0))]
                  + [_const_spec(a) for a in weight_args]),
        out_specs=pl.BlockSpec((tb, F_PAD), lambda i: (i, 0)),
        compiler_params=pltpu.CompilerParams(
            dimension_semantics=("parallel",)),
        cost_estimate=pl.CostEstimate(flops=flops, transcendentals=0,
                                      bytes_accessed=bytes_accessed),
    )(tokens, *weight_args)

    # Only lane 0 of the padded FC output is real.
    return out[:, :OUTPUT_SIZE]


def init_params(key):
    """Synthetic parameters matching the PyTorch module shapes, re-laid-out and
    zero-padded for the TPU kernel."""
    k_emb, k_conv, k_fc = jax.random.split(key, 3)

    # Embedding table: cast to bf16 once, pad vocab 64 -> 128 rows (zeros).
    emb = jax.random.normal(k_emb, (VOCAB_SIZE, EMBED_SIZE), jnp.float32) * 0.1
    emb_table = jnp.pad(emb, ((0, VOCAB_PAD - VOCAB_SIZE), (0, 0))
                        ).astype(jnp.bfloat16)                       # (128, 128) bf16

    # Conv weights (PyTorch shape (num_filters, 1, fs, E)) -> one stacked
    # (E, 12*F_PAD) bf16 matrix: taps of fs=3 then fs=4 then fs=5, each tap a
    # 128-lane slab with filters 100..127 zero.
    tap_blocks = []
    bias_rows = []
    conv_keys = jax.random.split(k_conv, len(FILTER_SIZES))
    for fs, kk in zip(FILTER_SIZES, conv_keys):
        w = jax.random.normal(kk, (NUM_FILTERS, 1, fs, EMBED_SIZE),
                              jnp.float32) * 0.05
        w_taps = jnp.transpose(w[:, 0, :, :], (1, 2, 0))             # (fs, E, F)
        w_taps = jnp.pad(w_taps, ((0, 0), (0, 0), (0, F_PAD - NUM_FILTERS)))
        tap_blocks.extend([w_taps[i] for i in range(fs)])            # fs x (E, F_PAD)
        b = jnp.full((NUM_FILTERS,), 0.01, jnp.float32)
        bias_rows.append(jnp.pad(b, (0, F_PAD - NUM_FILTERS)))
    conv_w_stacked = jnp.concatenate(tap_blocks, axis=-1
                                     ).astype(jnp.bfloat16)          # (E, 1536) bf16
    conv_b = jnp.stack(bias_rows, axis=0)                            # (3, F_PAD) f32

    # FC: (300, 1) -> padded (3*F_PAD, F_PAD) bf16; padded rows/cols zero.
    fc_w = jax.random.normal(
        k_fc, (len(FILTER_SIZES) * NUM_FILTERS, OUTPUT_SIZE), jnp.float32) * 0.05
    fc_w_pad = jnp.zeros((len(FILTER_SIZES) * F_PAD, F_PAD), jnp.float32)
    for j in range(len(FILTER_SIZES)):
        fc_w_pad = fc_w_pad.at[
            j * F_PAD: j * F_PAD + NUM_FILTERS, :OUTPUT_SIZE].set(
                fc_w[j * NUM_FILTERS:(j + 1) * NUM_FILTERS, :])
    fc_w_pad = fc_w_pad.astype(jnp.bfloat16)
    fc_b_pad = jnp.zeros((1, F_PAD), jnp.float32)                    # fc bias = 0

    return emb_table, conv_w_stacked, conv_b, fc_w_pad, fc_b_pad


def _reference(tokens, emb_table, conv_w_stacked, conv_b, fc_w, fc_b):
    """Plain-JAX f32 reference on the same (padded, bf16-cast) parameters."""
    B, L = tokens.shape
    emb = emb_table.astype(jnp.float32)[tokens]                      # (B, L, E)
    y_all = jnp.einsum("ble,ef->blf", emb,
                       conv_w_stacked.astype(jnp.float32))           # (B, L, 1536)
    parts = []
    off = 0
    for b_idx, fs in enumerate(FILTER_SIZES):
        T = L - fs + 1
        acc = 0.0
        for i in range(fs):
            acc = acc + y_all[:, i:i + T, (off + i) * F_PAD:(off + i + 1) * F_PAD]
        off += fs
        pooled = jnp.max(acc, axis=1)
        parts.append(jnp.maximum(pooled + conv_b[b_idx], 0.0))
    feat = jnp.concatenate(parts, axis=-1)
    out = feat @ fc_w.astype(jnp.float32) + fc_b
    return out[:, :OUTPUT_SIZE]


if __name__ == "__main__":
    key = jax.random.PRNGKey(0)
    k_tok, k_params = jax.random.split(key)

    B, L = 128, 16   # tb=16 -> tb*L=256 MXU rows/step, grid=(8,)
    tokens = jax.random.randint(k_tok, (B, L), 0, VOCAB_SIZE, dtype=jnp.int32)

    params = init_params(k_params)
    out = spam_cnn_forward(tokens, *params, batch_tile=16)
    jax.block_until_ready(out)

    assert out.shape == (B, OUTPUT_SIZE) and out.dtype == jnp.float32
    assert bool(jnp.all(jnp.isfinite(out)))

    # Relaxed-tolerance check vs. a pure-JAX reference (bf16 MXU inputs drift).
    ref = _reference(tokens, *params)
    assert bool(jnp.allclose(out, ref, rtol=3e-2, atol=3e-2)), "mismatch vs reference"

    print("KERNEL_OK")
</pallas_src>

<mosaic_0001>
module attributes {stable_mosaic.version = 11 : i64} {
  func.func @_spamcnn_kernel(%arg0: i32, %arg1: memref<16x16xi32, #tpu.memory_space<vmem>>, %arg2: memref<128x128xbf16, #tpu.memory_space<vmem>>, %arg3: memref<128x1536xbf16, #tpu.memory_space<vmem>>, %arg4: memref<3x128xf32, #tpu.memory_space<vmem>>, %arg5: memref<384x128xbf16, #tpu.memory_space<vmem>>, %arg6: memref<1x128xf32, #tpu.memory_space<vmem>>, %arg7: memref<16x128xf32, #tpu.memory_space<vmem>>) attributes {dimension_semantics = [#tpu.dimension_semantics<parallel>], iteration_bounds = array<i64: 8>, scalar_prefetch = 0 : i64, scratch_operands = 0 : i64, tpu.core_type = #tpu.core_type<tc>, window_params = [{transform_indices = @transform_0, window_bounds = array<i64: 16, 16>}, {pipeline_mode = #tpu.pipeline_mode<synchronous>, transform_indices = @transform_1, window_bounds = array<i64: 128, 128>}, {pipeline_mode = #tpu.pipeline_mode<synchronous>, transform_indices = @transform_2, window_bounds = array<i64: 128, 1536>}, {pipeline_mode = #tpu.pipeline_mode<synchronous>, transform_indices = @transform_3, window_bounds = array<i64: 3, 128>}, {pipeline_mode = #tpu.pipeline_mode<synchronous>, transform_indices = @transform_4, window_bounds = array<i64: 384, 128>}, {pipeline_mode = #tpu.pipeline_mode<synchronous>, transform_indices = @transform_5, window_bounds = array<i64: 1, 128>}, {transform_indices = @transform_6, window_bounds = array<i64: 16, 128>}]} {
    %c0 = arith.constant 0 : index
    %c0_0 = arith.constant 0 : index
    %0 = vector.load %arg1[%c0, %c0_0] : memref<16x16xi32, #tpu.memory_space<vmem>>, vector<16x16xi32>
    %1 = vector.shape_cast %0 : vector<16x16xi32> to vector<16x16x1xi32>
    %2 = tpu.iota {dimensions = array<i32: 2>} : vector<16x16x128xi32>
    %3 = vector.broadcast %1 : vector<16x16x1xi32> to vector<16x16x128xi32>
    %4 = arith.cmpi eq, %3, %2 : vector<16x16x128xi32>
    %5 = arith.extui %4 : vector<16x16x128xi1> to vector<16x16x128xi32>
    %6 = arith.sitofp %5 : vector<16x16x128xi32> to vector<16x16x128xf32>
    %7 = arith.truncf %6 : vector<16x16x128xf32> to vector<16x16x128xbf16>
    %8 = vector.shape_cast %7 : vector<16x16x128xbf16> to vector<256x128xbf16>
    %c0_1 = arith.constant 0 : index
    %c0_2 = arith.constant 0 : index
    %9 = vector.load %arg2[%c0_1, %c0_2] : memref<128x128xbf16, #tpu.memory_space<vmem>>, vector<128x128xbf16>
    %cst = arith.constant dense<0.000000e+00> : vector<256x128xf32>
    %10 = tpu.matmul %8, %9, %cst {dimension_numbers = #tpu.dot_dimension_numbers<[1], [0], [0], [1], [0, 0, 1, 1], [], []>} : vector<256x128xbf16>, vector<128x128xbf16>, vector<256x128xf32> -> vector<256x128xf32>
    %11 = arith.truncf %10 : vector<256x128xf32> to vector<256x128xbf16>
    %c0_3 = arith.constant 0 : index
    %c0_4 = arith.constant 0 : index
    %12 = vector.load %arg3[%c0_3, %c0_4] : memref<128x1536xbf16, #tpu.memory_space<vmem>>, vector<128x1536xbf16>
    %cst_5 = arith.constant dense<0.000000e+00> : vector<256x1536xf32>
    %13 = tpu.matmul %11, %12, %cst_5 {dimension_numbers = #tpu.dot_dimension_numbers<[1], [0], [0], [1], [0, 0, 1, 1], [], []>} : vector<256x128xbf16>, vector<128x1536xbf16>, vector<256x1536xf32> -> vector<256x1536xf32>
    %c0_6 = arith.constant 0 : index
    %c0_7 = arith.constant 0 : index
    %14 = vector.load %arg4[%c0_6, %c0_7] : memref<3x128xf32, #tpu.memory_space<vmem>>, vector<3x128xf32>
    %15 = tpu.iota {dimensions = array<i32: 1>} : vector<16x16x1xi32>
    %16 = vector.extract_strided_slice %13 {offsets = [0, 0], sizes = [256, 128], strides = [1, 1]} : vector<256x1536xf32> to vector<256x128xf32>
    %17 = vector.extract_strided_slice %13 {offsets = [0, 128], sizes = [256, 128], strides = [1, 1]} : vector<256x1536xf32> to vector<256x128xf32>
    %c255_i32 = arith.constant 255 : i32
    %18 = tpu.dynamic_rotate %17 by %c255_i32 dim 0 : vector<256x128xf32>, i32 -> vector<256x128xf32>
    %19 = arith.addf %16, %18 : vector<256x128xf32>
    %20 = vector.extract_strided_slice %13 {offsets = [0, 256], sizes = [256, 128], strides = [1, 1]} : vector<256x1536xf32> to vector<256x128xf32>
    %c254_i32 = arith.constant 254 : i32
    %21 = tpu.dynamic_rotate %20 by %c254_i32 dim 0 : vector<256x128xf32>, i32 -> vector<256x128xf32>
    %22 = arith.addf %19, %21 : vector<256x128xf32>
    %23 = vector.shape_cast %22 : vector<256x128xf32> to vector<16x16x128xf32>
    %c14_i32 = arith.constant 14 : i32
    %24 = vector.broadcast %c14_i32 : i32 to vector<16x16x1xi32>
    %25 = arith.cmpi slt, %15, %24 : vector<16x16x1xi32>
    %cst_8 = arith.constant 0xFF800000 : f32
    %26 = vector.shape_cast %25 : vector<16x16x1xi1> to vector<16x16x1xi1>
    %27 = vector.broadcast %26 : vector<16x16x1xi1> to vector<16x16x128xi1>
    %28 = vector.broadcast %cst_8 : f32 to vector<16x16x128xf32>
    %29 = arith.select %27, %23, %28 : vector<16x16x128xi1>, vector<16x16x128xf32>
    %cst_9 = arith.constant dense<0xFF800000> : vector<16x128xf32>
    %30 = vector.multi_reduction <maximumf>, %29, %cst_9 [1] : vector<16x16x128xf32> to vector<16x128xf32>
    %31 = vector.extract_strided_slice %14 {offsets = [0, 0], sizes = [1, 128], strides = [1, 1]} : vector<3x128xf32> to vector<1x128xf32>
    %32 = vector.shape_cast %31 : vector<1x128xf32> to vector<128xf32>
    %33 = vector.shape_cast %32 : vector<128xf32> to vector<1x128xf32>
    %34 = vector.broadcast %33 : vector<1x128xf32> to vector<16x128xf32>
    %35 = arith.addf %30, %34 : vector<16x128xf32>
    %cst_10 = arith.constant 0.000000e+00 : f32
    %36 = vector.broadcast %cst_10 : f32 to vector<16x128xf32>
    %37 = arith.maximumf %35, %36 : vector<16x128xf32>
    %38 = vector.extract_strided_slice %13 {offsets = [0, 384], sizes = [256, 128], strides = [1, 1]} : vector<256x1536xf32> to vector<256x128xf32>
    %39 = vector.extract_strided_slice %13 {offsets = [0, 512], sizes = [256, 128], strides = [1, 1]} : vector<256x1536xf32> to vector<256x128xf32>
    %c255_i32_11 = arith.constant 255 : i32
    %40 = tpu.dynamic_rotate %39 by %c255_i32_11 dim 0 : vector<256x128xf32>, i32 -> vector<256x128xf32>
    %41 = arith.addf %38, %40 : vector<256x128xf32>
    %42 = vector.extract_strided_slice %13 {offsets = [0, 640], sizes = [256, 128], strides = [1, 1]} : vector<256x1536xf32> to vector<256x128xf32>
    %c254_i32_12 = arith.constant 254 : i32
    %43 = tpu.dynamic_rotate %42 by %c254_i32_12 dim 0 : vector<256x128xf32>, i32 -> vector<256x128xf32>
    %44 = arith.addf %41, %43 : vector<256x128xf32>
    %45 = vector.extract_strided_slice %13 {offsets = [0, 768], sizes = [256, 128], strides = [1, 1]} : vector<256x1536xf32> to vector<256x128xf32>
    %c253_i32 = arith.constant 253 : i32
    %46 = tpu.dynamic_rotate %45 by %c253_i32 dim 0 : vector<256x128xf32>, i32 -> vector<256x128xf32>
    %47 = arith.addf %44, %46 : vector<256x128xf32>
    %48 = vector.shape_cast %47 : vector<256x128xf32> to vector<16x16x128xf32>
    %c13_i32 = arith.constant 13 : i32
    %49 = vector.broadcast %c13_i32 : i32 to vector<16x16x1xi32>
    %50 = arith.cmpi slt, %15, %49 : vector<16x16x1xi32>
    %cst_13 = arith.constant 0xFF800000 : f32
    %51 = vector.shape_cast %50 : vector<16x16x1xi1> to vector<16x16x1xi1>
    %52 = vector.broadcast %51 : vector<16x16x1xi1> to vector<16x16x128xi1>
    %53 = vector.broadcast %cst_13 : f32 to vector<16x16x128xf32>
    %54 = arith.select %52, %48, %53 : vector<16x16x128xi1>, vector<16x16x128xf32>
    %cst_14 = arith.constant dense<0xFF800000> : vector<16x128xf32>
    %55 = vector.multi_reduction <maximumf>, %54, %cst_14 [1] : vector<16x16x128xf32> to vector<16x128xf32>
    %56 = vector.extract_strided_slice %14 {offsets = [1, 0], sizes = [1, 128], strides = [1, 1]} : vector<3x128xf32> to vector<1x128xf32>
    %57 = vector.shape_cast %56 : vector<1x128xf32> to vector<128xf32>
    %58 = vector.shape_cast %57 : vector<128xf32> to vector<1x128xf32>
    %59 = vector.broadcast %58 : vector<1x128xf32> to vector<16x128xf32>
    %60 = arith.addf %55, %59 : vector<16x128xf32>
    %cst_15 = arith.constant 0.000000e+00 : f32
    %61 = vector.broadcast %cst_15 : f32 to vector<16x128xf32>
    %62 = arith.maximumf %60, %61 : vector<16x128xf32>
    %63 = vector.extract_strided_slice %13 {offsets = [0, 896], sizes = [256, 128], strides = [1, 1]} : vector<256x1536xf32> to vector<256x128xf32>
    %64 = vector.extract_strided_slice %13 {offsets = [0, 1024], sizes = [256, 128], strides = [1, 1]} : vector<256x1536xf32> to vector<256x128xf32>
    %c255_i32_16 = arith.constant 255 : i32
    %65 = tpu.dynamic_rotate %64 by %c255_i32_16 dim 0 : vector<256x128xf32>, i32 -> vector<256x128xf32>
    %66 = arith.addf %63, %65 : vector<256x128xf32>
    %67 = vector.extract_strided_slice %13 {offsets = [0, 1152], sizes = [256, 128], strides = [1, 1]} : vector<256x1536xf32> to vector<256x128xf32>
    %c254_i32_17 = arith.constant 254 : i32
    %68 = tpu.dynamic_rotate %67 by %c254_i32_17 dim 0 : vector<256x128xf32>, i32 -> vector<256x128xf32>
    %69 = arith.addf %66, %68 : vector<256x128xf32>
    %70 = vector.extract_strided_slice %13 {offsets = [0, 1280], sizes = [256, 128], strides = [1, 1]} : vector<256x1536xf32> to vector<256x128xf32>
    %c253_i32_18 = arith.constant 253 : i32
    %71 = tpu.dynamic_rotate %70 by %c253_i32_18 dim 0 : vector<256x128xf32>, i32 -> vector<256x128xf32>
    %72 = arith.addf %69, %71 : vector<256x128xf32>
    %73 = vector.extract_strided_slice %13 {offsets = [0, 1408], sizes = [256, 128], strides = [1, 1]} : vector<256x1536xf32> to vector<256x128xf32>
    %c252_i32 = arith.constant 252 : i32
    %74 = tpu.dynamic_rotate %73 by %c252_i32 dim 0 : vector<256x128xf32>, i32 -> vector<256x128xf32>
    %75 = arith.addf %72, %74 : vector<256x128xf32>
    %76 = vector.shape_cast %75 : vector<256x128xf32> to vector<16x16x128xf32>
    %c12_i32 = arith.constant 12 : i32
    %77 = vector.broadcast %c12_i32 : i32 to vector<16x16x1xi32>
    %78 = arith.cmpi slt, %15, %77 : vector<16x16x1xi32>
    %cst_19 = arith.constant 0xFF800000 : f32
    %79 = vector.shape_cast %78 : vector<16x16x1xi1> to vector<16x16x1xi1>
    %80 = vector.broadcast %79 : vector<16x16x1xi1> to vector<16x16x128xi1>
    %81 = vector.broadcast %cst_19 : f32 to vector<16x16x128xf32>
    %82 = arith.select %80, %76, %81 : vector<16x16x128xi1>, vector<16x16x128xf32>
    %cst_20 = arith.constant dense<0xFF800000> : vector<16x128xf32>
    %83 = vector.multi_reduction <maximumf>, %82, %cst_20 [1] : vector<16x16x128xf32> to vector<16x128xf32>
    %84 = vector.extract_strided_slice %14 {offsets = [2, 0], sizes = [1, 128], strides = [1, 1]} : vector<3x128xf32> to vector<1x128xf32>
    %85 = vector.shape_cast %84 : vector<1x128xf32> to vector<128xf32>
    %86 = vector.shape_cast %85 : vector<128xf32> to vector<1x128xf32>
    %87 = vector.broadcast %86 : vector<1x128xf32> to vector<16x128xf32>
    %88 = arith.addf %83, %87 : vector<16x128xf32>
    %cst_21 = arith.constant 0.000000e+00 : f32
    %89 = vector.broadcast %cst_21 : f32 to vector<16x128xf32>
    %90 = arith.maximumf %88, %89 : vector<16x128xf32>
    %91 = tpu.concatenate %37, %62, %90 in 1 : vector<16x128xf32>, vector<16x128xf32>, vector<16x128xf32> -> vector<16x384xf32>
    %92 = arith.truncf %91 : vector<16x384xf32> to vector<16x384xbf16>
    %c0_22 = arith.constant 0 : index
    %c0_23 = arith.constant 0 : index
    %93 = vector.load %arg5[%c0_22, %c0_23] : memref<384x128xbf16, #tpu.memory_space<vmem>>, vector<384x128xbf16>
    %cst_24 = arith.constant dense<0.000000e+00> : vector<16x128xf32>
    %94 = tpu.matmul %92, %93, %cst_24 {dimension_numbers = #tpu.dot_dimension_numbers<[1], [0], [0], [1], [0, 0, 1, 1], [], []>} : vector<16x384xbf16>, vector<384x128xbf16>, vector<16x128xf32> -> vector<16x128xf32>
    %c0_25 = arith.constant 0 : index
    %c0_26 = arith.constant 0 : index
    %95 = vector.load %arg6[%c0_25, %c0_26] : memref<1x128xf32, #tpu.memory_space<vmem>>, vector<1x128xf32>
    %96 = vector.broadcast %95 : vector<1x128xf32> to vector<16x128xf32>
    %97 = arith.addf %94, %96 : vector<16x128xf32>
    %c0_27 = arith.constant 0 : index
    %c0_28 = arith.constant 0 : index
    %98 = vector.load %arg7[%c0_27, %c0_28] : memref<16x128xf32, #tpu.memory_space<vmem>>, vector<16x128xf32>
    tpu.vector_store %arg7[%c0_27, %c0_28], %97 {strides = array<i32>} : memref<16x128xf32, #tpu.memory_space<vmem>>, vector<16x128xf32>,
    return
  }
  func.func @transform_0(%arg0: i32) -> (i32, i32) {
    %c0_i32 = arith.constant 0 : i32
    %c0_i32_0 = arith.constant 0 : i32
    return %arg0, %c0_i32 : i32, i32
  }
  func.func @transform_1(%arg0: i32) -> (i32, i32) {
    %c0_i32 = arith.constant 0 : i32
    %c0_i32_0 = arith.constant 0 : i32
    %c0_i32_1 = arith.constant 0 : i32
    return %c0_i32, %c0_i32_0 : i32, i32
  }
  func.func @transform_2(%arg0: i32) -> (i32, i32) {
    %c0_i32 = arith.constant 0 : i32
    %c0_i32_0 = arith.constant 0 : i32
    %c0_i32_1 = arith.constant 0 : i32
    return %c0_i32, %c0_i32_0 : i32, i32
  }
  func.func @transform_3(%arg0: i32) -> (i32, i32) {
    %c0_i32 = arith.constant 0 : i32
    %c0_i32_0 = arith.constant 0 : i32
    %c0_i32_1 = arith.constant 0 : i32
    return %c0_i32, %c0_i32_0 : i32, i32
  }
  func.func @transform_4(%arg0: i32) -> (i32, i32) {
    %c0_i32 = arith.constant 0 : i32
    %c0_i32_0 = arith.constant 0 : i32
    %c0_i32_1 = arith.constant 0 : i32
    return %c0_i32, %c0_i32_0 : i32, i32
  }
  func.func @transform_5(%arg0: i32) -> (i32, i32) {
    %c0_i32 = arith.constant 0 : i32
    %c0_i32_0 = arith.constant 0 : i32
    %c0_i32_1 = arith.constant 0 : i32
    return %c0_i32, %c0_i32_0 : i32, i32
  }
  func.func @transform_6(%arg0: i32) -> (i32, i32) {
    %c0_i32 = arith.constant 0 : i32
    %c0_i32_0 = arith.constant 0 : i32
    return %arg0, %c0_i32 : i32, i32
  }
}

</mosaic_0001>

<bundles_post_ra>
// kernel: tpu_custom_call.1
= control target key start
LH: loop header
LB: loop body
LE: loop exit
PB: predicated region body
PF: predicated region fallthrough
CT: control target
= control target key end

     0   :  { %11 = vsyncpa [#allocation3], 0  ;;  %s7149_s0 = inlined_call_operand.vmem [shape: s32[128,16], index: 0, kind: input, shape index: {}]   ;;  %s7150_s1 = inlined_call_operand.vmem [shape: bf16[128,128], index: 1, kind: input, shape index: {}]   ;;  %s7151_s2 = inlined_call_operand.hbm [shape: bf16[128,1536], index: 2, kind: input, shape index: {}]   ;;  %s7152_s3 = inlined_call_operand.vmem [shape: f32[3,128], index: 3, kind: input, shape index: {}]   ;;  %s7153_s4 = inlined_call_operand.hbm [shape: bf16[384,128], index: 4, kind: input, shape index: {}]   ;;  %s7154_s5 = inlined_call_operand.vmem [shape: f32[1,128], index: 5, kind: input, shape index: {}]   ;;  %s7155_s6 = inlined_call_operand.hbm [shape: f32[128,128], index: 6, kind: output, shape index: {}]  }
   0x1   :  { %12 = vsyncpa [#allocation6], 0 }
   0x2   :  { %13 = vsyncpa [#allocation4], 0 }
   0x3   :  { %15 = vsyncpa [#allocation4 + $0x1], 0  ;;  %s5261_s21 = smov 0   ;;  %s5263_s22 = smov 0  }
   0x4   :  { %s5265_s23 = smov 0   ;;  %s5267_s24 = smov 0  }
   0x5 LB: > { %s5282_s25 = sadd.s32 4294967295, %s5211_s24   ;;  %s4510_s26 = sadd.s32 4294967294, %s5211_s24   ;;  %s5211_s24 = sphi %s5267_s24, %s7249_s24   ;;  %s5207_s23 = sphi %s5265_s23, %s7248_s23   ;;  %s5203_s22 = sphi %s5263_s22, %s7247_s22   ;;  %s5199_s21 = sphi %s5261_s21, %s7246_s21  }
   0x6   : > { %s5286_s27 = sadd.s32 1, %s5211_s24   ;;  %s159_s28 = sadd.s32 1, %s5207_s23 }
   0x7   : > { %s156_s29 = ssub.s32 %s5211_s24, %s5286_s27  ;;  %p169_p0 = scmp.ne.s32.totalorder %s5207_s23, %s5203_s22 }
   0x8   : > { %p157_p1 = scmp.eq.s32.totalorder %s156_s29, 0  ;;  %p170_p2 = scmp.eq.s32.totalorder %s5282_s25, 7 }
   0x9   : > { %p175_p3 = scmp.ne.s32.totalorder %s5203_s22, %s5199_s21  ;;  %p176_p4 = scmp.eq.s32.totalorder %s4510_s26, 7 }
   0xa   : > { %s5297_s30 = scalar_select %p157_p1, %s5207_s23, %s159_s28  }
   0xb   : > { %p5299_p5 = por %p170_p2, %p169_p0  ;;  %p5303_p6 = por %p176_p4, %p175_p3 }
   0xc   : > { %p4511_p7 = scmp.ge.s32.totalorder %s5211_s24, 1  ;;  %p183_p8 = scmp.lt.s32.totalorder %s5211_s24, 9 }
   0xd   : > { %s7173_s8 = scalar_select %p5303_p6, 1, 0 }
   0xe   : > { %p7156_p9 = scmp.eq.s32.totalorder %s5282_s25, 0  ;;  %p5310_p10 = pnand %p4511_p7, %p183_p8 }
   0xf   : > { %s5213_s10 = smov [#allocation2]   ;;  %s5214_s13 = smov [#allocation5]  }
  0x10   : > { %s198_s11 = sshll.u32 %s5213_s10, 4  ;;  %p4853_p11 = pneg %p5310_p10  ;;  %s199_s11 = int_to_ptr.vmem [resolvable:$true] %s198_s11 }
  0x11   : > { %s214_s14 = sshll.u32 %s5214_s13, 4  ;;  %s5102_s15 = scalar_lea.vmem %s199_s11, 12288  ;;  %s215_s14 = int_to_ptr.vmem [resolvable:$true] %s214_s14 }
  0x12   : > { %p5318_p12 = pnand %p7156_p9, %p4853_p11  ;;  %p5103_p0 = scmp.ne.s32.totalorder %s199_s11, %s5102_s15 }
  0x13   : > { %p5110_p3 = scmp.lt.s32.totalorder %s199_s11, %s199_s11  ;;  %p5111_p4 = scmp.lt.s32.totalorder %s5102_s15, %s5102_s15 }
  0x14   : > { %p5093_p13 = pneg %p5318_p12 }
  0x15   : > { %p5112_p7 = por %p5111_p4, %p5110_p3 }
  0x16   : > { %p5105_p1 = pnand %p5103_p0, %p5093_p13 }
  0x18   : > { %p5106_p2 = pneg %p5105_p1 }
  0x1a   : > { %p5113_p8 = pnand %p5112_p7, %p5106_p2 }
  0x1c   : > { %5116 = shalt.err (!%p5113_p8)
}
  0x1d   : > { %s5215_s16 = smov 768   ;;  %s5216_s17 = smov 48  }
  0x1e   : > { %4856 = dma.hbm_to_vmem [thread:$0]  (!%p5318_p12), %s7151_s2, 12288, %s199_s11, [#allocation3], %s5215_s16, %s5215_s16, %s5216_s17  }
  0x1f   : > { %s5128_s20 = scalar_lea.vmem %s215_s14, 3072  ;;  %p5136_p9 = scmp.lt.s32.totalorder %s215_s14, %s215_s14 }
  0x20   : > { %p5129_p11 = scmp.ne.s32.totalorder %s215_s14, %s5128_s20  ;;  %p5137_p6 = scmp.lt.s32.totalorder %s5128_s20, %s5128_s20 }
  0x22   : > { %p5131_p0 = pnand %p5129_p11, %p5093_p13  ;;  %p5138_p3 = por %p5137_p6, %p5136_p9 }
  0x24   : > { %p5132_p1 = pneg %p5131_p0 }
  0x26   : > { %p5139_p2 = pnand %p5138_p3, %p5132_p1 }
  0x28   : > { %5142 = shalt.err (!%p5139_p2)
}
  0x29   : > { %s5217_s26 = smov 64   ;;  %s5218_s28 = smov 4  }
  0x2a   : > { %4859 = dma.hbm_to_vmem [thread:$0]  (!%p5318_p12), %s7153_s4, 3072, %s215_s14, [#allocation6], %s5217_s26, %s5217_s26, %s5218_s28  }
  0x2b   : > { %242 = sbr.rel (%p5310_p10) target bundleno = 1222 (0x4c6), region = 44 }
  0x30   : > { %p7176_p4 = scmp.eq.s32.totalorder %s5282_s25, 0 }
  0x32   : > { %5186 = dma.done.wait (%p7176_p4), [#allocation3], 12288   ;;  %p7177_p13 = pmov %p7176_p4 }
  0x33   : > { %p7178_p6 = pmov %p7176_p4 }
  0x34   : > { %5188 = vsyncadd (%p7177_p13), [#allocation3], 4294955008 }
  0x35   : > { %5190 = dma.done.wait (%p7178_p6), [#allocation6], 3072   ;;  %p7179_p9 = pmov %p7176_p4 }
  0x36   : > { %s4519_s11 = sshll.u32 %s5282_s25, 1  ;;  %v286_v0 = vlaneseq  ;;  %v2551_v5 = vld [vmem:[%s7152_s3] sm:$0x7]  ;;  %v4913_v9 = vld [vmem:[%s7150_s1 + $0x38] sm:$0xff]   ;;  %v4914_v11 = vld [vmem:[%s7150_s1 + $0x30] sm:$0xff]   ;;  %s273_s28 = sand.u32 1, %s5203_s22  }
  0x37   : > { %5192 = vsyncadd (%p7179_p9), [#allocation6], 4294964224  ;;  %p277_p7 = scmp.lt.s32.totalorder %s4519_s11, 15  ;;  %4775 = vmatprep.subr.bf16.mxu0 %v4913_v9  ;;  %v4915_v12 = vld [vmem:[%s7150_s1 + $0x28] sm:$0xff]   ;;  %v4916_v15 = vld [vmem:[%s7150_s1 + $0x20] sm:$0xff]   ;;  %s4719_s13 = sshll.u32 %s5282_s25, 8 }
  0x38   : > { %v5352_v1 = vshrl.u32 %v286_v0, 7  ;;  %4776 = vmatpush3.bf16.msra.mxu0 %v4913_v9  ;;  %v4917_v18 = vld [vmem:[%s7150_s1 + $0x18] sm:$0xff]   ;;  %v4918_v21 = vld [vmem:[%s7150_s1 + $0x10] sm:$0xff]   ;;  %v4919_v24 = vld [vmem:[%s7150_s1 + $0x8] sm:$0xff]   ;;  %v5407_v53 = vand.u32 127, %v286_v0  ;;  %s7107_s17 = scalar_lea.hbm %s7155_s6, %s4719_s13  ;;  %s7109_s18 = scalar_lea.sflag [#allocation4], %s273_s28 }
  0x39   : > { %s7251_s11 = smov (!%p277_p7, %s4519_s11), 15  ;;  %4777 = vmatprep.subr.bf16.mxu0 %v4914_v11  ;;  %v4920_v27 = vld [vmem:[%s7150_s1] sm:$0xff]   ;;  %v4923_v36 = vld [vmem:[#allocation2 + $0x2ac] ss:$48 sps:$4 sm:$0xff]   ;;  %v4921_v56 = vld [vmem:[#allocation2 + $0x2a8] ss:$48 sps:$4 sm:$0xff]  }
  0x3a   : > { %v5355_v2 = vsub.s32 1, %v5352_v1  ;;  %s4520_s9 = sshll.u32 %s7251_s11, 3  ;;  %v5358_v3 = vsub.s32 0, %v5352_v1  ;;  %v310_v6 = vsub.s32 2, %v5352_v1  ;;  %v321_v14 = vsub.s32 3, %v5352_v1  ;;  %s4518_s11 = sshll.u32 %s273_s28, 4 }
  0x3b   : > { %s5363_s14 = scalar_lea.vmem %s7149_s0, %s4520_s9  ;;  %v332_v17 = vsub.s32 4, %v5352_v1  ;;  %v343_v20 = vsub.s32 5, %v5352_v1  ;;  %v354_v23 = vsub.s32 6, %v5352_v1  ;;  %v365_v26 = vsub.s32 7, %v5352_v1  ;;  %v4933_v38 = vld [vmem:[#allocation2 + $0x2a4] ss:$48 sps:$4 sm:$0xff]  }
  0x3c   : > { %v284_v4 = vld [vmem:[%s5363_s14] sm:$0xff]  ;;  %v5375_v10 = vrot.slane %v2551_v5, %v310_v6  ;;  %4778 = vmatpush3.bf16.msra.mxu0 %v4914_v11  ;;  %v285_v28 = vld [vmem:[%s5363_s14 + $0x8] sm:$0xff]  ;;  %1393 = vmatprep.subr.bf16.mxu1 %v4933_v38  ;;  %v5219_v58 = vmov 1.0|1.0   ;;  %s275_s9 = scalar_lea.vmem [#allocation7], %s4518_s11  ;;  %s5223_s25 = smov [#allocation7]  }
  0x3d   : > { %v300_v7 = vrot.slane %v284_v4, %v5355_v2  ;;  %v289_v8 = vrot.slane %v284_v4, %v5358_v3  ;;  %v311_v13 = vrot.slane %v284_v4, %v310_v6  ;;  %4779 = vmatprep.subr.bf16.mxu0 %v4915_v12  ;;  %v322_v16 = vrot.slane %v284_v4, %v321_v14  ;;  %v4935_v39 = vld [vmem:[#allocation2 + $0x2a0] ss:$48 sps:$4 sm:$0xff]   ;;  %v4936_v40 = vld [vmem:[#allocation2 + $0x244] ss:$48 sps:$4 sm:$0xff]   ;;  %v4926_v57 = vld [vmem:[#allocation2 + $0x24c] ss:$48 sps:$4 sm:$0xff]  }
  0x3e   : > { %7180 = vst [vmem:[#allocation11_spill] sm:$0xff] %v5375_v10  ;;  %v333_v19 = vrot.slane %v284_v4, %v332_v17  ;;  %v344_v22 = vrot.slane %v284_v4, %v343_v20  ;;  %v355_v25 = vrot.slane %v284_v4, %v354_v23  ;;  %v366_v29 = vrot.slane %v284_v4, %v365_v26  ;;  %v4941_v42 = vld [vmem:[#allocation2 + $0x240] ss:$48 sps:$4 sm:$0xff]   ;;  %v4942_v43 = vld [vmem:[#allocation2 + $0x1e4] ss:$48 sps:$4 sm:$0xff]   ;;  %s4426_s12 = sshll.u32 %s275_s9, 4  ;;  %s7102_s12 = int_to_ptr.vmem [resolvable:$true] %s4426_s12 }
  0x3f   : > { %302 = vbcast.lane.b32.xlu1 %v300_v7, 256  ;;  %291 = vbcast.lane.b32.xlu0 %v289_v8, 256  ;;  %v377_v30 = vrot.slane %v285_v28, %v5358_v3  ;;  %v388_v31 = vrot.slane %v285_v28, %v5355_v2  ;;  %v399_v32 = vrot.slane %v285_v28, %v310_v6  ;;  %v4944_v44 = vld [vmem:[#allocation2 + $0x1e0] ss:$48 sps:$4 sm:$0xff]   ;;  %v4945_v45 = vld [vmem:[#allocation2 + $0x184] ss:$48 sps:$4 sm:$0xff]  }
  0x40   : > { %4780 = vmatpush3.bf16.msra.mxu0 %v4915_v12  ;;  %v410_v33 = vrot.slane %v285_v28, %v321_v14  ;;  %v421_v34 = vrot.slane %v285_v28, %v332_v17  ;;  %v432_v35 = vrot.slane %v285_v28, %v343_v20  ;;  %v443_v37 = vrot.slane %v285_v28, %v354_v23  ;;  %v4950_v46 = vld [vmem:[#allocation2 + $0x180] ss:$48 sps:$4 sm:$0xff]   ;;  %v4951_v47 = vld [vmem:[#allocation2 + $0x124] ss:$48 sps:$4 sm:$0xff]   ;;  %v4924_v61 = vld [vmem:[#allocation2 + $0x248] ss:$48 sps:$4 sm:$0xff]  }
  0x41   : > { %4781 = vmatprep.subr.bf16.mxu0 %v4916_v15  ;;  %v454_v41 = vrot.slane %v285_v28, %v365_v26  ;;  %1394 = vmatpush1.bf16.msra.mxu1 %v4935_v39  ;;  %v4953_v48 = vld [vmem:[#allocation2 + $0x120] ss:$48 sps:$4 sm:$0xff]   ;;  %v4954_v49 = vld [vmem:[#allocation2 + $0xc4] ss:$48 sps:$4 sm:$0xff]   ;;  %v4929_v62 = vld [vmem:[#allocation2 + $0x1ec] ss:$48 sps:$4 sm:$0xff]  }
  0x42   : > { %1395 = vmatprep.subr.bf16.mxu1 %v4936_v40  ;;  %v4959_v50 = vld [vmem:[#allocation2 + $0xc0] ss:$48 sps:$4 sm:$0xff]   ;;  %v4927_v4 = vld [vmem:[#allocation2 + $0x1e8] ss:$48 sps:$4 sm:$0xff]   ;;  %v4932_v5 = vld [vmem:[#allocation2 + $0x18c] ss:$48 sps:$4 sm:$0xff]  }
  0x43   : > { %306 = vbcast.lane.b32.xlu1 %v300_v7, 264  ;;  %295 = vbcast.lane.b32.xlu0 %v289_v8, 264  ;;  %v4930_v8 = vld [vmem:[#allocation2 + $0x188] ss:$48 sps:$4 sm:$0xff]   ;;  %v4940_v9 = vld [vmem:[#allocation2 + $0x12c] ss:$48 sps:$4 sm:$0xff]  }
  0x44   : > { %4782 = vmatpush3.bf16.msra.mxu0 %v4916_v15  ;;  %v4949_v14 = vld [vmem:[#allocation2 + $0xcc] ss:$48 sps:$4 sm:$0xff]   ;;  %v4947_v17 = vld [vmem:[#allocation2 + $0xc8] ss:$48 sps:$4 sm:$0xff]   ;;  %v4960_v38 = vld [vmem:[#allocation2 + $0x64] ss:$48 sps:$4 sm:$0xff]  }
  0x45   : > { %4783 = vmatprep.subr.bf16.mxu0 %v4917_v18  ;;  %1396 = vmatpush1.bf16.msra.mxu1 %v4941_v42  ;;  %v4962_v39 = vld [vmem:[#allocation2 + $0x60] ss:$48 sps:$4 sm:$0xff]   ;;  %v4963_v40 = vld [vmem:[#allocation2 + $0x4] ss:$48 sps:$4 sm:$0xff]   ;;  %v4965_v42 = vld [vmem:[#allocation2 + $0x8] ss:$48 sps:$4 sm:$0xff]  }
  0x46   : > { %1397 = vmatprep.subr.bf16.mxu1 %v4942_v43  ;;  %v4968_v43 = vld [vmem:[#allocation2] ss:$48 sps:$4 sm:$0xff]   ;;  %s5143_s14 = scalar_lea.vmem %s7102_s12, 256  ;;  %s5147_s19 = sshll.u32 %s5223_s25, 4  ;;  %s5148_s19 = int_to_ptr.vmem [resolvable:$false] %s5147_s19 }
  0x47   : > { %317 = vbcast.lane.b32.xlu1 %v311_v13, 264  ;;  %313 = vbcast.lane.b32.xlu0 %v311_v13, 256  ;;  %v4938_v13 = vld [vmem:[#allocation2 + $0x128] ss:$48 sps:$4 sm:$0xff]   ;;  %p5144_p10 = scmp.ne.s32.totalorder %s7102_s12, %s5143_s14  ;;  %s5149_s20 = scalar_lea.vmem %s5148_s19, 512 }
  0x48   : > { %4784 = vmatpush3.bf16.msra.mxu0 %v4917_v18  ;;  %v4958_v18 = vld [vmem:[#allocation2 + $0x6c] ss:$48 sps:$4 sm:$0xff]   ;;  %p5150_p11 = scmp.lt.s32.totalorder %s7102_s12, %s5148_s19  ;;  %p5151_p0 = scmp.lt.s32.totalorder %s5149_s20, %s5143_s14 }
  0x49   : > { %4785 = vmatprep.subr.bf16.mxu0 %v4918_v21  ;;  %1398 = vmatpush1.bf16.msra.mxu1 %v4944_v44  ;;  %v4971_v44 = vld [vmem:[#allocation2 + $0x2b4] ss:$48 sps:$4 sm:$0xff]   ;;  %p5145_p12 = pnand %p5144_p10, %p5299_p5 }
  0x4a   : > { %1399 = vmatprep.subr.bf16.mxu1 %v4945_v45  ;;  %v7159_v45 = vmov 0   ;;  %p5152_p1 = por %p5151_p0, %p5150_p11 }
  0x4b   : > { %328 = vbcast.lane.b32.xlu1 %v322_v16, 264  ;;  %324 = vbcast.lane.b32.xlu0 %v322_v16, 256  ;;  %p5146_p8 = pneg %p5145_p12 }
  0x4c   : > { %4786 = vmatpush3.bf16.msra.mxu0 %v4918_v21  ;;  %v4956_v21 = vld [vmem:[#allocation2 + $0x68] ss:$48 sps:$4 sm:$0xff]   ;;  %1425 = vmatprep.mubr.bf16.mxu1 %v7159_v45 }
  0x4d   : > { %4787 = vmatprep.subr.bf16.mxu0 %v4919_v24  ;;  %1400 = vmatpush1.bf16.msra.mxu1 %v4950_v46  ;;  %v4974_v46 = vld [vmem:[#allocation2 + $0x2bc] ss:$48 sps:$4 sm:$0xff]   ;;  %p5153_p3 = pnand %p5152_p1, %p5146_p8 }
  0x4e   : > { %1401 = vmatprep.subr.bf16.mxu1 %v4951_v47 }
  0x4f   : > { %339 = vbcast.lane.b32.xlu1 %v333_v19, 264  ;;  %335 = vbcast.lane.b32.xlu0 %v333_v19, 256 }
  0x50   : > { %4788 = vmatpush3.bf16.msra.mxu0 %v4919_v24 }
  0x51   : > { %4789 = vmatprep.subr.bf16.mxu0 %v4920_v27  ;;  %1402 = vmatpush1.bf16.msra.mxu1 %v4953_v48 }
  0x52   : > { %1403 = vmatprep.subr.bf16.mxu1 %v4954_v49 }
  0x53   : > { %350 = vbcast.lane.b32.xlu1 %v344_v22, 264  ;;  %346 = vbcast.lane.b32.xlu0 %v344_v22, 256 }
  0x54   : > { %4790 = vmatpush3.bf16.msra.mxu0 %v4920_v27 }
  0x55   : > { %1586 = vmatprep.subr.bf16.mxu0 %v4923_v36  ;;  %1404 = vmatpush1.bf16.msra.mxu1 %v4959_v50 }
  0x56   : > { %1405 = vmatprep.subr.bf16.mxu1 %v4960_v38 }
  0x57   : > { %361 = vbcast.lane.b32.xlu1 %v355_v25, 264  ;;  %357 = vbcast.lane.b32.xlu0 %v355_v25, 256 }
  0x59   : > { %1406 = vmatpush1.bf16.msra.mxu1 %v4962_v39 }
  0x5a   : > { %1407 = vmatprep.subr.bf16.mxu1 %v4963_v40 }
  0x5b   : > { %372 = vbcast.lane.b32.xlu1 %v366_v29, 264  ;;  %368 = vbcast.lane.b32.xlu0 %v366_v29, 256 }
  0x5d   : > { %1408 = vmatpush1.bf16.msra.mxu1 %v4968_v43 }
  0x5e   : > { %1779 = vmatprep.subr.bf16.mxu1 %v4971_v44 }
  0x5f   : > { %383 = vbcast.lane.b32.xlu1 %v377_v30, 264  ;;  %379 = vbcast.lane.b32.xlu0 %v377_v30, 256 }
  0x63   : > { %394 = vbcast.lane.b32.xlu1 %v388_v31, 264  ;;  %390 = vbcast.lane.b32.xlu0 %v388_v31, 256 }
  0x67   : > { %405 = vbcast.lane.b32.xlu1 %v399_v32, 264  ;;  %401 = vbcast.lane.b32.xlu0 %v399_v32, 256 }
  0x6b   : > { %416 = vbcast.lane.b32.xlu1 %v410_v33, 264  ;;  %412 = vbcast.lane.b32.xlu0 %v410_v33, 256 }
  0x6f   : > { %427 = vbcast.lane.b32.xlu1 %v421_v34, 264  ;;  %423 = vbcast.lane.b32.xlu0 %v421_v34, 256 }
  0x73   : > { %438 = vbcast.lane.b32.xlu1 %v432_v35, 264  ;;  %434 = vbcast.lane.b32.xlu0 %v432_v35, 256 }
  0x77   : > { %449 = vbcast.lane.b32.xlu1 %v443_v37, 264  ;;  %445 = vbcast.lane.b32.xlu0 %v443_v37, 256 }
  0x7b   : > { %460 = vbcast.lane.b32.xlu1 %v454_v41, 264  ;;  %456 = vbcast.lane.b32.xlu0 %v454_v41, 256  ;;  %v4967_v41 = vld [vmem:[#allocation2 + $0xc] ss:$48 sps:$4 sm:$0xff]  }
  0xb1   : > { %v303_v51 = vpop.permute.xlu1 %302  ;;  %v292_v52 = vpop.permute.xlu0 %291 }
  0xb2   : > { %vm466_vm0 = vcmp.eq.s32.totalorder %v303_v51, %v5407_v53  ;;  %vm464_vm3 = vcmp.eq.s32.totalorder %v292_v52, %v5407_v53  ;;  %v4969_v51 = vld [vmem:[#allocation2 + $0x2b0] ss:$48 sps:$4 sm:$0xff]   ;;  %v4972_v52 = vld [vmem:[#allocation2 + $0x2b8] ss:$48 sps:$4 sm:$0xff]  }
  0xb5   : > { %v307_v54 = vpop.permute.xlu1 %306  ;;  %v296_v55 = vpop.permute.xlu0 %295 }
  0xb6   : > { %vm467_vm1 = vcmp.eq.s32.totalorder %v307_v54, %v5407_v53  ;;  %vm465_vm2 = vcmp.eq.s32.totalorder %v296_v55, %v5407_v53  ;;  %v4977_v55 = vld [vmem:[#allocation2 + $0x254] ss:$48 sps:$4 sm:$0xff]  }
  0xb7   : > { %vm4563_vm4 = vmpackc.low %vm467_vm1, %vm466_vm0 }
  0xb8   : > { %vm4561_vm5 = vmpackc.low %vm465_vm2, %vm464_vm3 }
  0xb9   : > { %4791 = vmatprep.mubr.msk.bf16.mxu0 %vm4561_vm5, %v5219_v58  ;;  %v318_v59 = vpop.permute.xlu1 %317  ;;  %v314_v60 = vpop.permute.xlu0 %313 }
  0xba   : > { %4792 = vmatmul.mubr.msk.bf16.vlgmr.msra.gmra.mxu0 %vm4563_vm4, %v5219_v58  ;;  %vm469_vm6 = vcmp.eq.s32.totalorder %v318_v59, %v5407_v53  ;;  %vm468_vm7 = vcmp.eq.s32.totalorder %v314_v60, %v5407_v53  ;;  %v4983_v59 = vld [vmem:[#allocation2 + $0x1f4] ss:$48 sps:$4 sm:$0xff]   ;;  %v4986_v60 = vld [vmem:[#allocation2 + $0x1fc] ss:$48 sps:$4 sm:$0xff]  }
  0xbb   : > { %vm4565_vm8 = vmpackc.low %vm469_vm6, %vm468_vm7  ;;  %1587 = vmatpush1.bf16.msra.mxu0 %v4921_v56  ;;  %v4980_v56 = vld [vmem:[#allocation2 + $0x25c] ss:$48 sps:$4 sm:$0xff]  }
  0xbc   : > { %4795 = vmatprep.mubr.msk.bf16.mxu0 %vm4565_vm8, %v5219_v58  ;;  %1588 = vmatprep.subr.bf16.mxu0 %v4926_v57  ;;  %v4975_v57 = vld [vmem:[#allocation2 + $0x250] ss:$48 sps:$4 sm:$0xff]  }
  0xbd   : > { %v329_v63 = vpop.permute.xlu1 %328  ;;  %v325_v0 = vpop.permute.xlu0 %324 }
  0xbe   : > { %vm471_vm9 = vcmp.eq.s32.totalorder %v329_v63, %v5407_v53  ;;  %vm470_vm10 = vcmp.eq.s32.totalorder %v325_v0, %v5407_v53  ;;  %v4981_v63 = vld [vmem:[#allocation2 + $0x1f0] ss:$48 sps:$4 sm:$0xff]   ;;  %v4984_v0 = vld [vmem:[#allocation2 + $0x1f8] ss:$48 sps:$4 sm:$0xff]  }
  0xbf   : > { %vm4567_vm11 = vmpackc.low %vm471_vm9, %vm470_vm10  ;;  %1589 = vmatpush1.bf16.msra.mxu0 %v4924_v61 }
  0xc0   : > { %1590 = vmatprep.subr.bf16.mxu0 %v4929_v62 }
  0xc1   : > { %v340_v6 = vpop.permute.xlu1 %339  ;;  %v336_v7 = vpop.permute.xlu0 %335 }
  0xc2   : > { %4796 = vmatmul.mubr.msk.bf16.gmra.mxu0 %vm4567_vm11, %v5219_v58  ;;  %vm473_vm12 = vcmp.eq.s32.totalorder %v340_v6, %v5407_v53  ;;  %vm472_vm13 = vcmp.eq.s32.totalorder %v336_v7, %v5407_v53  ;;  %v4992_v6 = vld [vmem:[#allocation2 + $0x19c] ss:$48 sps:$4 sm:$0xff]   ;;  %v4987_v7 = vld [vmem:[#allocation2 + $0x190] ss:$48 sps:$4 sm:$0xff]  }
  0xc3   : > { %vm4569_vm14 = vmpackc.low %vm473_vm12, %vm472_vm13  ;;  %1591 = vmatpush1.bf16.msra.mxu0 %v4927_v4 }
  0xc4   : > { %4799 = vmatprep.mubr.msk.bf16.mxu0 %vm4569_vm14, %v5219_v58  ;;  %1592 = vmatprep.subr.bf16.mxu0 %v4932_v5  ;;  %v4989_v5 = vld [vmem:[#allocation2 + $0x194] ss:$48 sps:$4 sm:$0xff]  }
  0xc5   : > { %v351_v11 = vpop.permute.xlu1 %350  ;;  %v347_v12 = vpop.permute.xlu0 %346 }
  0xc6   : > { %vm475_vm15 = vcmp.eq.s32.totalorder %v351_v11, %v5407_v53  ;;  %vm474_vm0 = vcmp.eq.s32.totalorder %v347_v12, %v5407_v53  ;;  %v4995_v11 = vld [vmem:[#allocation2 + $0x134] ss:$48 sps:$4 sm:$0xff]   ;;  %v4998_v12 = vld [vmem:[#allocation2 + $0x13c] ss:$48 sps:$4 sm:$0xff]  }
  0xc7   : > { %vm4571_vm1 = vmpackc.low %vm475_vm15, %vm474_vm0  ;;  %1593 = vmatpush1.bf16.msra.mxu0 %v4930_v8  ;;  %v4990_v8 = vld [vmem:[#allocation2 + $0x198] ss:$48 sps:$4 sm:$0xff]  }
  0xc8   : > { %1594 = vmatprep.subr.bf16.mxu0 %v4940_v9 }
  0xc9   : > { %v362_v15 = vpop.permute.xlu1 %361  ;;  %v358_v16 = vpop.permute.xlu0 %357 }
  0xca   : > { %4800 = vmatmul.mubr.msk.bf16.gmra.mxu0 %vm4571_vm1, %v5219_v58  ;;  %vm477_vm2 = vcmp.eq.s32.totalorder %v362_v15, %v5407_v53  ;;  %vm476_vm3 = vcmp.eq.s32.totalorder %v358_v16, %v5407_v53  ;;  %v4996_v15 = vld [vmem:[#allocation2 + $0x138] ss:$48 sps:$4 sm:$0xff]  }
  0xcb   : > { %vm4573_vm4 = vmpackc.low %vm477_vm2, %vm476_vm3  ;;  %1595 = vmatpush1.bf16.msra.mxu0 %v4938_v13 }
  0xcc   : > { %4803 = vmatprep.mubr.msk.bf16.mxu0 %vm4573_vm4, %v5219_v58  ;;  %1596 = vmatprep.subr.bf16.mxu0 %v4949_v14  ;;  %v4993_v14 = vld [vmem:[#allocation2 + $0x130] ss:$48 sps:$4 sm:$0xff]  }
  0xcd   : > { %v373_v19 = vpop.permute.xlu1 %372  ;;  %v369_v20 = vpop.permute.xlu0 %368 }
  0xce   : > { %vm479_vm5 = vcmp.eq.s32.totalorder %v373_v19, %v5407_v53  ;;  %vm478_vm6 = vcmp.eq.s32.totalorder %v369_v20, %v5407_v53  ;;  %v4999_v19 = vld [vmem:[#allocation2 + $0xd0] ss:$48 sps:$4 sm:$0xff]   ;;  %v5002_v20 = vld [vmem:[#allocation2 + $0xd8] ss:$48 sps:$4 sm:$0xff]  }
  0xcf   : > { %vm4575_vm7 = vmpackc.low %vm479_vm5, %vm478_vm6  ;;  %1597 = vmatpush1.bf16.msra.mxu0 %v4947_v17  ;;  %v5001_v17 = vld [vmem:[#allocation2 + $0xd4] ss:$48 sps:$4 sm:$0xff]  }
  0xd0   : > { %1598 = vmatprep.subr.bf16.mxu0 %v4958_v18  ;;  %v5004_v18 = vld [vmem:[#allocation2 + $0xdc] ss:$48 sps:$4 sm:$0xff]  }
  0xd1   : > { %v384_v22 = vpop.permute.xlu1 %383  ;;  %v380_v23 = vpop.permute.xlu0 %379 }
  0xd2   : > { %4804 = vmatmul.mubr.msk.bf16.gmra.mxu0 %vm4575_vm7, %v5219_v58  ;;  %vm481_vm8 = vcmp.eq.s32.totalorder %v384_v22, %v5407_v53  ;;  %vm480_vm9 = vcmp.eq.s32.totalorder %v380_v23, %v5407_v53  ;;  %v5007_v22 = vld [vmem:[#allocation2 + $0x74] ss:$48 sps:$4 sm:$0xff]   ;;  %v5010_v23 = vld [vmem:[#allocation2 + $0x7c] ss:$48 sps:$4 sm:$0xff]  }
  0xd3   : > { %vm4577_vm10 = vmpackc.low %vm481_vm8, %vm480_vm9  ;;  %1599 = vmatpush1.bf16.msra.mxu0 %v4956_v21 }
  0xd4   : > { %4807 = vmatprep.mubr.msk.bf16.mxu0 %vm4577_vm10, %v5219_v58  ;;  %1600 = vmatprep.subr.bf16.mxu0 %v4967_v41 }
  0xd5   : > { %v395_v24 = vpop.permute.xlu1 %394  ;;  %v391_v25 = vpop.permute.xlu0 %390 }
  0xd6   : > { %vm483_vm11 = vcmp.eq.s32.totalorder %v395_v24, %v5407_v53  ;;  %vm482_vm12 = vcmp.eq.s32.totalorder %v391_v25, %v5407_v53  ;;  %v5005_v25 = vld [vmem:[#allocation2 + $0x70] ss:$48 sps:$4 sm:$0xff]  }
  0xd7   : > { %vm4579_vm13 = vmpackc.low %vm483_vm11, %vm482_vm12  ;;  %1601 = vmatpush1.bf16.msra.mxu0 %v4965_v42 }
  0xd8   : > { %1972 = vmatprep.subr.bf16.mxu0 %v4974_v46 }
  0xd9   : > { %v406_v26 = vpop.permute.xlu1 %405  ;;  %v402_v27 = vpop.permute.xlu0 %401 }
  0xda   : > { %4808 = vmatmul.mubr.msk.bf16.gmra.mxu0 %vm4579_vm13, %v5219_v58  ;;  %vm485_vm14 = vcmp.eq.s32.totalorder %v406_v26, %v5407_v53  ;;  %vm484_vm15 = vcmp.eq.s32.totalorder %v402_v27, %v5407_v53  ;;  %v5008_v26 = vld [vmem:[#allocation2 + $0x78] ss:$48 sps:$4 sm:$0xff]  }
  0xdb   : > { %vm4581_vm0 = vmpackc.low %vm485_vm14, %vm484_vm15 }
  0xdc   : > { %4811 = vmatprep.mubr.msk.bf16.mxu0 %vm4581_vm0, %v5219_v58  ;;  %vm2684_vm0 = vcmp.lt.s32.totalorder %v5352_v1, 6 }
  0xdd   : > { %v417_v28 = vpop.permute.xlu1 %416  ;;  %v413_v29 = vpop.permute.xlu0 %412 }
  0xde   : > { %vm487_vm1 = vcmp.eq.s32.totalorder %v417_v28, %v5407_v53  ;;  %vm486_vm2 = vcmp.eq.s32.totalorder %v413_v29, %v5407_v53  ;;  %v5013_v28 = vld [vmem:[#allocation2 + $0x14] ss:$48 sps:$4 sm:$0xff]   ;;  %v5016_v29 = vld [vmem:[#allocation2 + $0x1c] ss:$48 sps:$4 sm:$0xff]  }
  0xdf   : > { %vm4583_vm3 = vmpackc.low %vm487_vm1, %vm486_vm2  ;;  %vm2587_vm1 = vcmp.lt.s32.totalorder %v5352_v1, 7 }
  0xe1   : > { %v428_v30 = vpop.permute.xlu1 %427  ;;  %v424_v31 = vpop.permute.xlu0 %423 }
  0xe2   : > { %4812 = vmatmul.mubr.msk.bf16.gmra.mxu0 %vm4583_vm3, %v5219_v58  ;;  %vm489_vm4 = vcmp.eq.s32.totalorder %v428_v30, %v5407_v53  ;;  %vm488_vm5 = vcmp.eq.s32.totalorder %v424_v31, %v5407_v53  ;;  %v5011_v30 = vld [vmem:[#allocation2 + $0x10] ss:$48 sps:$4 sm:$0xff]   ;;  %v5014_v31 = vld [vmem:[#allocation2 + $0x18] ss:$48 sps:$4 sm:$0xff]   ;;  %vm3998_vm3 = vcmask 1041409  }
  0xe3   : > { %vm4585_vm6 = vmpackc.low %vm489_vm4, %vm488_vm5  ;;  %vm4001_vm4 = vcmask 1042434   ;;  %vm4004_vm5 = vcmask 1043459  }
  0xe4   : > { %4815 = vmatprep.mubr.msk.bf16.mxu0 %vm4585_vm6, %v5219_v58  ;;  %vm4007_vm6 = vcmask 1044484  }
  0xe5   : > { %v439_v32 = vpop.permute.xlu1 %438  ;;  %v435_v33 = vpop.permute.xlu0 %434 }
  0xe6   : > { %vm491_vm7 = vcmp.eq.s32.totalorder %v439_v32, %v5407_v53  ;;  %vm490_vm8 = vcmp.eq.s32.totalorder %v435_v33, %v5407_v53  ;;  %v5019_v33 = vld [vmem:[#allocation2 + $0x2c4] ss:$48 sps:$4 sm:$0xff]  }
  0xe7   : > { %vm4587_vm9 = vmpackc.low %vm491_vm7, %vm490_vm8  ;;  %vm4010_vm7 = vcmask 1045509   ;;  %vm4013_vm8 = vcmask 1046534  }
  0xe9   : > { %v450_v34 = vpop.permute.xlu1 %449  ;;  %v446_v35 = vpop.permute.xlu0 %445 }
  0xea   : > { %4816 = vmatmul.mubr.msk.bf16.gmra.mxu0 %vm4587_vm9, %v5219_v58  ;;  %vm493_vm10 = vcmp.eq.s32.totalorder %v450_v34, %v5407_v53  ;;  %vm492_vm11 = vcmp.eq.s32.totalorder %v446_v35, %v5407_v53  ;;  %v5022_v34 = vld [vmem:[#allocation2 + $0x2cc] ss:$48 sps:$4 sm:$0xff]   ;;  %vm4016_vm9 = vcmask 1047559  }
  0xeb   : > { %vm4589_vm12 = vmpackc.low %vm493_vm10, %vm492_vm11  ;;  %vm3159_vm10 = vcmp.lt.s32.totalorder %v5352_v1, 5 }
  0xec   : > { %4819 = vmatprep.mubr.msk.bf16.mxu0 %vm4589_vm12, %v5219_v58  ;;  %vm3730_vm12 = vcmp.lt.s32.totalorder %v5352_v1, 4 }
  0xed   : > { %v461_v36 = vpop.permute.xlu1 %460  ;;  %v457_v37 = vpop.permute.xlu0 %456 }
  0xee   : > { %vm495_vm13 = vcmp.eq.s32.totalorder %v461_v36, %v5407_v53  ;;  %vm494_vm14 = vcmp.eq.s32.totalorder %v457_v37, %v5407_v53 }
  0xef   : > { %vm4591_vm15 = vmpackc.low %vm495_vm13, %vm494_vm14  ;;  %vm5222_vm14 = vmmov 0  }
  0xf2   : > { %4820 = vmatmul.mubr.msk.bf16.gmra.mxu0 %vm4591_vm15, %v5219_v58  ;;  %v4978_v58 = vld [vmem:[#allocation2 + $0x258] ss:$48 sps:$4 sm:$0xff]  }
  0xf3   : > { %1618 = vmatprep.mubr.bf16.mxu0 %v7159_v45 }
 0x17a   : > { %v4793_v47 = vpop.f32.mrf.mxu0 }
 0x17c   : > { %v674_v48 = vpop.f32.mrf.mxu0 }
 0x17e   : > { %v4794_v49 = vpop.f32.mrf.mxu0 }
 0x17f   : > { %v5465_v62 = vpack.c.bf16 %v4794_v49, %v4793_v47 }
 0x180   : > { %v677_v50 = vpop.f32.mrf.mxu0 }
 0x181   : > { %v5459_v53 = vpack.c.bf16 %v677_v50, %v674_v48 }
 0x182   : > { %v4797_v54 = vpop.f32.mrf.mxu0 }
 0x183   : > { %1426 = vmatmul.mubr.bf16.vlgmr.msra.gmra.mxu1 %v5459_v53  ;;  %1619 = vmatmul.mubr.bf16.vlgmr.msra.gmra.mxu0 %v5459_v53 }
 0x184   : > { %1780 = vmatpush1.bf16.msra.mxu1 %v4969_v51  ;;  %1973 = vmatpush1.bf16.msra.mxu0 %v4972_v52  ;;  %v690_v61 = vpop.f32.mrf.mxu0 }
 0x185   : > { %1435 = vmatprep.mubr.bf16.mxu1 %v7159_v45  ;;  %1628 = vmatprep.mubr.bf16.mxu0 %v7159_v45 }
 0x186   : > { %1781 = vmatprep.subr.bf16.mxu1 %v4977_v55  ;;  %1974 = vmatprep.subr.bf16.mxu0 %v4980_v56  ;;  %v4798_v4 = vpop.f32.mrf.mxu0 }
 0x187   : > { %v5477_v24 = vpack.c.bf16 %v4798_v4, %v4797_v54 }
 0x188   : > { %1782 = vmatpush1.bf16.msra.mxu1 %v4975_v57  ;;  %1975 = vmatpush1.bf16.msra.mxu0 %v4978_v58  ;;  %v693_v9 = vpop.f32.mrf.mxu0 }
 0x189   : > { %1783 = vmatprep.subr.bf16.mxu1 %v4983_v59  ;;  %1976 = vmatprep.subr.bf16.mxu0 %v4986_v60  ;;  %v5471_v13 = vpack.c.bf16 %v693_v9, %v690_v61  ;;  %v5017_v9 = vld [vmem:[#allocation2 + $0x2c0] ss:$48 sps:$4 sm:$0xff]  }
 0x18a   : > { %v4801_v16 = vpop.f32.mrf.mxu0 }
 0x18b   : > { %1436 = vmatmul.mubr.bf16.gmra.mxu1 %v5465_v62  ;;  %1629 = vmatmul.mubr.bf16.gmra.mxu0 %v5465_v62 }
 0x18c   : > { %1445 = vmatprep.mubr.bf16.mxu1 %v7159_v45  ;;  %1638 = vmatprep.mubr.bf16.mxu0 %v7159_v45  ;;  %v706_v21 = vpop.f32.mrf.mxu0 }
 0x18d   : > { %1784 = vmatpush1.bf16.msra.mxu1 %v4981_v63  ;;  %1977 = vmatpush1.bf16.msra.mxu0 %v4984_v0 }
 0x18e   : > { %1785 = vmatprep.subr.bf16.mxu1 %v4989_v5  ;;  %1978 = vmatprep.subr.bf16.mxu0 %v4992_v6  ;;  %v4802_v27 = vpop.f32.mrf.mxu0 }
 0x18f   : > { %v5489_v38 = vpack.c.bf16 %v4802_v27, %v4801_v16  ;;  %v5026_v16 = vld [vmem:[#allocation2 + $0x268] ss:$48 sps:$4 sm:$0xff]   ;;  %v5046_v27 = vld [vmem:[#allocation2 + $0x14c] ss:$48 sps:$4 sm:$0xff]  }
 0x190   : > { %v709_v32 = vpop.f32.mrf.mxu0 }
 0x191   : > { %1786 = vmatpush1.bf16.msra.mxu1 %v4987_v7  ;;  %1979 = vmatpush1.bf16.msra.mxu0 %v4990_v8  ;;  %v5483_v35 = vpack.c.bf16 %v709_v32, %v706_v21  ;;  %v5037_v21 = vld [vmem:[#allocation2 + $0x1a4] ss:$48 sps:$4 sm:$0xff]   ;;  %v5047_v32 = vld [vmem:[#allocation2 + $0xe0] ss:$48 sps:$4 sm:$0xff]  }
 0x192   : > { %1787 = vmatprep.subr.bf16.mxu1 %v4995_v11  ;;  %1980 = vmatprep.subr.bf16.mxu0 %v4998_v12  ;;  %v4805_v36 = vpop.f32.mrf.mxu0  ;;  %v5020_v11 = vld [vmem:[#allocation2 + $0x2c8] ss:$48 sps:$4 sm:$0xff]   ;;  %v5025_v12 = vld [vmem:[#allocation2 + $0x264] ss:$48 sps:$4 sm:$0xff]  }
 0x193   : > { %1446 = vmatmul.mubr.bf16.gmra.mxu1 %v5471_v13  ;;  %1639 = vmatmul.mubr.bf16.gmra.mxu0 %v5471_v13 }
 0x194   : > { %1455 = vmatprep.mubr.bf16.mxu1 %v7159_v45  ;;  %1648 = vmatprep.mubr.bf16.mxu0 %v7159_v45  ;;  %v722_v37 = vpop.f32.mrf.mxu0 }
 0x195   : > { %1788 = vmatpush1.bf16.msra.mxu1 %v4993_v14  ;;  %1981 = vmatpush1.bf16.msra.mxu0 %v4996_v15  ;;  %v5028_v14 = vld [vmem:[#allocation2 + $0x26c] ss:$48 sps:$4 sm:$0xff]   ;;  %v5023_v15 = vld [vmem:[#allocation2 + $0x260] ss:$48 sps:$4 sm:$0xff]  }
 0x196   : > { %1789 = vmatprep.subr.bf16.mxu1 %v5001_v17  ;;  %1982 = vmatprep.subr.bf16.mxu0 %v5004_v18  ;;  %v4806_v39 = vpop.f32.mrf.mxu0  ;;  %v5031_v17 = vld [vmem:[#allocation2 + $0x204] ss:$48 sps:$4 sm:$0xff]   ;;  %v5034_v18 = vld [vmem:[#allocation2 + $0x20c] ss:$48 sps:$4 sm:$0xff]  }
 0x197   : > { %v5501_v44 = vpack.c.bf16 %v4806_v39, %v4805_v36  ;;  %v5058_v36 = vld [vmem:[#allocation2 + $0x8c] ss:$48 sps:$4 sm:$0xff]   ;;  %v5056_v39 = vld [vmem:[#allocation2 + $0x88] ss:$48 sps:$4 sm:$0xff]  }
 0x198   : > { %v725_v40 = vpop.f32.mrf.mxu0 }
 0x199   : > { %1790 = vmatpush1.bf16.msra.mxu1 %v4999_v19  ;;  %1983 = vmatpush1.bf16.msra.mxu0 %v5002_v20  ;;  %v5495_v41 = vpack.c.bf16 %v725_v40, %v722_v37  ;;  %v5029_v19 = vld [vmem:[#allocation2 + $0x200] ss:$48 sps:$4 sm:$0xff]   ;;  %v5032_v20 = vld [vmem:[#allocation2 + $0x208] ss:$48 sps:$4 sm:$0xff]   ;;  %v5061_v40 = vld [vmem:[#allocation2 + $0x24] ss:$48 sps:$4 sm:$0xff]  }
 0x19a   : > { %1791 = vmatprep.subr.bf16.mxu1 %v5007_v22  ;;  %1984 = vmatprep.subr.bf16.mxu0 %v5010_v23  ;;  %v4809_v42 = vpop.f32.mrf.mxu0  ;;  %v5040_v22 = vld [vmem:[#allocation2 + $0x1ac] ss:$48 sps:$4 sm:$0xff]   ;;  %v5035_v23 = vld [vmem:[#allocation2 + $0x1a0] ss:$48 sps:$4 sm:$0xff]  }
 0x19b   : > { %1456 = vmatmul.mubr.bf16.gmra.mxu1 %v5477_v24  ;;  %1649 = vmatmul.mubr.bf16.gmra.mxu0 %v5477_v24  ;;  %v5053_v37 = vld [vmem:[#allocation2 + $0x80] ss:$48 sps:$4 sm:$0xff]  }
 0x19c   : > { %1465 = vmatprep.mubr.bf16.mxu1 %v7159_v45  ;;  %1658 = vmatprep.mubr.bf16.mxu0 %v7159_v45  ;;  %v738_v43 = vpop.f32.mrf.mxu0 }
 0x19d   : > { %1792 = vmatpush1.bf16.msra.mxu1 %v5005_v25  ;;  %1985 = vmatpush1.bf16.msra.mxu0 %v5008_v26  ;;  %v5038_v25 = vld [vmem:[#allocation2 + $0x1a8] ss:$48 sps:$4 sm:$0xff]   ;;  %v5043_v26 = vld [vmem:[#allocation2 + $0x144] ss:$48 sps:$4 sm:$0xff]  }
 0x19e   : > { %1793 = vmatprep.subr.bf16.mxu1 %v5013_v28  ;;  %1986 = vmatprep.subr.bf16.mxu0 %v5016_v29  ;;  %v4810_v46 = vpop.f32.mrf.mxu0  ;;  %v5041_v28 = vld [vmem:[#allocation2 + $0x140] ss:$48 sps:$4 sm:$0xff]   ;;  %v5044_v29 = vld [vmem:[#allocation2 + $0x148] ss:$48 sps:$4 sm:$0xff]  }
 0x19f   : > { %v5513_v51 = vpack.c.bf16 %v4810_v46, %v4809_v42  ;;  %v5064_v42 = vld [vmem:[#allocation2 + $0x2c] ss:$48 sps:$4 sm:$0xff]   ;;  %v5062_v46 = vld [vmem:[#allocation2 + $0x28] ss:$48 sps:$4 sm:$0xff]  }
 0x1a0   : > { %v741_v47 = vpop.f32.mrf.mxu0 }
 0x1a1   : > { %1794 = vmatpush1.bf16.msra.mxu1 %v5011_v30  ;;  %1987 = vmatpush1.bf16.msra.mxu0 %v5014_v31  ;;  %v5507_v48 = vpack.c.bf16 %v741_v47, %v738_v43  ;;  %v5049_v30 = vld [vmem:[#allocation2 + $0xe4] ss:$48 sps:$4 sm:$0xff]   ;;  %v5052_v31 = vld [vmem:[#allocation2 + $0xec] ss:$48 sps:$4 sm:$0xff]   ;;  %v5059_v43 = vld [vmem:[#allocation2 + $0x20] ss:$48 sps:$4 sm:$0xff]  }
 0x1a2   : > { %2165 = vmatprep.subr.bf16.mxu1 %v5019_v33  ;;  %2358 = vmatprep.subr.bf16.mxu0 %v5022_v34  ;;  %v4813_v49 = vpop.f32.mrf.mxu0  ;;  %v5050_v33 = vld [vmem:[#allocation2 + $0xe8] ss:$48 sps:$4 sm:$0xff]   ;;  %v5055_v34 = vld [vmem:[#allocation2 + $0x84] ss:$48 sps:$4 sm:$0xff]  }
 0x1a3   : > { %1466 = vmatmul.mubr.bf16.gmra.mxu1 %v5483_v35  ;;  %1659 = vmatmul.mubr.bf16.gmra.mxu0 %v5483_v35 }
 0x1a4   : > { %1475 = vmatprep.mubr.bf16.mxu1 %v7159_v45  ;;  %1668 = vmatprep.mubr.bf16.mxu0 %v7159_v45  ;;  %v754_v50 = vpop.f32.mrf.mxu0 }
 0x1a6   : > { %v4814_v52 = vpop.f32.mrf.mxu0 }
 0x1a7   : > { %v5525_v58 = vpack.c.bf16 %v4814_v52, %v4813_v49 }
 0x1a8   : > { %v757_v54 = vpop.f32.mrf.mxu0 }
 0x1a9   : > { %v5519_v55 = vpack.c.bf16 %v757_v54, %v754_v50 }
 0x1aa   : > { %v4817_v56 = vpop.f32.mrf.mxu0 }
 0x1ab   : > { %1476 = vmatmul.mubr.bf16.gmra.mxu1 %v5489_v38  ;;  %1669 = vmatmul.mubr.bf16.gmra.mxu0 %v5489_v38 }
 0x1ac   : > { %1485 = vmatprep.mubr.bf16.mxu1 %v7159_v45  ;;  %1678 = vmatprep.mubr.bf16.mxu0 %v7159_v45  ;;  %v770_v57 = vpop.f32.mrf.mxu0 }
 0x1ae   : > { %v4818_v59 = vpop.f32.mrf.mxu0 }
 0x1af   : > { %v5537_v4 = vpack.c.bf16 %v4818_v59, %v4817_v56 }
 0x1b0   : > { %v773_v60 = vpop.f32.mrf.mxu0 }
 0x1b1   : > { %v5531_v61 = vpack.c.bf16 %v773_v60, %v770_v57 }
 0x1b2   : > { %v4821_v63 = vpop.f32.mrf.mxu0 }
 0x1b3   : > { %1486 = vmatmul.mubr.bf16.gmra.mxu1 %v5495_v41  ;;  %1679 = vmatmul.mubr.bf16.gmra.mxu0 %v5495_v41 }
 0x1b4   : > { %1495 = vmatprep.mubr.bf16.mxu1 %v7159_v45  ;;  %1688 = vmatprep.mubr.bf16.mxu0 %v7159_v45  ;;  %v786_v0 = vpop.f32.mrf.mxu0 }
 0x1b6   : > { %v4822_v5 = vpop.f32.mrf.mxu0 }
 0x1b7   : > { %v5549_v8 = vpack.c.bf16 %v4822_v5, %v4821_v63 }
 0x1b8   : > { %v789_v6 = vpop.f32.mrf.mxu0 }
 0x1b9   : > { %v5543_v7 = vpack.c.bf16 %v789_v6, %v786_v0 }
 0x1bb   : > { %1496 = vmatmul.mubr.bf16.gmra.mxu1 %v5501_v44  ;;  %1689 = vmatmul.mubr.bf16.gmra.mxu0 %v5501_v44 }
 0x1bc   : > { %1505 = vmatprep.mubr.bf16.mxu1 %v7159_v45  ;;  %1698 = vmatprep.mubr.bf16.mxu0 %v7159_v45 }
 0x1c3   : > { %1506 = vmatmul.mubr.bf16.gmra.mxu1 %v5507_v48  ;;  %1699 = vmatmul.mubr.bf16.gmra.mxu0 %v5507_v48 }
 0x1c4   : > { %1515 = vmatprep.mubr.bf16.mxu1 %v7159_v45  ;;  %1708 = vmatprep.mubr.bf16.mxu0 %v7159_v45 }
 0x1cb   : > { %1516 = vmatmul.mubr.bf16.gmra.mxu1 %v5513_v51  ;;  %1709 = vmatmul.mubr.bf16.gmra.mxu0 %v5513_v51 }
 0x1cc   : > { %1525 = vmatprep.mubr.bf16.mxu1 %v7159_v45  ;;  %1718 = vmatprep.mubr.bf16.mxu0 %v7159_v45 }
 0x1d3   : > { %1526 = vmatmul.mubr.bf16.gmra.mxu1 %v5519_v55  ;;  %1719 = vmatmul.mubr.bf16.gmra.mxu0 %v5519_v55 }
 0x1d4   : > { %1535 = vmatprep.mubr.bf16.mxu1 %v7159_v45  ;;  %1728 = vmatprep.mubr.bf16.mxu0 %v7159_v45 }
 0x1db   : > { %1536 = vmatmul.mubr.bf16.gmra.mxu1 %v5525_v58  ;;  %1729 = vmatmul.mubr.bf16.gmra.mxu0 %v5525_v58 }
 0x1dc   : > { %1545 = vmatprep.mubr.bf16.mxu1 %v7159_v45  ;;  %1738 = vmatprep.mubr.bf16.mxu0 %v7159_v45 }
 0x1e3   : > { %1546 = vmatmul.mubr.bf16.gmra.mxu1 %v5531_v61  ;;  %1739 = vmatmul.mubr.bf16.gmra.mxu0 %v5531_v61 }
 0x1e4   : > { %1555 = vmatprep.mubr.bf16.mxu1 %v7159_v45  ;;  %1748 = vmatprep.mubr.bf16.mxu0 %v7159_v45 }
 0x1eb   : > { %1556 = vmatmul.mubr.bf16.gmra.mxu1 %v5537_v4  ;;  %1749 = vmatmul.mubr.bf16.gmra.mxu0 %v5537_v4 }
 0x1ec   : > { %1565 = vmatprep.mubr.bf16.mxu1 %v7159_v45  ;;  %1758 = vmatprep.mubr.bf16.mxu0 %v7159_v45 }
 0x1f3   : > { %1566 = vmatmul.mubr.bf16.gmra.mxu1 %v5543_v7  ;;  %1759 = vmatmul.mubr.bf16.gmra.mxu0 %v5543_v7 }
 0x1f4   : > { %1575 = vmatprep.mubr.bf16.mxu1 %v7159_v45  ;;  %1768 = vmatprep.mubr.bf16.mxu0 %v7159_v45 }
 0x1fb   : > { %1576 = vmatmul.mubr.bf16.gmra.mxu1 %v5549_v8  ;;  %1769 = vmatmul.mubr.bf16.gmra.mxu0 %v5549_v8 }
 0x1fc   : > { %1811 = vmatprep.mubr.bf16.mxu1 %v7159_v45  ;;  %2004 = vmatprep.mubr.bf16.mxu0 %v7159_v45 }
 0x203   : > { %1812 = vmatmul.mubr.bf16.vlgmr.msra.gmra.mxu1 %v5459_v53  ;;  %2005 = vmatmul.mubr.bf16.vlgmr.msra.gmra.mxu0 %v5459_v53 }
 0x204   : > { %2166 = vmatpush1.bf16.msra.mxu1 %v5017_v9  ;;  %2359 = vmatpush1.bf16.msra.mxu0 %v5020_v11 }
 0x205   : > { %1821 = vmatprep.mubr.bf16.mxu1 %v7159_v45  ;;  %2014 = vmatprep.mubr.bf16.mxu0 %v7159_v45 }
 0x206   : > { %2167 = vmatprep.subr.bf16.mxu1 %v5025_v12  ;;  %2360 = vmatprep.subr.bf16.mxu0 %v5028_v14 }
 0x208   : > { %2168 = vmatpush1.bf16.msra.mxu1 %v5023_v15  ;;  %2361 = vmatpush1.bf16.msra.mxu0 %v5026_v16 }
 0x209   : > { %2169 = vmatprep.subr.bf16.mxu1 %v5031_v17  ;;  %2362 = vmatprep.subr.bf16.mxu0 %v5034_v18 }
 0x20b   : > { %1822 = vmatmul.mubr.bf16.gmra.mxu1 %v5465_v62  ;;  %2015 = vmatmul.mubr.bf16.gmra.mxu0 %v5465_v62 }
 0x20c   : > { %1831 = vmatprep.mubr.bf16.mxu1 %v7159_v45  ;;  %2024 = vmatprep.mubr.bf16.mxu0 %v7159_v45 }
 0x20d   : > { %2170 = vmatpush1.bf16.msra.mxu1 %v5029_v19  ;;  %2363 = vmatpush1.bf16.msra.mxu0 %v5032_v20  ;;  %v5620_v19 = vadd.s32 8, %v5352_v1 }
 0x20e   : > { %2171 = vmatprep.subr.bf16.mxu1 %v5037_v21  ;;  %2364 = vmatprep.subr.bf16.mxu0 %v5040_v22 }
 0x20f   : > { %vm2750_vm2 = vcmp.lt.s32.totalorder %v5620_v19, 14  ;;  %vm3225_vm11 = vcmp.lt.s32.totalorder %v5620_v19, 13  ;;  %vm3796_vm13 = vcmp.lt.s32.totalorder %v5620_v19, 12 }
 0x211   : > { %2172 = vmatpush1.bf16.msra.mxu1 %v5035_v23  ;;  %2365 = vmatpush1.bf16.msra.mxu0 %v5038_v25 }
 0x212   : > { %2173 = vmatprep.subr.bf16.mxu1 %v5043_v26  ;;  %2366 = vmatprep.subr.bf16.mxu0 %v5046_v27 }
 0x213   : > { %1832 = vmatmul.mubr.bf16.gmra.mxu1 %v5471_v13  ;;  %2025 = vmatmul.mubr.bf16.gmra.mxu0 %v5471_v13 }
 0x214   : > { %1841 = vmatprep.mubr.bf16.mxu1 %v7159_v45  ;;  %2034 = vmatprep.mubr.bf16.mxu0 %v7159_v45 }
 0x215   : > { %2174 = vmatpush1.bf16.msra.mxu1 %v5041_v28  ;;  %2367 = vmatpush1.bf16.msra.mxu0 %v5044_v29 }
 0x216   : > { %2175 = vmatprep.subr.bf16.mxu1 %v5049_v30  ;;  %2368 = vmatprep.subr.bf16.mxu0 %v5052_v31 }
 0x219   : > { %2176 = vmatpush1.bf16.msra.mxu1 %v5047_v32  ;;  %2369 = vmatpush1.bf16.msra.mxu0 %v5050_v33 }
 0x21a   : > { %2177 = vmatprep.subr.bf16.mxu1 %v5055_v34  ;;  %2370 = vmatprep.subr.bf16.mxu0 %v5058_v36 }
 0x21b   : > { %1842 = vmatmul.mubr.bf16.gmra.mxu1 %v5477_v24  ;;  %2035 = vmatmul.mubr.bf16.gmra.mxu0 %v5477_v24 }
 0x21c   : > { %1851 = vmatprep.mubr.bf16.mxu1 %v7159_v45  ;;  %2044 = vmatprep.mubr.bf16.mxu0 %v7159_v45 }
 0x21d   : > { %2178 = vmatpush1.bf16.msra.mxu1 %v5053_v37  ;;  %2371 = vmatpush1.bf16.msra.mxu0 %v5056_v39 }
 0x21e   : > { %2179 = vmatprep.subr.bf16.mxu1 %v5061_v40  ;;  %2372 = vmatprep.subr.bf16.mxu0 %v5064_v42 }
 0x221   : > { %2180 = vmatpush1.bf16.msra.mxu1 %v5059_v43  ;;  %2373 = vmatpush1.bf16.msra.mxu0 %v5062_v46 }
 0x223   : > { %1852 = vmatmul.mubr.bf16.gmra.mxu1 %v5483_v35  ;;  %2045 = vmatmul.mubr.bf16.gmra.mxu0 %v5483_v35 }
 0x224   : > { %1861 = vmatprep.mubr.bf16.mxu1 %v7159_v45  ;;  %2054 = vmatprep.mubr.bf16.mxu0 %v7159_v45 }
 0x22b   : > { %1862 = vmatmul.mubr.bf16.gmra.mxu1 %v5489_v38  ;;  %2055 = vmatmul.mubr.bf16.gmra.mxu0 %v5489_v38 }
 0x22c   : > { %1871 = vmatprep.mubr.bf16.mxu1 %v7159_v45  ;;  %2064 = vmatprep.mubr.bf16.mxu0 %v7159_v45 }
 0x233   : > { %1872 = vmatmul.mubr.bf16.gmra.mxu1 %v5495_v41  ;;  %2065 = vmatmul.mubr.bf16.gmra.mxu0 %v5495_v41 }
 0x234   : > { %1881 = vmatprep.mubr.bf16.mxu1 %v7159_v45  ;;  %2074 = vmatprep.mubr.bf16.mxu0 %v7159_v45 }
 0x23b   : > { %1882 = vmatmul.mubr.bf16.gmra.mxu1 %v5501_v44  ;;  %2075 = vmatmul.mubr.bf16.gmra.mxu0 %v5501_v44 }
 0x23c   : > { %1891 = vmatprep.mubr.bf16.mxu1 %v7159_v45  ;;  %2084 = vmatprep.mubr.bf16.mxu0 %v7159_v45 }
 0x243   : > { %v1427_v47 = vpop.f32.mrf.mxu1  ;;  %v5587_v49 = vpop.f32.mrf.mxu0  ;;  %1892 = vmatmul.mubr.bf16.gmra.mxu1 %v5507_v48  ;;  %2085 = vmatmul.mubr.bf16.gmra.mxu0 %v5507_v48 }
 0x244   : > { %1901 = vmatprep.mubr.bf16.mxu1 %v7159_v45  ;;  %2094 = vmatprep.mubr.bf16.mxu0 %v7159_v45  ;;  %v7158_v57 = vrot.slane %v5587_v49, 2 }
 0x245   : > { %v5593_v50 = vpop.f32.mrf.mxu1  ;;  %v5595_v52 = vpop.f32.mrf.mxu0 }
 0x246   : > { %v7157_v0 = vrot.slane %v5593_v50, 1 }
 0x247   : > { %v1431_v54 = vpop.f32.mrf.mxu1  ;;  %v1624_v56 = vpop.f32.mrf.mxu0 }
 0x248   : > { %v2653_v59 = vrot.slane %v1624_v56, 2 }
 0x249   : > { %v1433_v60 = vpop.f32.mrf.mxu1  ;;  %v5600_v63 = vpop.f32.mrf.mxu0 }
 0x24a   : > { %v2715_v5 = vsel %vm2684_vm0, %v7158_v57, %v2653_v59  ;;  %v2556_v6 = vrot.slane %v1433_v60, 1 }
 0x24b   : > { %v1437_v9 = vpop.f32.mrf.mxu1  ;;  %v1630_v11 = vpop.f32.mrf.mxu0  ;;  %1902 = vmatmul.mubr.bf16.gmra.mxu1 %v5513_v51  ;;  %2095 = vmatmul.mubr.bf16.gmra.mxu0 %v5513_v51 }
 0x24c   : > { %v2618_v12 = vsel %vm2587_vm1, %v7157_v0, %v2556_v6  ;;  %v2654_v14 = vrot.slane %v1630_v11, 2  ;;  %1911 = vmatprep.mubr.bf16.mxu1 %v7159_v45  ;;  %2104 = vmatprep.mubr.bf16.mxu0 %v7159_v45 }
 0x24d   : > { %v2620_v15 = vadd.f32 %v2618_v12, %v1427_v47  ;;  %v1439_v16 = vpop.f32.mrf.mxu1  ;;  %v5615_v17 = vpop.f32.mrf.mxu0 }
 0x24e   : > { %v2714_v18 = vsel %vm2684_vm0, %v2653_v59, %v2654_v14  ;;  %v2557_v20 = vrot.slane %v1439_v16, 1 }
 0x24f   : > { %v2717_v21 = vadd.f32 %v2715_v5, %v2620_v15  ;;  %v1441_v22 = vpop.f32.mrf.mxu1  ;;  %v1634_v23 = vpop.f32.mrf.mxu0 }
 0x250   : > { %v2617_v25 = vsel %vm2587_vm1, %v2556_v6, %v2557_v20  ;;  %v2655_v26 = vrot.slane %v1634_v23, 2 }
 0x251   : > { %v2621_v27 = vadd.f32 %v2617_v25, %v1431_v54  ;;  %v1443_v28 = vpop.f32.mrf.mxu1  ;;  %v5624_v29 = vpop.f32.mrf.mxu0 }
 0x252   : > { %v2713_v30 = vsel %vm2684_vm0, %v2654_v14, %v2655_v26  ;;  %v2558_v31 = vrot.slane %v1443_v28, 1 }
 0x253   : > { %v2718_v32 = vadd.f32 %v2714_v18, %v2621_v27  ;;  %v1447_v33 = vpop.f32.mrf.mxu1  ;;  %v1640_v34 = vpop.f32.mrf.mxu0  ;;  %1912 = vmatmul.mubr.bf16.gmra.mxu1 %v5519_v55  ;;  %2105 = vmatmul.mubr.bf16.gmra.mxu0 %v5519_v55 }
 0x254   : > { %v2616_v36 = vsel %vm2587_vm1, %v2557_v20, %v2558_v31  ;;  %v2656_v37 = vrot.slane %v1640_v34, 2  ;;  %1921 = vmatprep.mubr.bf16.mxu1 %v7159_v45  ;;  %2114 = vmatprep.mubr.bf16.mxu0 %v7159_v45 }
 0x255   : > { %v2756_v39 = vsel %vm2750_vm2, %v2718_v32, -inf  ;;  %v2622_v40 = vadd.f32 %v2616_v36, %v1437_v9  ;;  %v1449_v42 = vpop.f32.mrf.mxu1  ;;  %v5637_v43 = vpop.f32.mrf.mxu0 }
 0x256   : > { %v2787_v46 = vmax.f32 %v2717_v21, %v2756_v39  ;;  %v2712_v47 = vsel %vm2684_vm0, %v2655_v26, %v2656_v37  ;;  %v2559_v54 = vrot.slane %v1449_v42, 1  ;;  %v5089_v39 = vld [vmem:[%s7152_s3] sm:$0x7] }
 0x257   : > { %v2719_v56 = vadd.f32 %v2713_v30, %v2622_v40  ;;  %v1451_v59 = vpop.f32.mrf.mxu1  ;;  %v1644_v60 = vpop.f32.mrf.mxu0  ;;  %v5663_v40 = vrot.slane %v5089_v39, %v5358_v3 }
 0x258   : > { %v2788_v5 = vrot.slane %v2787_v46, 4  ;;  %v2615_v6 = vsel %vm2587_vm1, %v2558_v31, %v2559_v54  ;;  %v2657_v11 = vrot.slane %v1644_v60, 2 }
 0x259   : > { %v2623_v12 = vadd.f32 %v2615_v6, %v1441_v22  ;;  %v1453_v14 = vpop.f32.mrf.mxu1  ;;  %v5643_v15 = vpop.f32.mrf.mxu0 }
 0x25a   : > { %v2789_v9 = vmax.f32 %v2787_v46, %v2788_v5  ;;  %v2711_v16 = vsel %vm2684_vm0, %v2656_v37, %v2657_v11  ;;  %v2560_v18 = vrot.slane %v1453_v14, 1 }
 0x25b   : > { %v2720_v20 = vadd.f32 %v2712_v47, %v2623_v12  ;;  %v1457_v21 = vpop.f32.mrf.mxu1  ;;  %v1650_v23 = vpop.f32.mrf.mxu0  ;;  %1922 = vmatmul.mubr.bf16.gmra.mxu1 %v5525_v58  ;;  %2115 = vmatmul.mubr.bf16.gmra.mxu0 %v5525_v58 }
 0x25c   : > { %v2790_v25 = vrot.slane %v2789_v9, 2  ;;  %v2614_v26 = vsel %vm2587_vm1, %v2559_v54, %v2560_v18  ;;  %v2658_v22 = vrot.slane %v1650_v23, 2  ;;  %1931 = vmatprep.mubr.bf16.mxu1 %v7159_v45  ;;  %2124 = vmatprep.mubr.bf16.mxu0 %v7159_v45 }
 0x25d   : > { %v2758_v27 = vsel %vm2750_vm2, %v2720_v20, -inf  ;;  %v2624_v28 = vadd.f32 %v2614_v26, %v1447_v33  ;;  %v1459_v30 = vpop.f32.mrf.mxu1  ;;  %v5655_v31 = vpop.f32.mrf.mxu0 }
 0x25e   : > { %v2791_v32 = vmax.f32 %v2789_v9, %v2790_v25  ;;  %v2794_v34 = vmax.f32 %v2719_v56, %v2758_v27  ;;  %v2710_v36 = vsel %vm2684_vm0, %v2657_v11, %v2658_v22  ;;  %v2561_v37 = vrot.slane %v1459_v30, 1 }
 0x25f   : > { %v2721_v42 = vadd.f32 %v2711_v16, %v2624_v28  ;;  %v1461_v46 = vpop.f32.mrf.mxu1  ;;  %v1654_v47 = vpop.f32.mrf.mxu0 }
 0x260   : > { %v2792_v33 = vrot.slane %v2791_v32, 1  ;;  %v2795_v54 = vrot.slane %v2794_v34, 4  ;;  %v2613_v60 = vsel %vm2587_vm1, %v2560_v18, %v2561_v37  ;;  %v2659_v56 = vrot.slane %v1654_v47, 2 }
 0x261   : > { %v2625_v5 = vadd.f32 %v2613_v60, %v1451_v59  ;;  %v1463_v6 = vpop.f32.mrf.mxu1  ;;  %v5667_v11 = vpop.f32.mrf.mxu0 }
 0x262   : > { %v2793_v12 = vmax.f32 %v2791_v32, %v2792_v33  ;;  %v2796_v14 = vmax.f32 %v2794_v34, %v2795_v54  ;;  %v2709_v9 = vsel %vm2684_vm0, %v2658_v22, %v2659_v56  ;;  %v2562_v3 = vrot.slane %v1463_v6, 1 }
 0x263   : > { %v2722_v20 = vadd.f32 %v2710_v36, %v2625_v5  ;;  %v1467_v16 = vpop.f32.mrf.mxu1  ;;  %v1660_v23 = vpop.f32.mrf.mxu0  ;;  %1932 = vmatmul.mubr.bf16.gmra.mxu1 %v5531_v61  ;;  %2125 = vmatmul.mubr.bf16.gmra.mxu0 %v5531_v61 }
 0x264   : > { %v2903_v18 = vadd.f32 %v5663_v40, %v2793_v12  ;;  %v2797_v25 = vrot.slane %v2796_v14, 2  ;;  %v2612_v59 = vsel %vm2587_vm1, %v2561_v37, %v2562_v3  ;;  %v2660_v26 = vrot.slane %v1660_v23, 2  ;;  %1941 = vmatprep.mubr.bf16.mxu1 %v7159_v45  ;;  %2134 = vmatprep.mubr.bf16.mxu0 %v7159_v45 }
 0x265   : > { %v2760_v22 = vsel %vm2750_vm2, %v2722_v20, -inf  ;;  %v2626_v27 = vadd.f32 %v2612_v59, %v1457_v21  ;;  %v1469_v28 = vpop.f32.mrf.mxu1  ;;  %v5680_v30 = vpop.f32.mrf.mxu0 }
 0x266   : > { %v2798_v32 = vmax.f32 %v2796_v14, %v2797_v25  ;;  %v2801_v34 = vmax.f32 %v2721_v42, %v2760_v22  ;;  %v2708_v36 = vsel %vm2684_vm0, %v2659_v56, %v2660_v26  ;;  %v2563_v47 = vrot.slane %v1469_v28, 1 }
 0x267   : > { %v2723_v39 = vadd.f32 %v2709_v9, %v2626_v27  ;;  %v1471_v37 = vpop.f32.mrf.mxu1  ;;  %v1664_v33 = vpop.f32.mrf.mxu0 }
 0x268   : > { %v2799_v54 = vrot.slane %v2798_v32, 1  ;;  %v2802_v60 = vrot.slane %v2801_v34, 4  ;;  %v2661_v5 = vrot.slane %v1664_v33, 2  ;;  %v2611_v6 = vsel %vm2587_vm1, %v2562_v3, %v2563_v47 }
 0x269   : > { %v1473_v12 = vpop.f32.mrf.mxu1  ;;  %v5686_v21 = vpop.f32.mrf.mxu0  ;;  %v2627_v14 = vadd.f32 %v2611_v6, %v1461_v46 }
 0x26a   : > { %v2800_v20 = vmax.f32 %v2798_v32, %v2799_v54  ;;  %v2803_v23 = vmax.f32 %v2801_v34, %v2802_v60  ;;  %v2707_v42 = vsel %vm2684_vm0, %v2660_v26, %v2661_v5  ;;  %v2564_v56 = vrot.slane %v1473_v12, 1 }
 0x26b   : > { %v1477_v9 = vpop.f32.mrf.mxu1  ;;  %v1670_v25 = vpop.f32.mrf.mxu0  ;;  %1942 = vmatmul.mubr.bf16.gmra.mxu1 %v5537_v4  ;;  %2135 = vmatmul.mubr.bf16.gmra.mxu0 %v5537_v4  ;;  %v2724_v3 = vadd.f32 %v2708_v36, %v2627_v14  ;;  %v2919_v60 = vmax.f32 %v2903_v18, 0.0 }
 0x26c   : > { %v2904_v59 = vadd.f32 %v5663_v40, %v2800_v20  ;;  %v2804_v22 = vrot.slane %v2803_v23, 2  ;;  %v2662_v27 = vrot.slane %v1670_v25, 2  ;;  %1951 = vmatprep.mubr.bf16.mxu1 %v7159_v45  ;;  %2144 = vmatprep.mubr.bf16.mxu0 %v7159_v45  ;;  %v2610_v46 = vsel %vm2587_vm1, %v2563_v47, %v2564_v56 }
 0x26d   : > { %v1479_v26 = vpop.f32.mrf.mxu1  ;;  %v5697_v28 = vpop.f32.mrf.mxu0  ;;  %v2762_v33 = vsel %vm2750_vm2, %v2724_v3, -inf  ;;  %v2628_v54 = vadd.f32 %v2610_v46, %v1467_v16 }
 0x26e   : > { %v2920_v32 = vmax.f32 %v2904_v59, 0.0  ;;  %v2805_v34 = vmax.f32 %v2803_v23, %v2804_v22  ;;  %v2808_v36 = vmax.f32 %v2723_v39, %v2762_v33  ;;  %v2706_v6 = vsel %vm2684_vm0, %v2661_v5, %v2662_v27 }
 0x26f   : > { %v2565_v12 = vrot.slane %v1479_v26, 1  ;;  %v1481_v20 = vpop.f32.mrf.mxu1  ;;  %v1674_v14 = vpop.f32.mrf.mxu0  ;;  %v2725_v47 = vadd.f32 %v2707_v42, %v2628_v54  ;;  %v7182_v54 = vmov 0  }
 0x270   : > { %v3997_v25 = vrot.slane %v2920_v32, 7  ;;  %v2806_v0 = vrot.slane %v2805_v34, 1  ;;  %v2663_v57 = vrot.slane %v1674_v14, 2  ;;  %v2809_v45 = vrot.slane %v2808_v36, 4 }
 0x271   : > { %v2609_v23 = vsel %vm2587_vm1, %v2564_v56, %v2565_v12  ;;  %v1483_v59 = vpop.f32.mrf.mxu1  ;;  %v5705_v22 = vpop.f32.mrf.mxu0 }
 0x272   : > { %7181 = vst [vmem:[#allocation12_spill] sm:$0xff] %v5705_v22  ;;  %v3999_v16 = vsel %vm3998_vm3, %v3997_v25, %v2919_v60  ;;  %v2807_v18 = vmax.f32 %v2805_v34, %v2806_v0  ;;  %v2629_v39 = vadd.f32 %v2609_v23, %v1471_v37  ;;  %v2705_v5 = vsel %vm2684_vm0, %v2662_v27, %v2663_v57 }
 0x273   : > { %v2810_v3 = vmax.f32 %v2808_v36, %v2809_v45  ;;  %v2566_v46 = vrot.slane %v1483_v59, 1  ;;  %v1487_v26 = vpop.f32.mrf.mxu1  ;;  %v1680_v32 = vpop.f32.mrf.mxu0  ;;  %1952 = vmatmul.mubr.bf16.gmra.mxu1 %v5543_v7  ;;  %2145 = vmatmul.mubr.bf16.gmra.mxu0 %v5543_v7 }
 0x274   : > { %v2905_v42 = vadd.f32 %v5663_v40, %v2807_v18  ;;  %v2726_v56 = vadd.f32 %v2706_v6, %v2629_v39  ;;  %v2664_v33 = vrot.slane %v1680_v32, 2  ;;  %1961 = vmatprep.mubr.bf16.mxu1 %v7182_v54  ;;  %2154 = vmatprep.mubr.bf16.mxu0 %v7182_v54 }
 0x275   : > { %v2811_v0 = vrot.slane %v2810_v3, 2  ;;  %v2608_v37 = vsel %vm2587_vm1, %v2565_v12, %v2566_v46  ;;  %v1489_v45 = vpop.f32.mrf.mxu1  ;;  %v5717_v27 = vpop.f32.mrf.mxu0 }
 0x276   : > { %7183 = vst [vmem:[#allocation13_spill] sm:$0xff] %v5717_v27  ;;  %v2921_v34 = vmax.f32 %v2905_v42, 0.0  ;;  %v2764_v60 = vsel %vm2750_vm2, %v2726_v56, -inf  ;;  %v2630_v36 = vadd.f32 %v2608_v37, %v1477_v9  ;;  %v2704_v6 = vsel %vm2684_vm0, %v2663_v57, %v2664_v33 }
 0x277   : > { %v2812_v14 = vmax.f32 %v2810_v3, %v2811_v0  ;;  %v2815_v25 = vmax.f32 %v2725_v47, %v2764_v60  ;;  %v2567_v23 = vrot.slane %v1489_v45, 1  ;;  %v1491_v59 = vpop.f32.mrf.mxu1  ;;  %v1684_v18 = vpop.f32.mrf.mxu0 }
 0x278   : > { %v4000_v39 = vrot.slane %v2921_v34, 6  ;;  %v2727_v32 = vadd.f32 %v2705_v5, %v2630_v36  ;;  %v2665_v12 = vrot.slane %v1684_v18, 2 }
 0x279   : > { %v2813_v10 = vrot.slane %v2812_v14, 1  ;;  %v2816_v22 = vrot.slane %v2815_v25, 4  ;;  %v2607_v42 = vsel %vm2587_vm1, %v2566_v46, %v2567_v23  ;;  %v1493_v27 = vpop.f32.mrf.mxu1  ;;  %v5725_v56 = vpop.f32.mrf.mxu0 }
 0x27a   : > { %7184 = vst [vmem:[#allocation14_spill] sm:$0xff] %v5725_v56  ;;  %v4002_v9 = vsel %vm4001_vm4, %v4000_v39, %v3999_v16  ;;  %v2631_v57 = vadd.f32 %v2607_v42, %v1481_v20  ;;  %v2703_v47 = vsel %vm2684_vm0, %v2664_v33, %v2665_v12  ;;  %v2568_v3 = vrot.slane %v1493_v27, 1 }
 0x27b   : > { %v2814_v0 = vmax.f32 %v2812_v14, %v2813_v10  ;;  %v2817_v37 = vmax.f32 %v2815_v25, %v2816_v22  ;;  %v1497_v45 = vpop.f32.mrf.mxu1  ;;  %v1690_v5 = vpop.f32.mrf.mxu0  ;;  %1962 = vmatmul.mubr.bf16.gmra.mxu1 %v5549_v8  ;;  %2155 = vmatmul.mubr.bf16.gmra.mxu0 %v5549_v8 }
 0x27c   : > { %v2728_v34 = vadd.f32 %v2704_v6, %v2631_v57  ;;  %v2606_v46 = vsel %vm2587_vm1, %v2567_v23, %v2568_v3  ;;  %v2666_v60 = vrot.slane %v1690_v5, 2  ;;  %2197 = vmatprep.mubr.bf16.mxu1 %v7182_v54  ;;  %2390 = vmatprep.mubr.bf16.mxu0 %v7182_v54 }
 0x27d   : > { %v2906_v20 = vadd.f32 %v5663_v40, %v2814_v0  ;;  %v2818_v16 = vrot.slane %v2817_v37, 2  ;;  %v2632_v10 = vadd.f32 %v2606_v46, %v1487_v26  ;;  %v1499_v22 = vpop.f32.mrf.mxu1  ;;  %v5737_v33 = vpop.f32.mrf.mxu0 }
 0x27e   : > { %7185 = vst [vmem:[#allocation15_spill] sm:$0xff] %v5737_v33  ;;  %v2766_v27 = vsel %vm2750_vm2, %v2728_v34, -inf  ;;  %v2702_v36 = vsel %vm2684_vm0, %v2665_v12, %v2666_v60  ;;  %v2569_v6 = vrot.slane %v1499_v22, 1 }
 0x27f   : > { %v2922_v14 = vmax.f32 %v2906_v20, 0.0  ;;  %v2819_v25 = vmax.f32 %v2817_v37, %v2818_v16  ;;  %v2822_v23 = vmax.f32 %v2727_v32, %v2766_v27  ;;  %v2729_v18 = vadd.f32 %v2703_v47, %v2632_v10  ;;  %v1501_v39 = vpop.f32.mrf.mxu1  ;;  %v1694_v42 = vpop.f32.mrf.mxu0 }
 0x280   : > { %v2605_v57 = vsel %vm2587_vm1, %v2568_v3, %v2569_v6  ;;  %v2667_v26 = vrot.slane %v1694_v42, 2 }
 0x281   : > { %v4003_v0 = vrot.slane %v2922_v14, 5  ;;  %v2820_v5 = vrot.slane %v2819_v25, 1  ;;  %v2823_v46 = vrot.slane %v2822_v23, 4  ;;  %v2633_v33 = vadd.f32 %v2605_v57, %v1491_v59  ;;  %v1503_v34 = vpop.f32.mrf.mxu1  ;;  %v5745_v56 = vpop.f32.mrf.mxu0 }
 0x282   : > { %v2701_v12 = vsel %vm2684_vm0, %v2666_v60, %v2667_v26  ;;  %v2570_v37 = vrot.slane %v1503_v34, 1 }
 0x283   : > { %v2821_v32 = vmax.f32 %v2819_v25, %v2820_v5  ;;  %v2824_v47 = vmax.f32 %v2822_v23, %v2823_v46  ;;  %v2730_v20 = vadd.f32 %v2702_v36, %v2633_v33  ;;  %v1507_v16 = vpop.f32.mrf.mxu1  ;;  %v1700_v10 = vpop.f32.mrf.mxu0  ;;  %2198 = vmatmul.mubr.bf16.vlgmr.msra.gmra.mxu1 %v5459_v53  ;;  %2391 = vmatmul.mubr.bf16.vlgmr.msra.gmra.mxu0 %v5459_v53 }
 0x284   : > { %v2604_v3 = vsel %vm2587_vm1, %v2569_v6, %v2570_v37  ;;  %v2668_v59 = vrot.slane %v1700_v10, 2  ;;  %2207 = vmatprep.mubr.bf16.mxu1 %v7182_v54  ;;  %2400 = vmatprep.mubr.bf16.mxu0 %v7182_v54  ;;  %v4005_v60 = vsel %vm4004_vm5, %v4003_v0, %v4002_v9 }
 0x285   : > { %v2907_v22 = vadd.f32 %v5663_v40, %v2821_v32  ;;  %v2825_v27 = vrot.slane %v2824_v47, 2  ;;  %v2768_v33 = vsel %vm2750_vm2, %v2730_v20, -inf  ;;  %v2634_v36 = vadd.f32 %v2604_v3, %v1497_v45  ;;  %v1509_v14 = vpop.f32.mrf.mxu1  ;;  %v5759_v25 = vpop.f32.mrf.mxu0 }
 0x286   : > { %v2829_v53 = vmax.f32 %v2729_v18, %v2768_v33  ;;  %v2700_v6 = vsel %vm2684_vm0, %v2667_v26, %v2668_v59  ;;  %v2571_v23 = vrot.slane %v1509_v14, 1 }
 0x287   : > { %v2923_v42 = vmax.f32 %v2907_v22, 0.0  ;;  %v2826_v57 = vmax.f32 %v2824_v47, %v2825_v27  ;;  %v2731_v5 = vadd.f32 %v2701_v12, %v2634_v36  ;;  %v1511_v46 = vpop.f32.mrf.mxu1  ;;  %v1704_v9 = vpop.f32.mrf.mxu0 }
 0x288   : > { %v2830_v0 = vrot.slane %v2829_v53, 4  ;;  %v2603_v34 = vsel %vm2587_vm1, %v2570_v37, %v2571_v23  ;;  %v2669_v32 = vrot.slane %v1704_v9, 2 }
 0x289   : > { %v4006_v45 = vrot.slane %v2923_v42, 4  ;;  %v2827_v20 = vrot.slane %v2826_v57, 1  ;;  %v2635_v10 = vadd.f32 %v2603_v34, %v1501_v39  ;;  %v1513_v3 = vpop.f32.mrf.mxu1  ;;  %v5765_v18 = vpop.f32.mrf.mxu0 }
 0x28a   : > { %v2831_v33 = vmax.f32 %v2829_v53, %v2830_v0  ;;  %v2699_v26 = vsel %vm2684_vm0, %v2668_v59, %v2669_v32  ;;  %v2572_v47 = vrot.slane %v1513_v3, 1 }
 0x28b   : > { %v2828_v12 = vmax.f32 %v2826_v57, %v2827_v20  ;;  %v2732_v22 = vadd.f32 %v2700_v6, %v2635_v10  ;;  %v1517_v27 = vpop.f32.mrf.mxu1  ;;  %v1710_v36 = vpop.f32.mrf.mxu0  ;;  %2208 = vmatmul.mubr.bf16.gmra.mxu1 %v5465_v62  ;;  %2401 = vmatmul.mubr.bf16.gmra.mxu0 %v5465_v62  ;;  %v4008_v37 = vsel %vm4007_vm6, %v4006_v45, %v4005_v60 }
 0x28c   : > { %v2832_v14 = vrot.slane %v2831_v33, 2  ;;  %v2602_v39 = vsel %vm2587_vm1, %v2571_v23, %v2572_v47  ;;  %v2670_v42 = vrot.slane %v1710_v36, 2  ;;  %2217 = vmatprep.mubr.bf16.mxu1 %v7182_v54  ;;  %2410 = vmatprep.mubr.bf16.mxu0 %v7182_v54 }
 0x28d   : > { %v2908_v59 = vadd.f32 %v5663_v40, %v2828_v12  ;;  %v2770_v53 = vsel %vm2750_vm2, %v2732_v22, -inf  ;;  %v2636_v6 = vadd.f32 %v2602_v39, %v1507_v16  ;;  %v1519_v57 = vpop.f32.mrf.mxu1  ;;  %v5779_v9 = vpop.f32.mrf.mxu0 }
 0x28e   : > { %7186 = vst [vmem:[#allocation16_spill] sm:$0xff] %v5779_v9  ;;  %v2833_v62 = vmax.f32 %v2831_v33, %v2832_v14  ;;  %v2836_v60 = vmax.f32 %v2731_v5, %v2770_v53  ;;  %v2698_v0 = vsel %vm2684_vm0, %v2669_v32, %v2670_v42  ;;  %v2573_v23 = vrot.slane %v1519_v57, 1 }
 0x28f   : > { %v2924_v34 = vmax.f32 %v2908_v59, 0.0  ;;  %v2733_v45 = vadd.f32 %v2699_v26, %v2636_v6  ;;  %v1521_v20 = vpop.f32.mrf.mxu1  ;;  %v1714_v10 = vpop.f32.mrf.mxu0 }
 0x290   : > { %v2834_v3 = vrot.slane %v2833_v62, 1  ;;  %v2837_v12 = vrot.slane %v2836_v60, 4  ;;  %v2601_v22 = vsel %vm2587_vm1, %v2572_v47, %v2573_v23  ;;  %v2671_v16 = vrot.slane %v1714_v10, 2 }
 0x291   : > { %v4009_v36 = vrot.slane %v2924_v34, 3  ;;  %v2637_v39 = vadd.f32 %v2601_v22, %v1511_v46  ;;  %v1523_v9 = vpop.f32.mrf.mxu1  ;;  %v5785_v33 = vpop.f32.mrf.mxu0 }
 0x292   : > { %7187 = vst [vmem:[#allocation17_spill] sm:$0xff] %v5785_v33  ;;  %v2835_v5 = vmax.f32 %v2833_v62, %v2834_v3  ;;  %v2838_v14 = vmax.f32 %v2836_v60, %v2837_v12  ;;  %v2697_v32 = vsel %vm2684_vm0, %v2670_v42, %v2671_v16  ;;  %v2574_v26 = vrot.slane %v1523_v9, 1 }
 0x293   : > { %v2734_v59 = vadd.f32 %v2698_v0, %v2637_v39  ;;  %v1527_v53 = vpop.f32.mrf.mxu1  ;;  %v1720_v6 = vpop.f32.mrf.mxu0  ;;  %2218 = vmatmul.mubr.bf16.gmra.mxu1 %v5471_v13  ;;  %2411 = vmatmul.mubr.bf16.gmra.mxu0 %v5471_v13  ;;  %v4011_v47 = vsel %vm4010_vm7, %v4009_v36, %v4008_v37 }
 0x294   : > { %v2909_v46 = vadd.f32 %v5663_v40, %v2835_v5  ;;  %v2839_v57 = vrot.slane %v2838_v14, 2  ;;  %v2600_v62 = vsel %vm2587_vm1, %v2573_v23, %v2574_v26  ;;  %v2672_v60 = vrot.slane %v1720_v6, 2  ;;  %2227 = vmatprep.mubr.bf16.mxu1 %v7182_v54  ;;  %2420 = vmatprep.mubr.bf16.mxu0 %v7182_v54 }
 0x295   : > { %v2772_v42 = vsel %vm2750_vm2, %v2734_v59, -inf  ;;  %v2638_v9 = vadd.f32 %v2600_v62, %v1517_v27  ;;  %v1529_v0 = vpop.f32.mrf.mxu1  ;;  %v5799_v34 = vpop.f32.mrf.mxu0 }
 0x296   : > { %v2925_v13 = vmax.f32 %v2909_v46, 0.0  ;;  %v2840_v37 = vmax.f32 %v2838_v14, %v2839_v57  ;;  %v2843_v10 = vmax.f32 %v2733_v45, %v2772_v42  ;;  %v2696_v3 = vsel %vm2684_vm0, %v2671_v16, %v2672_v60 }
 0x297   : > { %v2735_v12 = vadd.f32 %v2697_v32, %v2638_v9  ;;  %v2575_v23 = vrot.slane %v1529_v0, 1  ;;  %v1531_v22 = vpop.f32.mrf.mxu1  ;;  %v1724_v36 = vpop.f32.mrf.mxu0 }
 0x298   : > { %v4012_v39 = vrot.slane %v2925_v13, 2  ;;  %v2841_v5 = vrot.slane %v2840_v37, 1  ;;  %v2844_v6 = vrot.slane %v2843_v10, 4  ;;  %v2673_v33 = vrot.slane %v1724_v36, 2 }
 0x299   : > { %v2599_v27 = vsel %vm2587_vm1, %v2574_v26, %v2575_v23  ;;  %v1533_v59 = vpop.f32.mrf.mxu1  ;;  %v5805_v62 = vpop.f32.mrf.mxu0 }
 0x29a   : > { %7188 = vst [vmem:[#allocation18_spill] sm:$0xff] %v5805_v62  ;;  %v2842_v14 = vmax.f32 %v2840_v37, %v2841_v5  ;;  %v2845_v45 = vmax.f32 %v2843_v10, %v2844_v6  ;;  %v2639_v46 = vadd.f32 %v2599_v27, %v1521_v20  ;;  %v2695_v16 = vsel %vm2684_vm0, %v2672_v60, %v2673_v33 }
 0x29b   : > { %v2576_v32 = vrot.slane %v1533_v59, 1  ;;  %v1537_v57 = vpop.f32.mrf.mxu1  ;;  %v1730_v42 = vpop.f32.mrf.mxu0  ;;  %2228 = vmatmul.mubr.bf16.gmra.mxu1 %v5477_v24  ;;  %2421 = vmatmul.mubr.bf16.gmra.mxu0 %v5477_v24  ;;  %v4014_v9 = vsel %vm4013_vm8, %v4012_v39, %v4011_v47 }
 0x29c   : > { %v2910_v26 = vadd.f32 %v5663_v40, %v2842_v14  ;;  %v2846_v0 = vrot.slane %v2845_v45, 2  ;;  %v2736_v13 = vadd.f32 %v2696_v3, %v2639_v46  ;;  %v2674_v36 = vrot.slane %v1730_v42, 2  ;;  %2237 = vmatprep.mubr.bf16.mxu1 %v7182_v54  ;;  %2430 = vmatprep.mubr.bf16.mxu0 %v7182_v54 }
 0x29d   : > { %v2598_v20 = vsel %vm2587_vm1, %v2575_v23, %v2576_v32  ;;  %v1539_v60 = vpop.f32.mrf.mxu1  ;;  %v5817_v37 = vpop.f32.mrf.mxu0 }
 0x29e   : > { %v2926_v10 = vmax.f32 %v2910_v26, 0.0  ;;  %v2847_v5 = vmax.f32 %v2845_v45, %v2846_v0  ;;  %v2774_v24 = vsel %vm2750_vm2, %v2736_v13, -inf  ;;  %v2640_v47 = vadd.f32 %v2598_v20, %v1527_v53 }
 0x29f   : > { %v2850_v39 = vmax.f32 %v2735_v12, %v2774_v24  ;;  %v2694_v3 = vsel %vm2684_vm0, %v2673_v33, %v2674_v36  ;;  %v2577_v6 = vrot.slane %v1539_v60, 1  ;;  %v1541_v27 = vpop.f32.mrf.mxu1  ;;  %v1734_v59 = vpop.f32.mrf.mxu0 }
 0x2a0   : > { %v4015_v14 = vrot.slane %v2926_v10, 1  ;;  %v2848_v46 = vrot.slane %v2847_v5, 1  ;;  %v2737_v23 = vadd.f32 %v2695_v16, %v2640_v47  ;;  %v2675_v42 = vrot.slane %v1734_v59, 2 }
 0x2a1   : > { %v2851_v62 = vrot.slane %v2850_v39, 4  ;;  %v2597_v45 = vsel %vm2587_vm1, %v2576_v32, %v2577_v6  ;;  %v1543_v26 = vpop.f32.mrf.mxu1  ;;  %v5825_v0 = vpop.f32.mrf.mxu0 }
 0x2a2   : > { %v2849_v53 = vmax.f32 %v2847_v5, %v2848_v46  ;;  %v2641_v12 = vadd.f32 %v2597_v45, %v1531_v22  ;;  %v2693_v33 = vsel %vm2684_vm0, %v2674_v36, %v2675_v42  ;;  %v2578_v13 = vrot.slane %v1543_v26, 1 }
 0x2a3   : > { %v2852_v20 = vmax.f32 %v2850_v39, %v2851_v62  ;;  %v1547_v60 = vpop.f32.mrf.mxu1  ;;  %v1740_v24 = vpop.f32.mrf.mxu0  ;;  %2238 = vmatmul.mubr.bf16.gmra.mxu1 %v5483_v35  ;;  %2431 = vmatmul.mubr.bf16.gmra.mxu0 %v5483_v35  ;;  %v5832_v16 = vsel %vm4016_vm9, %v4015_v14, %v4014_v9 }
 0x2a4   : > { %v5835_v32 = vadd.f32 %v5663_v40, %v2849_v53  ;;  %v2738_v10 = vadd.f32 %v2694_v3, %v2641_v12  ;;  %v2596_v22 = vsel %vm2587_vm1, %v2577_v6, %v2578_v13  ;;  %v2676_v5 = vrot.slane %v1740_v24, 2  ;;  %2247 = vmatprep.mubr.bf16.mxu1 %v7182_v54  ;;  %2440 = vmatprep.mubr.bf16.mxu0 %v7182_v54 }
 0x2a5   : > { %v2853_v62 = vrot.slane %v2852_v20, 2  ;;  %v2642_v36 = vadd.f32 %v2596_v22, %v1537_v57  ;;  %v1549_v47 = vpop.f32.mrf.mxu1  ;;  %v5841_v39 = vpop.f32.mrf.mxu0 }
 0x2a6   : > { %7189 = vst [vmem:[#allocation19_spill] sm:$0xff] %v5841_v39  ;;  %v2776_v35 = vsel %vm2750_vm2, %v2738_v10, -inf  ;;  %v2692_v9 = vsel %vm2684_vm0, %v2675_v42, %v2676_v5  ;;  %v2579_v3 = vrot.slane %v1549_v47, 1 }
 0x2a7   : > { %v2854_v59 = vmax.f32 %v2852_v20, %v2853_v62  ;;  %v2857_v14 = vmax.f32 %v2737_v23, %v2776_v35  ;;  %v2739_v6 = vadd.f32 %v2693_v33, %v2642_v36  ;;  %v1551_v46 = vpop.f32.mrf.mxu1  ;;  %v1744_v45 = vpop.f32.mrf.mxu0 }
 0x2a8   : > { %v2595_v26 = vsel %vm2587_vm1, %v2578_v13, %v2579_v3  ;;  %v2677_v53 = vrot.slane %v1744_v45, 2 }
 0x2a9   : > { %v2855_v57 = vrot.slane %v2854_v59, 1  ;;  %v2858_v12 = vrot.slane %v2857_v14, 4  ;;  %v2643_v24 = vadd.f32 %v2595_v26, %v1541_v27  ;;  %v1553_v22 = vpop.f32.mrf.mxu1  ;;  %v5849_v39 = vpop.f32.mrf.mxu0 }
 0x2aa   : > { %7190 = vst [vmem:[#allocation20_spill] sm:$0xff] %v5849_v39  ;;  %v2691_v10 = vsel %vm2684_vm0, %v2676_v5, %v2677_v53  ;;  %v2580_v42 = vrot.slane %v1553_v22, 1 }
 0x2ab   : > { %v2856_v47 = vmax.f32 %v2854_v59, %v2855_v57  ;;  %v2859_v20 = vmax.f32 %v2857_v14, %v2858_v12  ;;  %v2740_v23 = vadd.f32 %v2692_v9, %v2643_v24  ;;  %v1557_v33 = vpop.f32.mrf.mxu1  ;;  %v1750_v62 = vpop.f32.mrf.mxu0  ;;  %2248 = vmatmul.mubr.bf16.gmra.mxu1 %v5489_v38  ;;  %2441 = vmatmul.mubr.bf16.gmra.mxu0 %v5489_v38 }
 0x2ac   : > { %v2594_v13 = vsel %vm2587_vm1, %v2579_v3, %v2580_v42  ;;  %v2678_v27 = vrot.slane %v1750_v62, 2  ;;  %2257 = vmatprep.mubr.bf16.mxu1 %v7182_v54  ;;  %2450 = vmatprep.mubr.bf16.mxu0 %v7182_v54 }
 0x2ad   : > { %v2912_v5 = vadd.f32 %v5663_v40, %v2856_v47  ;;  %v2860_v36 = vrot.slane %v2859_v20, 2  ;;  %v2778_v35 = vsel %vm2750_vm2, %v2740_v23, -inf  ;;  %v2644_v9 = vadd.f32 %v2594_v13, %v1547_v60  ;;  %v1559_v59 = vpop.f32.mrf.mxu1  ;;  %v5862_v14 = vpop.f32.mrf.mxu0 }
 0x2ae   : > { %7191 = vst [vmem:[#allocation21_spill] sm:$0xff] %v5862_v14  ;;  %v2864_v45 = vmax.f32 %v2739_v6, %v2778_v35  ;;  %v2690_v38 = vsel %vm2684_vm0, %v2677_v53, %v2678_v27  ;;  %v2581_v3 = vrot.slane %v1559_v59, 1  ;;  %v2927_v60 = vmax.f32 %v5835_v32, 0.0 }
 0x2af   : > { %v2928_v26 = vmax.f32 %v2912_v5, 0.0  ;;  %v2861_v57 = vmax.f32 %v2859_v20, %v2860_v36  ;;  %v2741_v12 = vadd.f32 %v2691_v10, %v2644_v9  ;;  %v1561_v24 = vpop.f32.mrf.mxu1  ;;  %v1754_v22 = vpop.f32.mrf.mxu0 }
 0x2b0   : > { %v2865_v62 = vrot.slane %v2864_v45, 4  ;;  %v2593_v47 = vsel %vm2587_vm1, %v2580_v42, %v2581_v3  ;;  %v2679_v39 = vrot.slane %v1754_v22, 2 }
 0x2b1   : > { %v4018_v23 = vrot.slane %v2928_v26, 7  ;;  %v2862_v13 = vrot.slane %v2861_v57, 1  ;;  %v2645_v14 = vadd.f32 %v2593_v47, %v1551_v46  ;;  %v1563_v6 = vpop.f32.mrf.mxu1  ;;  %v5869_v35 = vpop.f32.mrf.mxu0 }
 0x2b2   : > { %7192 = vst [vmem:[#allocation22_spill] sm:$0xff] %v5869_v35  ;;  %v2866_v53 = vmax.f32 %v2864_v45, %v2865_v62  ;;  %v2689_v20 = vsel %vm2684_vm0, %v2678_v27, %v2679_v39  ;;  %v2582_v10 = vrot.slane %v1563_v6, 1 }
 0x2b3   : > { %v4019_v5 = vsel %vm3998_vm3, %v4018_v23, %v2927_v60  ;;  %v2863_v36 = vmax.f32 %v2861_v57, %v2862_v13  ;;  %v2742_v9 = vadd.f32 %v2690_v38, %v2645_v14  ;;  %v1567_v59 = vpop.f32.mrf.mxu1  ;;  %v1760_v42 = vpop.f32.mrf.mxu0  ;;  %2258 = vmatmul.mubr.bf16.gmra.mxu1 %v5495_v41  ;;  %2451 = vmatmul.mubr.bf16.gmra.mxu0 %v5495_v41 }
 0x2b4   : > { %v2867_v32 = vrot.slane %v2866_v53, 2  ;;  %v2592_v46 = vsel %vm2587_vm1, %v2581_v3, %v2582_v10  ;;  %v2680_v26 = vrot.slane %v1760_v42, 2  ;;  %2267 = vmatprep.mubr.bf16.mxu1 %v7182_v54  ;;  %2460 = vmatprep.mubr.bf16.mxu0 %v7182_v54 }
 0x2b5   : > { %v2913_v27 = vadd.f32 %v5663_v40, %v2863_v36  ;;  %v2780_v14 = vsel %vm2750_vm2, %v2742_v9, -inf  ;;  %v2646_v45 = vadd.f32 %v2592_v46, %v1557_v33  ;;  %v1569_v38 = vpop.f32.mrf.mxu1  ;;  %v5883_v57 = vpop.f32.mrf.mxu0 }
 0x2b6   : > { %7193 = vst [vmem:[#allocation23_spill] sm:$0xff] %v5883_v57  ;;  %v2868_v22 = vmax.f32 %v2866_v53, %v2867_v32  ;;  %v2871_v41 = vmax.f32 %v2741_v12, %v2780_v14  ;;  %v2688_v62 = vsel %vm2684_vm0, %v2679_v39, %v2680_v26  ;;  %v2583_v3 = vrot.slane %v1569_v38, 1 }
 0x2b7   : > { %v2929_v47 = vmax.f32 %v2913_v27, 0.0  ;;  %v2743_v60 = vadd.f32 %v2689_v20, %v2646_v45  ;;  %v1571_v23 = vpop.f32.mrf.mxu1  ;;  %v1764_v13 = vpop.f32.mrf.mxu0 }
 0x2b8   : > { %v2869_v6 = vrot.slane %v2868_v22, 1  ;;  %v2872_v42 = vrot.slane %v2871_v41, 4  ;;  %v2591_v36 = vsel %vm2587_vm1, %v2582_v10, %v2583_v3  ;;  %v2681_v9 = vrot.slane %v1764_v13, 2 }
 0x2b9   : > { %v4020_v33 = vrot.slane %v2929_v47, 6  ;;  %v2647_v46 = vadd.f32 %v2591_v36, %v1561_v24  ;;  %v1573_v35 = vpop.f32.mrf.mxu1  ;;  %v5889_v57 = vpop.f32.mrf.mxu0 }
 0x2ba   : > { %v2870_v12 = vmax.f32 %v2868_v22, %v2869_v6  ;;  %v2873_v53 = vmax.f32 %v2871_v41, %v2872_v42  ;;  %v2687_v39 = vsel %vm2684_vm0, %v2680_v26, %v2681_v9  ;;  %v2584_v32 = vrot.slane %v1573_v35, 1 }
 0x2bb   : > { %v4021_v20 = vsel %vm4001_vm4, %v4020_v33, %v4019_v5  ;;  %v2744_v27 = vadd.f32 %v2688_v62, %v2647_v46  ;;  %v1577_v14 = vpop.f32.mrf.mxu1  ;;  %v1770_v45 = vpop.f32.mrf.mxu0  ;;  %2268 = vmatmul.mubr.bf16.gmra.mxu1 %v5501_v44  ;;  %2461 = vmatmul.mubr.bf16.gmra.mxu0 %v5501_v44 }
 0x2bc   : > { %v2914_v24 = vadd.f32 %v5663_v40, %v2870_v12  ;;  %v2874_v10 = vrot.slane %v2873_v53, 2  ;;  %v2590_v38 = vsel %vm2587_vm1, %v2583_v3, %v2584_v32  ;;  %v2682_v22 = vrot.slane %v1770_v45, 2  ;;  %2277 = vmatprep.mubr.bf16.mxu1 %v7182_v54  ;;  %2470 = vmatprep.mubr.bf16.mxu0 %v7182_v54 }
 0x2bd   : > { %v2782_v35 = vsel %vm2750_vm2, %v2744_v27, -inf  ;;  %v2648_v5 = vadd.f32 %v2590_v38, %v1567_v59  ;;  %v1579_v26 = vpop.f32.mrf.mxu1  ;;  %v5903_v41 = vpop.f32.mrf.mxu0 }
 0x2be   : > { %v2930_v62 = vmax.f32 %v2914_v24, 0.0  ;;  %v2875_v44 = vmax.f32 %v2873_v53, %v2874_v10  ;;  %v2878_v47 = vmax.f32 %v2743_v60, %v2782_v35  ;;  %v2686_v13 = vsel %vm2684_vm0, %v2681_v9, %v2682_v22 }
 0x2bf   : > { %v2745_v6 = vadd.f32 %v2687_v39, %v2648_v5  ;;  %v2585_v3 = vrot.slane %v1579_v26, 1  ;;  %v1581_v42 = vpop.f32.mrf.mxu1  ;;  %v1774_v36 = vpop.f32.mrf.mxu0  ;;  %v5065_v39 = vld [vmem:[#allocation5 + $0x78] sm:$0xff]   ;;  %v7194_v10 = vrot.slane %v5587_v49, 2 }
 0x2c0   : > { %v4022_v33 = vrot.slane %v2930_v62, 5  ;;  %v2876_v46 = vrot.slane %v2875_v44, 1  ;;  %v2879_v12 = vrot.slane %v2878_v47, 4  ;;  %v2683_v45 = vrot.slane %v1774_v36, 2  ;;  %4744 = vmatprep.subr.bf16.mxu1 %v5065_v39 }
 0x2c1   : > { %v2589_v59 = vsel %vm2587_vm1, %v2584_v32, %v2585_v3  ;;  %v1583_v27 = vpop.f32.mrf.mxu1  ;;  %v5909_v38 = vpop.f32.mrf.mxu0  ;;  %v5066_v32 = vld [vmem:[#allocation5 + $0x38] sm:$0xff]   ;;  %v7195_v36 = vrot.slane %v5593_v50, 1 }
 0x2c2   : > { %v2877_v24 = vmax.f32 %v2875_v44, %v2876_v46  ;;  %v2880_v53 = vmax.f32 %v2878_v47, %v2879_v12  ;;  %v2649_v60 = vadd.f32 %v2589_v59, %v1571_v23  ;;  %v2685_v9 = vsel %vm2684_vm0, %v2682_v22, %v2683_v45  ;;  %4745 = vmatpush3.bf16.msra.mxu1 %v5066_v32  ;;  %v5067_v59 = vld [vmem:[#allocation5 + $0x70] sm:$0xff]  }
 0x2c3   : > { %v2716_v35 = vsel %vm2684_vm0, %v2683_v45, %v7194_v10  ;;  %v2586_v5 = vrot.slane %v1583_v27, 1  ;;  %v5917_v26 = vpop.f32.mrf.mxu1  ;;  %v5919_v62 = vpop.f32.mrf.mxu0  ;;  %2278 = vmatmul.mubr.bf16.gmra.mxu1 %v5507_v48  ;;  %2471 = vmatmul.mubr.bf16.gmra.mxu0 %v5507_v48  ;;  %v4023_v23 = vsel %vm4004_vm5, %v4022_v33, %v4021_v20 }
 0x2c4   : > { %v2915_v22 = vadd.f32 %v5663_v40, %v2877_v24  ;;  %v2881_v44 = vrot.slane %v2880_v53, 2  ;;  %v2746_v47 = vadd.f32 %v2686_v13, %v2649_v60  ;;  %2287 = vmatprep.mubr.bf16.mxu1 %v7182_v54  ;;  %2480 = vmatprep.mubr.bf16.mxu0 %v7182_v54  ;;  %v7164_v50 = vrot.slane %v5917_v26, 1 }
 0x2c5   : > { %v2588_v49 = vsel %vm2587_vm1, %v2585_v3, %v2586_v5  ;;  %v2619_v48 = vsel %vm2587_vm1, %v2586_v5, %v7195_v36  ;;  %v5934_v46 = vpop.f32.mrf.mxu1  ;;  %v5936_v20 = vpop.f32.mrf.mxu0  ;;  %v7163_v24 = vrot.slane %v5919_v62, 3  ;;  %v5068_v5 = vld [vmem:[#allocation5 + $0x30] sm:$0xff]   ;;  %4746 = vmatprep.subr.bf16.mxu1 %v5067_v59 }
 0x2c6   : > { %7196 = vst [vmem:[#allocation24_spill] sm:$0xff] %v5936_v20  ;;  %v2931_v13 = vmax.f32 %v2915_v22, 0.0  ;;  %v2882_v33 = vmax.f32 %v2880_v53, %v2881_v44  ;;  %v2784_v12 = vsel %vm2750_vm2, %v2746_v47, -inf  ;;  %v2650_v45 = vadd.f32 %v2588_v49, %v1577_v14  ;;  %4747 = vmatpush3.bf16.msra.mxu1 %v5068_v5 }
 0x2c7   : > { %v2885_v27 = vmax.f32 %v2745_v6, %v2784_v12  ;;  %v2651_v3 = vadd.f32 %v2619_v48, %v1581_v42  ;;  %v1817_v60 = vpop.f32.mrf.mxu1  ;;  %v2010_v10 = vpop.f32.mrf.mxu0  ;;  %v7162_v14 = vrot.slane %v5934_v46, 2 }
 0x2c8   : > { %v4024_v36 = vrot.slane %v2931_v13, 4  ;;  %v2883_v20 = vrot.slane %v2882_v33, 1  ;;  %v2747_v39 = vadd.f32 %v2685_v9, %v2650_v45  ;;  %v2936_v22 = vrot.slane %v1817_v60, 1  ;;  %v5069_v13 = vld [vmem:[#allocation5 + $0x68] sm:$0xff]  }
 0x2c9   : > { %v2886_v53 = vrot.slane %v2885_v27, 4  ;;  %v2748_v44 = vadd.f32 %v2716_v35, %v2651_v3  ;;  %v3128_v32 = vrot.slane %v2010_v10, 3  ;;  %v1819_v47 = vpop.f32.mrf.mxu1  ;;  %v5943_v6 = vpop.f32.mrf.mxu0  ;;  %v5070_v3 = vld [vmem:[#allocation5 + $0x28] sm:$0xff]   ;;  %4748 = vmatprep.subr.bf16.mxu1 %v5069_v13 }
 0x2ca   : > { %v2884_v42 = vmax.f32 %v2882_v33, %v2883_v20  ;;  %v2997_v49 = vsel %vm2587_vm1, %v7164_v50, %v2936_v22  ;;  %v3032_v48 = vrot.slane %v1819_v47, 2  ;;  %v4025_v9 = vsel %vm4007_vm6, %v4024_v36, %v4023_v23  ;;  %4749 = vmatpush3.bf16.msra.mxu1 %v5070_v3 }
 0x2cb   : > { %v2887_v12 = vmax.f32 %v2885_v27, %v2886_v53  ;;  %v2786_v35 = vsel %vm2750_vm2, %v2748_v44, -inf  ;;  %v2999_v45 = vadd.f32 %v2997_v49, %v5595_v52  ;;  %v3190_v20 = vsel %vm3159_vm10, %v7163_v24, %v3128_v32  ;;  %v1823_v33 = vpop.f32.mrf.mxu1  ;;  %v2016_v59 = vpop.f32.mrf.mxu0  ;;  %2288 = vmatmul.mubr.bf16.gmra.mxu1 %v5513_v51  ;;  %2481 = vmatmul.mubr.bf16.gmra.mxu0 %v5513_v51  ;;  %v5071_v49 = vld [vmem:[#allocation5 + $0x60] sm:$0xff]  }
 0x2cc   : > { %v2916_v23 = vadd.f32 %v5663_v40, %v2884_v42  ;;  %v2892_v27 = vmax.f32 %v2747_v39, %v2786_v35  ;;  %v3093_v52 = vsel %vm2684_vm0, %v7162_v14, %v3032_v48  ;;  %v2937_v60 = vrot.slane %v1823_v33, 1  ;;  %2297 = vmatprep.mubr.bf16.mxu1 %v7182_v54  ;;  %2490 = vmatprep.mubr.bf16.mxu0 %v7182_v54  ;;  %v5072_v24 = vld [vmem:[#allocation5 + $0x20] sm:$0xff]  }
 0x2cd   : > { %v2888_v10 = vrot.slane %v2887_v12, 2  ;;  %v3095_v5 = vadd.f32 %v3093_v52, %v2999_v45  ;;  %v3129_v36 = vrot.slane %v2016_v59, 3  ;;  %v1825_v53 = vpop.f32.mrf.mxu1  ;;  %v5966_v44 = vpop.f32.mrf.mxu0  ;;  %4750 = vmatprep.subr.bf16.mxu1 %v5071_v49 }
 0x2ce   : > { %7197 = vst [vmem:[#allocation25_spill] sm:$0xff] %v5966_v44  ;;  %v2932_v51 = vmax.f32 %v2916_v23, 0.0  ;;  %v2893_v47 = vrot.slane %v2892_v27, 4  ;;  %v2996_v39 = vsel %vm2587_vm1, %v2936_v22, %v2937_v60  ;;  %v3033_v42 = vrot.slane %v1825_v53, 2  ;;  %4751 = vmatpush3.bf16.msra.mxu1 %v5072_v24 }
 0x2cf   : > { %v2889_v35 = vmax.f32 %v2887_v12, %v2888_v10  ;;  %v3192_v33 = vadd.f32 %v3190_v20, %v3095_v5  ;;  %v3000_v14 = vadd.f32 %v2996_v39, %v5600_v63  ;;  %v3189_v45 = vsel %vm3159_vm10, %v3128_v32, %v3129_v36  ;;  %v1827_v59 = vpop.f32.mrf.mxu1  ;;  %v2020_v52 = vpop.f32.mrf.mxu0 }
 0x2d0   : > { %v4026_v50 = vrot.slane %v2932_v51, 3  ;;  %v2894_v13 = vmax.f32 %v2892_v27, %v2893_v47  ;;  %v3092_v23 = vsel %vm2684_vm0, %v3032_v48, %v3033_v42  ;;  %v2938_v44 = vrot.slane %v1827_v59, 1  ;;  %v5073_v27 = vld [vmem:[#allocation5 + $0x58] sm:$0xff]  }
 0x2d1   : > { %v2890_v22 = vrot.slane %v2889_v35, 1  ;;  %v3096_v3 = vadd.f32 %v3092_v23, %v3000_v14  ;;  %v3130_v12 = vrot.slane %v2020_v52, 3  ;;  %v1829_v20 = vpop.f32.mrf.mxu1  ;;  %v5976_v63 = vpop.f32.mrf.mxu0  ;;  %v5074_v59 = vld [vmem:[#allocation5 + $0x18] sm:$0xff]   ;;  %4752 = vmatprep.subr.bf16.mxu1 %v5073_v27 }
 0x2d2   : > { %v2895_v10 = vrot.slane %v2894_v13, 2  ;;  %v2995_v32 = vsel %vm2587_vm1, %v2937_v60, %v2938_v44  ;;  %v3034_v5 = vrot.slane %v1829_v20, 2  ;;  %v4027_v53 = vsel %vm4010_vm7, %v4026_v50, %v4025_v9  ;;  %4753 = vmatpush3.bf16.msra.mxu1 %v5074_v59 }
 0x2d3   : > { %v2891_v48 = vmax.f32 %v2889_v35, %v2890_v22  ;;  %v3193_v51 = vadd.f32 %v3189_v45, %v3096_v3  ;;  %v3001_v47 = vadd.f32 %v2995_v32, %v5615_v17  ;;  %v3188_v14 = vsel %vm3159_vm10, %v3129_v36, %v3130_v12  ;;  %v1833_v39 = vpop.f32.mrf.mxu1  ;;  %v2026_v49 = vpop.f32.mrf.mxu0  ;;  %2298 = vmatmul.mubr.bf16.gmra.mxu1 %v5519_v55  ;;  %v5075_v22 = vld [vmem:[#allocation5 + $0x50] sm:$0xff]  }
 0x2d4   : > { %v2896_v52 = vmax.f32 %v2894_v13, %v2895_v10  ;;  %v3091_v60 = vsel %vm2684_vm0, %v3033_v42, %v3034_v5  ;;  %v2939_v24 = vrot.slane %v1833_v39, 1  ;;  %v3131_v23 = vrot.slane %v2026_v49, 3  ;;  %2491 = vmatmul.mubr.bf16.gmra.mxu0 %v5519_v55  ;;  %2307 = vmatprep.mubr.bf16.mxu1 %v7182_v54 }
 0x2d5   : > { %v2917_v17 = vadd.f32 %v5663_v40, %v2891_v48  ;;  %v3231_v50 = vsel %vm3225_vm11, %v3193_v51, -inf  ;;  %v3097_v9 = vadd.f32 %v3091_v60, %v3001_v47  ;;  %v1835_v36 = vpop.f32.mrf.mxu1  ;;  %v5992_v35 = vpop.f32.mrf.mxu0  ;;  %2500 = vmatprep.mubr.bf16.mxu0 %v7182_v54  ;;  %v5076_v47 = vld [vmem:[#allocation5 + $0x10] sm:$0xff]   ;;  %4754 = vmatprep.subr.bf16.mxu1 %v5075_v22  ;;  %v5078_v22 = vld [vmem:[#allocation5 + $0x8] sm:$0xff]  }
 0x2d6   : > { %v2897_v45 = vrot.slane %v2896_v52, 1  ;;  %v3262_v42 = vmax.f32 %v3192_v33, %v3231_v50  ;;  %v2994_v13 = vsel %vm2587_vm1, %v2938_v44, %v2939_v24  ;;  %v3187_v55 = vsel %vm3159_vm10, %v3130_v12, %v3131_v23  ;;  %4755 = vmatpush3.bf16.msra.mxu1 %v5076_v47 }
 0x2d7   : > { %v2933_v3 = vmax.f32 %v2917_v17, 0.0  ;;  %v3194_v20 = vadd.f32 %v3188_v14, %v3097_v9  ;;  %v3002_v10 = vadd.f32 %v2994_v13, %v5624_v29  ;;  %v3035_v32 = vrot.slane %v1835_v36, 2  ;;  %v1837_v48 = vpop.f32.mrf.mxu1  ;;  %v2030_v51 = vpop.f32.mrf.mxu0 }
 0x2d8   : > { %v2898_v39 = vmax.f32 %v2896_v52, %v2897_v45  ;;  %v3263_v27 = vrot.slane %v3262_v42, 4  ;;  %v2940_v49 = vrot.slane %v1837_v48, 1  ;;  %v3132_v33 = vrot.slane %v2030_v51, 3  ;;  %v5077_v52 = vld [vmem:[#allocation5 + $0x48] sm:$0xff]  }
 0x2d9   : > { %v4028_v60 = vrot.slane %v2933_v3, 2  ;;  %v3090_v44 = vsel %vm2684_vm0, %v3034_v5, %v3035_v32  ;;  %v1839_v12 = vpop.f32.mrf.mxu1  ;;  %v6002_v59 = vpop.f32.mrf.mxu0  ;;  %4756 = vmatprep.subr.bf16.mxu1 %v5077_v52 }
 0x2da   : > { %v2918_v14 = vadd.f32 %v5663_v40, %v2898_v39  ;;  %v3264_v17 = vmax.f32 %v3262_v42, %v3263_v27  ;;  %v3098_v29 = vadd.f32 %v3090_v44, %v3002_v10  ;;  %v2993_v50 = vsel %vm2587_vm1, %v2939_v24, %v2940_v49  ;;  %4757 = vmatpush3.bf16.msra.mxu1 %v5078_v22 }
 0x2db   : > { %v3003_v9 = vadd.f32 %v2993_v50, %v5637_v43  ;;  %v3186_v36 = vsel %vm3159_vm10, %v3131_v23, %v3132_v33  ;;  %v3036_v45 = vrot.slane %v1839_v12, 2  ;;  %v1843_v13 = vpop.f32.mrf.mxu1  ;;  %v2036_v5 = vpop.f32.mrf.mxu0  ;;  %2308 = vmatmul.mubr.bf16.gmra.mxu1 %v5525_v58  ;;  %v4029_v40 = vsel %vm4013_vm8, %v4028_v60, %v4027_v53  ;;  %v5090_v43 = vld [vmem:[%s7152_s3] sm:$0x7] }
 0x2dc   : > { %v2934_v42 = vmax.f32 %v2918_v14, 0.0  ;;  %v3265_v3 = vrot.slane %v3264_v17, 2  ;;  %v3195_v10 = vadd.f32 %v3187_v55, %v3098_v29  ;;  %v2941_v48 = vrot.slane %v1843_v13, 1  ;;  %2501 = vmatmul.mubr.bf16.gmra.mxu0 %v5525_v58  ;;  %2317 = vmatprep.mubr.bf16.mxu1 %v7182_v54  ;;  %v5079_v60 = vld [vmem:[#allocation5 + $0x40] sm:$0xff]  }
 0x2dd   : > { %v6018_v24 = vrot.slane %v5090_v43, %v5355_v2  ;;  %v3089_v23 = vsel %vm2684_vm0, %v3035_v32, %v3036_v45  ;;  %v3133_v51 = vrot.slane %v2036_v5, 3  ;;  %v1845_v53 = vpop.f32.mrf.mxu1  ;;  %v6022_v47 = vpop.f32.mrf.mxu0  ;;  %2510 = vmatprep.mubr.bf16.mxu0 %v7182_v54  ;;  %v5080_v50 = vld [vmem:[#allocation5] sm:$0xff]   ;;  %4758 = vmatprep.subr.bf16.mxu1 %v5079_v60 }
 0x2de   : > { %v4030_v58 = vrot.slane %v2934_v42, 1  ;;  %v3266_v55 = vmax.f32 %v3264_v17, %v3265_v3  ;;  %v3233_v39 = vsel %vm3225_vm11, %v3195_v10, -inf  ;;  %v3099_v27 = vadd.f32 %v3089_v23, %v3003_v9  ;;  %4759 = vmatpush3.bf16.msra.mxu1 %v5080_v50 }
 0x2df   : > { %v3269_v2 = vmax.f32 %v3194_v20, %v3233_v39  ;;  %v2992_v44 = vsel %vm2587_vm1, %v2940_v49, %v2941_v48  ;;  %v3185_v32 = vsel %vm3159_vm10, %v3132_v33, %v3133_v51  ;;  %v3037_v12 = vrot.slane %v1845_v53, 2  ;;  %v1847_v14 = vpop.f32.mrf.mxu1  ;;  %v2040_v29 = vpop.f32.mrf.mxu0 }
 0x2e0   : > { %v3267_v52 = vrot.slane %v3266_v55, 1  ;;  %v3196_v13 = vadd.f32 %v3186_v36, %v3099_v27  ;;  %v3004_v17 = vadd.f32 %v2992_v44, %v5643_v15  ;;  %v2942_v5 = vrot.slane %v1847_v14, 1 }
 0x2e1   : > { %v3270_v9 = vrot.slane %v3269_v2, 4  ;;  %v3088_v20 = vsel %vm2684_vm0, %v3036_v45, %v3037_v12  ;;  %v3134_v22 = vrot.slane %v2040_v29, 3  ;;  %v1849_v42 = vpop.f32.mrf.mxu1  ;;  %v6034_v49 = vpop.f32.mrf.mxu0  ;;  %v6037_v33 = vsel %vm4016_vm9, %v4030_v58, %v4029_v40 }
 0x2e2   : > { %v3268_v3 = vmax.f32 %v3266_v55, %v3267_v52  ;;  %v3100_v10 = vadd.f32 %v3088_v20, %v3004_v17  ;;  %v2991_v36 = vsel %vm2587_vm1, %v2941_v48, %v2942_v5  ;;  %v3038_v43 = vrot.slane %v1849_v42, 2 }
 0x2e3   : > { %v3271_v15 = vmax.f32 %v3269_v2, %v3270_v9  ;;  %v3005_v23 = vadd.f32 %v2991_v36, %v5655_v31  ;;  %v3184_v45 = vsel %vm3159_vm10, %v3133_v51, %v3134_v22  ;;  %v1853_v53 = vpop.f32.mrf.mxu1  ;;  %v2046_v39 = vpop.f32.mrf.mxu0  ;;  %2318 = vmatmul.mubr.bf16.gmra.mxu1 %v5531_v61 }
 0x2e4   : > { %v6048_v58 = vadd.f32 %v6018_v24, %v3268_v3  ;;  %v3197_v55 = vadd.f32 %v3185_v32, %v3100_v10  ;;  %v3087_v48 = vsel %vm2684_vm0, %v3037_v12, %v3038_v43  ;;  %v2943_v27 = vrot.slane %v1853_v53, 1  ;;  %2511 = vmatmul.mubr.bf16.gmra.mxu0 %v5531_v61  ;;  %2327 = vmatprep.mubr.bf16.mxu1 %v7182_v54 }
 0x2e5   : > { %v3272_v31 = vrot.slane %v3271_v15, 2  ;;  %v3101_v51 = vadd.f32 %v3087_v48, %v3005_v23  ;;  %v3135_v60 = vrot.slane %v2046_v39, 3  ;;  %v1855_v2 = vpop.f32.mrf.mxu1  ;;  %v6054_v44 = vpop.f32.mrf.mxu0  ;;  %2520 = vmatprep.mubr.bf16.mxu0 %v7182_v54 }
 0x2e6   : > { %v3235_v14 = vsel %vm3225_vm11, %v3197_v55, -inf  ;;  %v2990_v32 = vsel %vm2587_vm1, %v2942_v5, %v2943_v27  ;;  %v3039_v12 = vrot.slane %v1855_v2, 2 }
 0x2e7   : > { %v3273_v29 = vmax.f32 %v3271_v15, %v3272_v31  ;;  %v3276_v50 = vmax.f32 %v3196_v13, %v3235_v14  ;;  %v3198_v61 = vadd.f32 %v3184_v45, %v3101_v51  ;;  %v3006_v52 = vadd.f32 %v2990_v32, %v5667_v11  ;;  %v1857_v17 = vpop.f32.mrf.mxu1  ;;  %v2050_v9 = vpop.f32.mrf.mxu0 }
 0x2e8   : > { %v3183_v20 = vsel %vm3159_vm10, %v3134_v22, %v3135_v60  ;;  %v3086_v42 = vsel %vm2684_vm0, %v3038_v43, %v3039_v12  ;;  %v2944_v3 = vrot.slane %v1857_v17, 1  ;;  %v3136_v10 = vrot.slane %v2050_v9, 3 }
 0x2e9   : > { %v3274_v36 = vrot.slane %v3273_v29, 1  ;;  %v3277_v23 = vrot.slane %v3276_v50, 4  ;;  %v3102_v53 = vadd.f32 %v3086_v42, %v3006_v52  ;;  %v1859_v5 = vpop.f32.mrf.mxu1  ;;  %v6066_v39 = vpop.f32.mrf.mxu0 }
 0x2ea   : > { %v2989_v13 = vsel %vm2587_vm1, %v2943_v27, %v2944_v3  ;;  %v3182_v11 = vsel %vm3159_vm10, %v3135_v60, %v3136_v10  ;;  %v3040_v15 = vrot.slane %v1859_v5, 2 }
 0x2eb   : > { %v3275_v45 = vmax.f32 %v3273_v29, %v3274_v36  ;;  %v3278_v22 = vmax.f32 %v3276_v50, %v3277_v23  ;;  %v3199_v55 = vadd.f32 %v3183_v20, %v3102_v53  ;;  %v3007_v43 = vadd.f32 %v2989_v13, %v5680_v30  ;;  %v1863_v48 = vpop.f32.mrf.mxu1  ;;  %v2056_v31 = vpop.f32.mrf.mxu0  ;;  %2328 = vmatmul.mubr.bf16.gmra.mxu1 %v5537_v4 }
 0x2ec   : > { %v3085_v51 = vsel %vm2684_vm0, %v3039_v12, %v3040_v15  ;;  %v2945_v2 = vrot.slane %v1863_v48, 1  ;;  %v3137_v14 = vrot.slane %v2056_v31, 3  ;;  %2521 = vmatmul.mubr.bf16.gmra.mxu0 %v5537_v4  ;;  %2337 = vmatprep.mubr.bf16.mxu1 %v7182_v54 }
 0x2ed   : > { %v3379_v27 = vadd.f32 %v6018_v24, %v3275_v45  ;;  %v3279_v60 = vrot.slane %v3278_v22, 2  ;;  %v3237_v32 = vsel %vm3225_vm11, %v3199_v55, -inf  ;;  %v3103_v30 = vadd.f32 %v3085_v51, %v3007_v43  ;;  %v1865_v29 = vpop.f32.mrf.mxu1  ;;  %v6081_v50 = vpop.f32.mrf.mxu0  ;;  %2530 = vmatprep.mubr.bf16.mxu0 %v7182_v54 }
 0x2ee   : > { %v3283_v52 = vmax.f32 %v3198_v61, %v3237_v32  ;;  %v2988_v12 = vsel %vm2587_vm1, %v2944_v3, %v2945_v2  ;;  %v3181_v4 = vsel %vm3159_vm10, %v3136_v10, %v3137_v14  ;;  %v3041_v17 = vrot.slane %v1865_v29, 2 }
 0x2ef   : > { %v3395_v9 = vmax.f32 %v3379_v27, 0.0  ;;  %v3280_v20 = vmax.f32 %v3278_v22, %v3279_v60  ;;  %v3200_v42 = vadd.f32 %v3182_v11, %v3103_v30  ;;  %v3008_v36 = vadd.f32 %v2988_v12, %v5686_v21  ;;  %v1867_v23 = vpop.f32.mrf.mxu1  ;;  %v2060_v53 = vpop.f32.mrf.mxu0 }
 0x2f0   : > { %v3284_v5 = vrot.slane %v3283_v52, 4  ;;  %v3084_v13 = vsel %vm2684_vm0, %v3040_v15, %v3041_v17  ;;  %v2946_v45 = vrot.slane %v1867_v23, 1  ;;  %v3138_v61 = vrot.slane %v2060_v53, 3 }
 0x2f1   : > { %v3394_v55 = vmax.f32 %v6048_v58, 0.0  ;;  %v4050_v3 = vrot.slane %v3395_v9, 7  ;;  %v3281_v43 = vrot.slane %v3280_v20, 1  ;;  %v3104_v48 = vadd.f32 %v3084_v13, %v3008_v36  ;;  %v1869_v10 = vpop.f32.mrf.mxu1  ;;  %v6092_v31 = vpop.f32.mrf.mxu0  ;;  %v7198_v13 = vld [vmem:[#allocation12_spill] sm:$0xff] }
 0x2f2   : > { %v3285_v22 = vmax.f32 %v3283_v52, %v3284_v5  ;;  %v2987_v21 = vsel %vm2587_vm1, %v2945_v2, %v2946_v45  ;;  %v3180_v11 = vsel %vm3159_vm10, %v3137_v14, %v3138_v61  ;;  %v3042_v51 = vrot.slane %v1869_v10, 2 }
 0x2f3   : > { %v3282_v27 = vmax.f32 %v3280_v20, %v3281_v43  ;;  %v3201_v15 = vadd.f32 %v3181_v4, %v3104_v48  ;;  %v3009_v60 = vadd.f32 %v2987_v21, %v5697_v28  ;;  %v1873_v32 = vpop.f32.mrf.mxu1  ;;  %v2066_v58 = vpop.f32.mrf.mxu0  ;;  %2338 = vmatmul.mubr.bf16.gmra.mxu1 %v5543_v7  ;;  %v4051_v30 = vsel %vm3998_vm3, %v4050_v3, %v3394_v55 }
 0x2f4   : > { %v3286_v29 = vrot.slane %v3285_v22, 2  ;;  %v3083_v52 = vsel %vm2684_vm0, %v3041_v17, %v3042_v51  ;;  %v2947_v12 = vrot.slane %v1873_v32, 1  ;;  %v3139_v2 = vrot.slane %v2066_v58, 3  ;;  %2531 = vmatmul.mubr.bf16.gmra.mxu0 %v5543_v7  ;;  %2347 = vmatprep.mubr.bf16.mxu1 %v7182_v54  ;;  %v7199_v58 = vld [vmem:[#allocation13_spill] sm:$0xff] }
 0x2f5   : > { %v3380_v14 = vadd.f32 %v6018_v24, %v3282_v27  ;;  %v3239_v28 = vsel %vm3225_vm11, %v3201_v15, -inf  ;;  %v3105_v4 = vadd.f32 %v3083_v52, %v3009_v60  ;;  %v1875_v9 = vpop.f32.mrf.mxu1  ;;  %v6108_v20 = vpop.f32.mrf.mxu0  ;;  %2540 = vmatprep.mubr.bf16.mxu0 %v7182_v54 }
 0x2f6   : > { %v3287_v36 = vmax.f32 %v3285_v22, %v3286_v29  ;;  %v3290_v23 = vmax.f32 %v3200_v42, %v3239_v28  ;;  %v2986_v17 = vsel %vm2587_vm1, %v2946_v45, %v2947_v12  ;;  %v3179_v7 = vsel %vm3159_vm10, %v3138_v61, %v3139_v2 }
 0x2f7   : > { %v3396_v53 = vmax.f32 %v3380_v14, 0.0  ;;  %v3202_v5 = vadd.f32 %v3180_v11, %v3105_v4  ;;  %v3010_v55 = vadd.f32 %v2986_v17, %v7198_v13  ;;  %v3043_v3 = vrot.slane %v1875_v9, 2  ;;  %v1877_v43 = vpop.f32.mrf.mxu1  ;;  %v2070_v48 = vpop.f32.mrf.mxu0 }
 0x2f8   : > { %v3288_v10 = vrot.slane %v3287_v36, 1  ;;  %v3291_v21 = vrot.slane %v3290_v23, 4  ;;  %v2948_v27 = vrot.slane %v1877_v43, 1  ;;  %v3140_v15 = vrot.slane %v2070_v48, 3 }
 0x2f9   : > { %v4052_v54 = vrot.slane %v3396_v53, 6  ;;  %v3082_v42 = vsel %vm2684_vm0, %v3042_v51, %v3043_v3  ;;  %v1879_v22 = vpop.f32.mrf.mxu1  ;;  %v6118_v45 = vpop.f32.mrf.mxu0 }
 0x2fa   : > { %v3289_v60 = vmax.f32 %v3287_v36, %v3288_v10  ;;  %v3292_v61 = vmax.f32 %v3290_v23, %v3291_v21  ;;  %v3106_v32 = vadd.f32 %v3082_v42, %v3010_v55  ;;  %v2985_v11 = vsel %vm2587_vm1, %v2947_v12, %v2948_v27 }
 0x2fb   : > { %v3011_v29 = vadd.f32 %v2985_v11, %v7199_v58  ;;  %v3178_v52 = vsel %vm3159_vm10, %v3139_v2, %v3140_v15  ;;  %v3044_v14 = vrot.slane %v1879_v22, 2  ;;  %v1883_v28 = vpop.f32.mrf.mxu1  ;;  %v2076_v4 = vpop.f32.mrf.mxu0  ;;  %2348 = vmatmul.mubr.bf16.gmra.mxu1 %v5549_v8  ;;  %v4053_v51 = vsel %vm4001_vm4, %v4052_v54, %v4051_v30 }
 0x2fc   : > { %v3381_v9 = vadd.f32 %v6018_v24, %v3289_v60  ;;  %v3293_v36 = vrot.slane %v3292_v61, 2  ;;  %v3203_v23 = vadd.f32 %v3179_v7, %v3106_v32  ;;  %v2949_v17 = vrot.slane %v1883_v28, 1  ;;  %2541 = vmatmul.mubr.bf16.gmra.mxu0 %v5549_v8  ;;  %v7200_v7 = vld [vmem:[#allocation14_spill] sm:$0xff] }
 0x2fd   : > { %v3081_v12 = vsel %vm2684_vm0, %v3043_v3, %v3044_v14  ;;  %v3141_v53 = vrot.slane %v2076_v4, 3  ;;  %v1885_v13 = vpop.f32.mrf.mxu1  ;;  %v6131_v2 = vpop.f32.mrf.mxu0 }
 0x2fe   : > { %v3294_v55 = vmax.f32 %v3292_v61, %v3293_v36  ;;  %v3241_v43 = vsel %vm3225_vm11, %v3203_v23, -inf  ;;  %v3107_v48 = vadd.f32 %v3081_v12, %v3011_v29  ;;  %v2984_v30 = vsel %vm2587_vm1, %v2948_v27, %v2949_v17 }
 0x2ff   : > { %v3297_v10 = vmax.f32 %v3202_v5, %v3241_v43  ;;  %v3012_v21 = vadd.f32 %v2984_v30, %v7200_v7  ;;  %v3177_v8 = vsel %vm3159_vm10, %v3140_v15, %v3141_v53  ;;  %v3045_v54 = vrot.slane %v1885_v13, 2  ;;  %v1887_v3 = vpop.f32.mrf.mxu1  ;;  %v2080_v42 = vpop.f32.mrf.mxu0 }
 0x300   : > { %v3295_v22 = vrot.slane %v3294_v55, 1  ;;  %v3204_v60 = vadd.f32 %v3178_v52, %v3107_v48  ;;  %v2950_v32 = vrot.slane %v1887_v3, 1  ;;  %v3142_v61 = vrot.slane %v2080_v42, 3  ;;  %v7201_v52 = vld [vmem:[#allocation15_spill] sm:$0xff] }
 0x301   : > { %v3298_v11 = vrot.slane %v3297_v10, 4  ;;  %v3080_v58 = vsel %vm2684_vm0, %v3044_v14, %v3045_v54  ;;  %v1889_v29 = vpop.f32.mrf.mxu1  ;;  %v6142_v28 = vpop.f32.mrf.mxu0  ;;  %v3397_v5 = vmax.f32 %v3381_v9, 0.0 }
 0x302   : > { %v3296_v27 = vmax.f32 %v3294_v55, %v3295_v22  ;;  %v3108_v4 = vadd.f32 %v3080_v58, %v3012_v21  ;;  %v2983_v15 = vsel %vm2587_vm1, %v2949_v17, %v2950_v32  ;;  %v3176_v36 = vsel %vm3159_vm10, %v3141_v53, %v3142_v61 }
 0x303   : > { %v3299_v23 = vmax.f32 %v3297_v10, %v3298_v11  ;;  %v3013_v12 = vadd.f32 %v2983_v15, %v7201_v52  ;;  %v3046_v13 = vrot.slane %v1889_v29, 2  ;;  %v1893_v43 = vpop.f32.mrf.mxu1  ;;  %v6149_v48 = vpop.f32.mrf.mxu0  ;;  %v4054_v14 = vrot.slane %v3397_v5, 5 }
 0x304   : > { %v3205_v30 = vadd.f32 %v3177_v8, %v3108_v4  ;;  %v2951_v7 = vrot.slane %v1893_v43, 1  ;;  %v3382_v9 = vadd.f32 %v6018_v24, %v3296_v27  ;;  %v3143_v8 = vrot.slane %v6149_v48, 3 }
 0x305   : > { %v3300_v55 = vrot.slane %v3299_v23, 2  ;;  %v3079_v21 = vsel %vm2684_vm0, %v3045_v54, %v3046_v13  ;;  %v1895_v17 = vpop.f32.mrf.mxu1  ;;  %v6154_v3 = vpop.f32.mrf.mxu0  ;;  %v4055_v53 = vsel %vm4004_vm5, %v4054_v14, %v4053_v51 }
 0x306   : > { %v3243_v10 = vsel %vm3225_vm11, %v3205_v30, -inf  ;;  %v3109_v42 = vadd.f32 %v3079_v21, %v3013_v12  ;;  %v2982_v22 = vsel %vm2587_vm1, %v2950_v32, %v2951_v7  ;;  %v3047_v5 = vrot.slane %v1895_v17, 2 }
 0x307   : > { %v3301_v11 = vmax.f32 %v3299_v23, %v3300_v55  ;;  %v3304_v58 = vmax.f32 %v3204_v60, %v3243_v10  ;;  %v3014_v29 = vadd.f32 %v2982_v22, %v5745_v56  ;;  %v1897_v54 = vpop.f32.mrf.mxu1  ;;  %v2090_v27 = vpop.f32.mrf.mxu0  ;;  %v3398_v52 = vmax.f32 %v3382_v9, 0.0 }
 0x308   : > { %v3206_v4 = vadd.f32 %v3176_v36, %v3109_v42  ;;  %v2952_v15 = vrot.slane %v1897_v54, 1  ;;  %v3078_v12 = vsel %vm2684_vm0, %v3046_v13, %v3047_v5  ;;  %v3175_v48 = vsel %vm3159_vm10, %v3142_v61, %v3143_v8 }
 0x309   : > { %v3302_v51 = vrot.slane %v3301_v11, 1  ;;  %v3305_v43 = vrot.slane %v3304_v58, 4  ;;  %v1899_v14 = vpop.f32.mrf.mxu1  ;;  %v6165_v30 = vpop.f32.mrf.mxu0  ;;  %v3110_v32 = vadd.f32 %v3078_v12, %v3014_v29  ;;  %v4056_v21 = vrot.slane %v3398_v52, 4 }
 0x30a   : > { %v2981_v60 = vsel %vm2587_vm1, %v2951_v7, %v2952_v15  ;;  %v3048_v23 = vrot.slane %v1899_v14, 2  ;;  %v3144_v12 = vrot.slane %v2090_v27, 3 }
 0x30b   : > { %v3306_v56 = vmax.f32 %v3304_v58, %v3305_v43  ;;  %v1903_v36 = vpop.f32.mrf.mxu1  ;;  %v6171_v55 = vpop.f32.mrf.mxu0  ;;  %v3303_v9 = vmax.f32 %v3301_v11, %v3302_v51  ;;  %v3207_v17 = vadd.f32 %v3175_v48, %v3110_v32  ;;  %v3015_v13 = vadd.f32 %v2981_v60, %v5759_v25 }
 0x30c   : > { %v2953_v10 = vrot.slane %v1903_v36, 1  ;;  %v3077_v22 = vsel %vm2684_vm0, %v3047_v5, %v3048_v23  ;;  %v4057_v61 = vsel %vm4007_vm6, %v4056_v21, %v4055_v53  ;;  %v3145_v25 = vrot.slane %v6171_v55, 3 }
 0x30d   : > { %v3307_v42 = vrot.slane %v3306_v56, 2  ;;  %v1905_v29 = vpop.f32.mrf.mxu1  ;;  %v6176_v7 = vpop.f32.mrf.mxu0  ;;  %v3383_v58 = vadd.f32 %v6018_v24, %v3303_v9  ;;  %v3245_v54 = vsel %vm3225_vm11, %v3207_v17, -inf  ;;  %v3111_v60 = vadd.f32 %v3077_v22, %v3015_v13 }
 0x30e   : > { %v2980_v11 = vsel %vm2587_vm1, %v2952_v15, %v2953_v10  ;;  %v3049_v52 = vrot.slane %v1905_v29, 2  ;;  %v3311_v43 = vmax.f32 %v3206_v4, %v3245_v54  ;;  %v3173_v4 = vsel %vm3159_vm10, %v3144_v12, %v3145_v25 }
 0x30f   : > { %v3308_v51 = vmax.f32 %v3306_v56, %v3307_v42  ;;  %v3016_v5 = vadd.f32 %v2980_v11, %v5765_v18  ;;  %v1907_v14 = vpop.f32.mrf.mxu1  ;;  %v2100_v32 = vpop.f32.mrf.mxu0  ;;  %v3399_v36 = vmax.f32 %v3383_v58, 0.0  ;;  %v7202_v11 = vld [vmem:[#allocation16_spill] sm:$0xff] }
 0x310   : > { %v3076_v53 = vsel %vm2684_vm0, %v3048_v23, %v3049_v52  ;;  %v2954_v48 = vrot.slane %v1907_v14, 1  ;;  %v3312_v9 = vrot.slane %v3311_v43, 4  ;;  %v3174_v23 = vsel %vm3159_vm10, %v3143_v8, %v3144_v12 }
 0x311   : > { %v3112_v21 = vadd.f32 %v3076_v53, %v3016_v5  ;;  %v1909_v17 = vpop.f32.mrf.mxu1  ;;  %v6188_v15 = vpop.f32.mrf.mxu0  ;;  %v3309_v55 = vrot.slane %v3308_v51, 1  ;;  %v4058_v56 = vrot.slane %v3399_v36, 3  ;;  %v3208_v54 = vadd.f32 %v3174_v23, %v3111_v60 }
 0x312   : > { %v2979_v18 = vsel %vm2587_vm1, %v2953_v10, %v2954_v48  ;;  %v3050_v27 = vrot.slane %v1909_v17, 2  ;;  %v3313_v13 = vmax.f32 %v3311_v43, %v3312_v9  ;;  %v7203_v17 = vld [vmem:[#allocation17_spill] sm:$0xff] }
 0x313   : > { %v3209_v42 = vadd.f32 %v3173_v4, %v3112_v21  ;;  %v1913_v22 = vpop.f32.mrf.mxu1  ;;  %v6196_v29 = vpop.f32.mrf.mxu0  ;;  %v3310_v58 = vmax.f32 %v3308_v51, %v3309_v55  ;;  %v3017_v5 = vadd.f32 %v2979_v18, %v7202_v11  ;;  %v4059_v53 = vsel %vm4010_vm7, %v4058_v56, %v4057_v61 }
 0x314   : > { %v2955_v14 = vrot.slane %v1913_v22, 1  ;;  %v3314_v40 = vrot.slane %v3313_v13, 2  ;;  %v3075_v43 = vsel %vm2684_vm0, %v3049_v52, %v3050_v27  ;;  %v3146_v61 = vrot.slane %v2100_v32, 3 }
 0x315   : > { %v3247_v10 = vsel %vm3225_vm11, %v3209_v42, -inf  ;;  %v1915_v36 = vpop.f32.mrf.mxu1  ;;  %v6204_v8 = vpop.f32.mrf.mxu0  ;;  %v3384_v12 = vadd.f32 %v6018_v24, %v3310_v58  ;;  %v3113_v42 = vadd.f32 %v3075_v43, %v3017_v5  ;;  %v7205_v32 = vrot.slane %v6196_v29, 3 }
 0x316   : > { %v3318_v9 = vmax.f32 %v3208_v54, %v3247_v10  ;;  %v2978_v51 = vsel %vm2587_vm1, %v2954_v48, %v2955_v14  ;;  %v3051_v21 = vrot.slane %v1915_v36, 2  ;;  %v3315_v56 = vmax.f32 %v3313_v13, %v3314_v40 }
 0x317   : > { %v3018_v55 = vadd.f32 %v2978_v51, %v7203_v17  ;;  %v1917_v4 = vpop.f32.mrf.mxu1  ;;  %v2110_v18 = vpop.f32.mrf.mxu0  ;;  %v3400_v23 = vmax.f32 %v3384_v12, 0.0  ;;  %v3171_v51 = vsel %vm3159_vm10, %v3146_v61, %v7205_v32 }
 0x318   : > { %v3319_v52 = vrot.slane %v3318_v9, 4  ;;  %v3074_v22 = vsel %vm2684_vm0, %v3050_v27, %v3051_v21  ;;  %v2956_v58 = vrot.slane %v1917_v4, 1  ;;  %v3316_v48 = vrot.slane %v3315_v56, 1 }
 0x319   : > { %v3114_v54 = vadd.f32 %v3074_v22, %v3018_v55  ;;  %v1919_v11 = vpop.f32.mrf.mxu1  ;;  %v6213_v10 = vpop.f32.mrf.mxu0  ;;  %v4060_v60 = vrot.slane %v3400_v23, 2  ;;  %v3172_v27 = vsel %vm3159_vm10, %v3145_v25, %v3146_v61 }
 0x31a   : > { %7204 = vst [vmem:[#allocation12_spill] sm:$0xff] %v6213_v10  ;;  %v3320_v36 = vmax.f32 %v3318_v9, %v3319_v52  ;;  %v2977_v40 = vsel %vm2587_vm1, %v2955_v14, %v2956_v58  ;;  %v3052_v13 = vrot.slane %v1919_v11, 2  ;;  %v3317_v17 = vmax.f32 %v3315_v56, %v3316_v48 }
 0x31b   : > { %v3211_v5 = vadd.f32 %v3171_v51, %v3114_v54  ;;  %v1923_v43 = vpop.f32.mrf.mxu1  ;;  %v6223_v12 = vpop.f32.mrf.mxu0  ;;  %v4061_v55 = vsel %vm4013_vm8, %v4060_v60, %v4059_v53  ;;  %v3210_v4 = vadd.f32 %v3172_v27, %v3113_v42  ;;  %v3019_v22 = vadd.f32 %v2977_v40, %v5799_v34  ;;  %v7207_v60 = vld [vmem:[#allocation18_spill] sm:$0xff] }
 0x31c   : > { %v3321_v9 = vrot.slane %v3320_v36, 2  ;;  %v2957_v23 = vrot.slane %v1923_v43, 1  ;;  %v3385_v25 = vadd.f32 %v6018_v24, %v3317_v17  ;;  %v3073_v56 = vsel %vm2684_vm0, %v3051_v21, %v3052_v13 }
 0x31d   : > { %v3249_v52 = vsel %vm3225_vm11, %v3211_v5, -inf  ;;  %v1925_v14 = vpop.f32.mrf.mxu1  ;;  %v6229_v11 = vpop.f32.mrf.mxu0  ;;  %v3149_v48 = vrot.slane %v6223_v12, 3  ;;  %v3148_v5 = vrot.slane %v2110_v18, 3  ;;  %v3115_v17 = vadd.f32 %v3073_v56, %v3019_v22 }
 0x31e   : > { %7206 = vst [vmem:[#allocation13_spill] sm:$0xff] %v6229_v11  ;;  %v3322_v61 = vmax.f32 %v3320_v36, %v3321_v9  ;;  %v3325_v54 = vmax.f32 %v3210_v4, %v3249_v52  ;;  %v2976_v53 = vsel %vm2587_vm1, %v2956_v58, %v2957_v23  ;;  %v3053_v32 = vrot.slane %v1925_v14, 2 }
 0x31f   : > { %v3020_v42 = vadd.f32 %v2976_v53, %v7207_v60  ;;  %v1927_v51 = vpop.f32.mrf.mxu1  ;;  %v2120_v34 = vpop.f32.mrf.mxu0  ;;  %v3401_v40 = vmax.f32 %v3385_v25, 0.0  ;;  %v3169_v14 = vsel %vm3159_vm10, %v3148_v5, %v3149_v48  ;;  %v7209_v56 = vrot.slane %v6196_v29, 3 }
 0x320   : > { %v3326_v27 = vrot.slane %v3325_v54, 4  ;;  %v2958_v43 = vrot.slane %v1927_v51, 1  ;;  %v3072_v36 = vsel %vm2684_vm0, %v3052_v13, %v3053_v32  ;;  %v3323_v58 = vrot.slane %v3322_v61, 1 }
 0x321   : > { %v1929_v9 = vpop.f32.mrf.mxu1  ;;  %v6240_v21 = vpop.f32.mrf.mxu0  ;;  %v4062_v4 = vrot.slane %v3401_v40, 1  ;;  %v3116_v53 = vadd.f32 %v3072_v36, %v3020_v42 }
 0x322   : > { %7208 = vst [vmem:[#allocation14_spill] sm:$0xff] %v6240_v21  ;;  %v3327_v52 = vmax.f32 %v3325_v54, %v3326_v27  ;;  %v2975_v12 = vsel %vm2587_vm1, %v2957_v23, %v2958_v43  ;;  %v3054_v25 = vrot.slane %v1929_v9, 2  ;;  %v3170_v54 = vsel %vm3159_vm10, %v7209_v56, %v3148_v5 }
 0x323   : > { %v1933_v18 = vpop.f32.mrf.mxu1  ;;  %v6246_v60 = vpop.f32.mrf.mxu0  ;;  %v6249_v22 = vsel %vm4016_vm9, %v4062_v4, %v4061_v55  ;;  %v3213_v42 = vadd.f32 %v3169_v14, %v3116_v53  ;;  %v3212_v40 = vadd.f32 %v3170_v54, %v3115_v17  ;;  %v3021_v23 = vadd.f32 %v2975_v12, %v5817_v37 }
 0x324   : > { %v3328_v13 = vrot.slane %v3327_v52, 2  ;;  %v2959_v51 = vrot.slane %v1933_v18, 1  ;;  %v3150_v27 = vrot.slane %v2120_v34, 3  ;;  %v3324_v21 = vmax.f32 %v3322_v61, %v3323_v58 }
 0x325   : > { %v1935_v36 = vpop.f32.mrf.mxu1  ;;  %v6256_v9 = vpop.f32.mrf.mxu0  ;;  %v3251_v55 = vsel %vm3225_vm11, %v3213_v42, -inf  ;;  %v3071_v29 = vsel %vm2684_vm0, %v3053_v32, %v3054_v25  ;;  %v3151_v17 = vrot.slane %v6246_v60, 3 }
 0x326   : > { %7210 = vst [vmem:[#allocation15_spill] sm:$0xff] %v6256_v9  ;;  %v3329_v11 = vmax.f32 %v3327_v52, %v3328_v13  ;;  %v3332_v4 = vmax.f32 %v3212_v40, %v3251_v55  ;;  %v2974_v5 = vsel %vm2587_vm1, %v2958_v43, %v2959_v51  ;;  %v3055_v53 = vrot.slane %v1935_v36, 2 }
 0x327   : > { %v1937_v37 = vpop.f32.mrf.mxu1  ;;  %v2130_v34 = vpop.f32.mrf.mxu0  ;;  %v3022_v14 = vadd.f32 %v2974_v5, %v5825_v0  ;;  %v3168_v52 = vsel %vm3159_vm10, %v3149_v48, %v3150_v27  ;;  %v3117_v18 = vadd.f32 %v3071_v29, %v3021_v23  ;;  %v6275_v0 = vadd.f32 %v6018_v24, %v3324_v21  ;;  %v7212_v23 = vld [vmem:[#allocation19_spill] sm:$0xff] }
 0x328   : > { %v3330_v12 = vrot.slane %v3329_v11, 1  ;;  %v2960_v61 = vrot.slane %v1937_v37, 1  ;;  %v3333_v58 = vrot.slane %v3332_v4, 4  ;;  %v3070_v32 = vsel %vm2684_vm0, %v3054_v25, %v3055_v53 }
 0x329   : > { %v1939_v13 = vpop.f32.mrf.mxu1  ;;  %v6270_v56 = vpop.f32.mrf.mxu0  ;;  %v3118_v60 = vadd.f32 %v3070_v32, %v3022_v14  ;;  %v3167_v48 = vsel %vm3159_vm10, %v3150_v27, %v3151_v17  ;;  %v3152_v21 = vrot.slane %v2130_v34, 3 }
 0x32a   : > { %7211 = vst [vmem:[#allocation16_spill] sm:$0xff] %v6270_v56  ;;  %v3331_v43 = vmax.f32 %v3329_v11, %v3330_v12  ;;  %v2973_v54 = vsel %vm2587_vm1, %v2959_v51, %v2960_v61  ;;  %v3056_v42 = vrot.slane %v1939_v13, 2  ;;  %v3334_v40 = vmax.f32 %v3332_v4, %v3333_v58  ;;  %v7216_v56 = vld [vmem:[#allocation21_spill] sm:$0xff] }
 0x32b   : > { %v3023_v36 = vadd.f32 %v2973_v54, %v7212_v23  ;;  %v1943_v55 = vpop.f32.mrf.mxu1  ;;  %v6280_v25 = vpop.f32.mrf.mxu0  ;;  %v3215_v11 = vadd.f32 %v3167_v48, %v3118_v60  ;;  %v3214_v12 = vadd.f32 %v3168_v52, %v3117_v18  ;;  %v7214_v48 = vld [vmem:[#allocation20_spill] sm:$0xff]  ;;  %v3402_v18 = vmax.f32 %v6275_v0, 0.0 }
 0x32c   : > { %v3387_v29 = vadd.f32 %v6018_v24, %v3331_v43  ;;  %v3069_v5 = vsel %vm2684_vm0, %v3055_v53, %v3056_v42  ;;  %v2961_v51 = vrot.slane %v1943_v55, 1  ;;  %v3335_v37 = vrot.slane %v3334_v40, 2 }
 0x32d   : > { %v3119_v14 = vadd.f32 %v3069_v5, %v3023_v36  ;;  %v1945_v4 = vpop.f32.mrf.mxu1  ;;  %v6285_v58 = vpop.f32.mrf.mxu0  ;;  %v3253_v27 = vsel %vm3225_vm11, %v3215_v11, -inf  ;;  %v3153_v13 = vrot.slane %v6280_v25, 3 }
 0x32e   : > { %7213 = vst [vmem:[#allocation17_spill] sm:$0xff] %v6285_v58  ;;  %v2972_v32 = vsel %vm2587_vm1, %v2960_v61, %v2961_v51  ;;  %v3057_v43 = vrot.slane %v1945_v4, 2  ;;  %v3403_v60 = vmax.f32 %v3387_v29, 0.0  ;;  %v3336_v54 = vmax.f32 %v3334_v40, %v3335_v37 }
 0x32f   : > { %v3339_v53 = vmax.f32 %v3214_v12, %v3253_v27  ;;  %v3024_v23 = vadd.f32 %v2972_v32, %v7214_v48  ;;  %v1947_v52 = vpop.f32.mrf.mxu1  ;;  %v2140_v34 = vpop.f32.mrf.mxu0  ;;  %v3166_v61 = vsel %vm3159_vm10, %v3151_v17, %v3152_v21  ;;  %v3165_v37 = vsel %vm3159_vm10, %v3152_v21, %v3153_v13 }
 0x330   : > { %v3068_v36 = vsel %vm2684_vm0, %v3056_v42, %v3057_v43  ;;  %v2962_v55 = vrot.slane %v1947_v52, 1  ;;  %v3337_v11 = vrot.slane %v3336_v54, 1  ;;  %v3216_v40 = vadd.f32 %v3166_v61, %v3119_v14 }
 0x331   : > { %v3340_v5 = vrot.slane %v3339_v53, 4  ;;  %v3120_v25 = vadd.f32 %v3068_v36, %v3024_v23  ;;  %v1949_v4 = vpop.f32.mrf.mxu1  ;;  %v6298_v29 = vpop.f32.mrf.mxu0  ;;  %v4064_v27 = vrot.slane %v3403_v60, 7  ;;  %v3154_v23 = vrot.slane %v2140_v34, 3 }
 0x332   : > { %7215 = vst [vmem:[#allocation18_spill] sm:$0xff] %v6298_v29  ;;  %v2971_v0 = vsel %vm2587_vm1, %v2961_v51, %v2962_v55  ;;  %v3058_v12 = vrot.slane %v1949_v4, 2  ;;  %v3338_v42 = vmax.f32 %v3336_v54, %v3337_v11 }
 0x333   : > { %v3341_v32 = vmax.f32 %v3339_v53, %v3340_v5  ;;  %v3217_v48 = vadd.f32 %v3165_v37, %v3120_v25  ;;  %v1953_v52 = vpop.f32.mrf.mxu1  ;;  %v2146_v58 = vpop.f32.mrf.mxu0  ;;  %v3025_v17 = vadd.f32 %v2971_v0, %v7216_v56  ;;  %v7218_v25 = vld [vmem:[#allocation22_spill] sm:$0xff] }
 0x334   : > { %v3067_v36 = vsel %vm2684_vm0, %v3057_v43, %v3058_v12  ;;  %v2963_v14 = vrot.slane %v1953_v52, 1  ;;  %v3388_v61 = vadd.f32 %v6018_v24, %v3338_v42  ;;  %v3155_v4 = vrot.slane %v2146_v58, 3 }
 0x335   : > { %v3342_v21 = vrot.slane %v3341_v32, 2  ;;  %v3255_v51 = vsel %vm3225_vm11, %v3217_v48, -inf  ;;  %v1955_v60 = vpop.f32.mrf.mxu1  ;;  %v6310_v54 = vpop.f32.mrf.mxu0  ;;  %v4065_v42 = vsel %vm3998_vm3, %v4064_v27, %v3402_v18  ;;  %v3121_v29 = vadd.f32 %v3067_v36, %v3025_v17 }
 0x336   : > { %7217 = vst [vmem:[#allocation19_spill] sm:$0xff] %v6310_v54  ;;  %v3346_v53 = vmax.f32 %v3216_v40, %v3255_v51  ;;  %v2970_v11 = vsel %vm2587_vm1, %v2962_v55, %v2963_v14  ;;  %v3059_v56 = vrot.slane %v1955_v60, 2  ;;  %v3404_v34 = vmax.f32 %v3388_v61, 0.0 }
 0x337   : > { %v3343_v5 = vmax.f32 %v3341_v32, %v3342_v21  ;;  %v3026_v43 = vadd.f32 %v2970_v11, %v7218_v25  ;;  %v1957_v37 = vpop.f32.mrf.mxu1  ;;  %v2150_v0 = vpop.f32.mrf.mxu0  ;;  %v3164_v40 = vsel %vm3159_vm10, %v3153_v13, %v3154_v23  ;;  %v3163_v55 = vsel %vm3159_vm10, %v3154_v23, %v3155_v4  ;;  %v7219_v11 = vld [vmem:[#allocation23_spill] sm:$0xff] }
 0x338   : > { %v3347_v52 = vrot.slane %v3346_v53, 4  ;;  %v3066_v58 = vsel %vm2684_vm0, %v3058_v12, %v3059_v56  ;;  %v2964_v48 = vrot.slane %v1957_v37, 1  ;;  %v3156_v27 = vrot.slane %v2150_v0, 3 }
 0x339   : > { %v3344_v54 = vrot.slane %v3343_v5, 1  ;;  %v3122_v32 = vadd.f32 %v3066_v58, %v3026_v43  ;;  %v1959_v61 = vpop.f32.mrf.mxu1  ;;  %v6322_v21 = vpop.f32.mrf.mxu0  ;;  %v4066_v36 = vrot.slane %v3404_v34, 6  ;;  %v3218_v10 = vadd.f32 %v3164_v40, %v3121_v29 }
 0x33a   : > { %v3348_v51 = vmax.f32 %v3346_v53, %v3347_v52  ;;  %v2969_v18 = vsel %vm2587_vm1, %v2963_v14, %v2964_v48  ;;  %v3060_v17 = vrot.slane %v1959_v61, 2 }
 0x33b   : > { %v3345_v12 = vmax.f32 %v3343_v5, %v3344_v54  ;;  %v3219_v60 = vadd.f32 %v3163_v55, %v3122_v32  ;;  %v3027_v25 = vadd.f32 %v2969_v18, %v7219_v11  ;;  %v1963_v37 = vpop.f32.mrf.mxu1  ;;  %v2156_v13 = vpop.f32.mrf.mxu0  ;;  %v3162_v55 = vsel %vm3159_vm10, %v3155_v4, %v3156_v27 }
 0x33c   : > { %v3349_v9 = vrot.slane %v3348_v51, 2  ;;  %v3065_v23 = vsel %vm2684_vm0, %v3059_v56, %v3060_v17  ;;  %v2965_v43 = vrot.slane %v1963_v37, 1  ;;  %v3157_v52 = vrot.slane %v2156_v13, 3 }
 0x33d   : > { %v3389_v53 = vadd.f32 %v6018_v24, %v3345_v12  ;;  %v3257_v14 = vsel %vm3225_vm11, %v3219_v60, -inf  ;;  %v3123_v0 = vadd.f32 %v3065_v23, %v3027_v25  ;;  %v1965_v34 = vpop.f32.mrf.mxu1  ;;  %v6332_v54 = vpop.f32.mrf.mxu0  ;;  %v4067_v12 = vsel %vm4001_vm4, %v4066_v36, %v4065_v42 }
 0x33e   : > { %v3350_v5 = vmax.f32 %v3348_v51, %v3349_v9  ;;  %v3353_v58 = vmax.f32 %v3218_v10, %v3257_v14  ;;  %v2968_v29 = vsel %vm2587_vm1, %v2964_v48, %v2965_v43  ;;  %v3061_v40 = vrot.slane %v1965_v34, 2 }
 0x33f   : > { %v3028_v56 = vadd.f32 %v2968_v29, %v5889_v57  ;;  %v1967_v32 = vpop.f32.mrf.mxu1  ;;  %v2160_v61 = vpop.f32.mrf.mxu0  ;;  %v3405_v18 = vmax.f32 %v3389_v53, 0.0  ;;  %v3220_v10 = vadd.f32 %v3162_v55, %v3123_v0  ;;  %v3161_v9 = vsel %vm3159_vm10, %v3156_v27, %v3157_v52 }
 0x340   : > { %v3351_v60 = vrot.slane %v3350_v5, 1  ;;  %v3354_v11 = vrot.slane %v3353_v58, 4  ;;  %v2966_v25 = vrot.slane %v1967_v32, 1  ;;  %v3158_v37 = vrot.slane %v2160_v61, 3 }
 0x341   : > { %v3064_v4 = vsel %vm2684_vm0, %v3060_v17, %v3061_v40  ;;  %v1969_v57 = vpop.f32.mrf.mxu1  ;;  %v6345_v48 = vpop.f32.mrf.mxu0  ;;  %v4068_v51 = vrot.slane %v3405_v18, 5  ;;  %v7220_v53 = vrot.slane %v5917_v26, 1  ;;  %v7221_v0 = vrot.slane %v5919_v62, 3 }
 0x342   : > { %v3352_v13 = vmax.f32 %v3350_v5, %v3351_v60  ;;  %v3355_v23 = vmax.f32 %v3353_v58, %v3354_v11  ;;  %v3124_v42 = vadd.f32 %v3064_v4, %v3028_v56  ;;  %v2967_v36 = vsel %vm2587_vm1, %v2965_v43, %v2966_v25 }
 0x343   : > { %v2998_v14 = vsel %vm2587_vm1, %v2966_v25, %v7220_v53  ;;  %v3029_v27 = vadd.f32 %v2967_v36, %v5903_v41  ;;  %v3160_v17 = vsel %vm3159_vm10, %v3157_v52, %v3158_v37  ;;  %v3191_v34 = vsel %vm3159_vm10, %v3158_v37, %v7221_v0  ;;  %v6360_v5 = vpop.f32.mrf.mxu1  ;;  %v6362_v58 = vpop.f32.mrf.mxu0 }
 0x344   : > { %7222 = vst [vmem:[#allocation20_spill] sm:$0xff] %v6362_v58  ;;  %v3356_v43 = vrot.slane %v3355_v23, 2  ;;  %v3221_v55 = vadd.f32 %v3161_v9, %v3124_v42  ;;  %v3030_v26 = vadd.f32 %v2998_v14, %v5909_v38  ;;  %v3062_v29 = vrot.slane %v1969_v57, 2 }
 0x345   : > { %v7168_v56 = vrot.slane %v6360_v5, 1  ;;  %v7165_v41 = vrot.slane %v6362_v58, 3  ;;  %v6367_v32 = vpop.f32.mrf.mxu1  ;;  %v6369_v52 = vpop.f32.mrf.mxu0  ;;  %v6372_v62 = vadd.f32 %v6018_v24, %v3352_v13  ;;  %v6375_v61 = vsel %vm4004_vm5, %v4068_v51, %v4067_v12 }
 0x346   : > { %7223 = vst [vmem:[#allocation21_spill] sm:$0xff] %v6369_v52  ;;  %v3357_v18 = vmax.f32 %v3355_v23, %v3356_v43  ;;  %v3259_v60 = vsel %vm3225_vm11, %v3221_v55, -inf  ;;  %v3063_v38 = vsel %vm2684_vm0, %v3061_v40, %v3062_v29  ;;  %v7224_v11 = vrot.slane %v5934_v46, 2 }
 0x347   : > { %v3360_v37 = vmax.f32 %v3220_v10, %v3259_v60  ;;  %v3125_v9 = vadd.f32 %v3063_v38, %v3029_v27  ;;  %v7167_v57 = vrot.slane %v6367_v32, 2  ;;  %v2203_v13 = vpop.f32.mrf.mxu1  ;;  %v2396_v12 = vpop.f32.mrf.mxu0  ;;  %v7166_v23 = vrot.slane %v6369_v52, 4 }
 0x348   : > { %v3094_v25 = vsel %vm2684_vm0, %v3062_v29, %v7224_v11  ;;  %v3358_v51 = vrot.slane %v3357_v18, 1  ;;  %v3411_v42 = vrot.slane %v2203_v13, 1  ;;  %v3603_v36 = vrot.slane %v2396_v12, 3 }
 0x349   : > { %v3126_v4 = vadd.f32 %v3094_v25, %v3030_v26  ;;  %v3361_v53 = vrot.slane %v3360_v37, 4  ;;  %v3222_v14 = vadd.f32 %v3160_v17, %v3125_v9  ;;  %v2205_v0 = vpop.f32.mrf.mxu1  ;;  %v2398_v46 = vpop.f32.mrf.mxu0 }
 0x34a   : > { %v3472_v10 = vsel %vm2587_vm1, %v7168_v56, %v3411_v42  ;;  %v3664_v27 = vsel %vm3159_vm10, %v7165_v41, %v3603_v36  ;;  %v3507_v55 = vrot.slane %v2205_v0, 2  ;;  %v3699_v26 = vrot.slane %v2398_v46, 4 }
 0x34b   : > { %v3223_v40 = vadd.f32 %v3191_v34, %v3126_v4  ;;  %v3362_v29 = vmax.f32 %v3360_v37, %v3361_v53  ;;  %v7225_v34 = vld [vmem:[#allocation24_spill] sm:$0xff]  ;;  %v2209_v38 = vpop.f32.mrf.mxu1  ;;  %v2402_v11 = vpop.f32.mrf.mxu0  ;;  %v3359_v25 = vmax.f32 %v3357_v18, %v3358_v51 }
 0x34c   : > { %v3474_v60 = vadd.f32 %v3472_v10, %v7225_v34  ;;  %v3568_v4 = vsel %vm2684_vm0, %v7167_v57, %v3507_v55  ;;  %v3761_v13 = vsel %vm3730_vm12, %v7166_v23, %v3699_v26  ;;  %v3412_v37 = vrot.slane %v2209_v38, 1 }
 0x34d   : > { %v3261_v17 = vsel %vm3225_vm11, %v3223_v40, -inf  ;;  %v3363_v12 = vrot.slane %v3362_v29, 2  ;;  %v3604_v40 = vrot.slane %v2402_v11, 3  ;;  %v2211_v0 = vpop.f32.mrf.mxu1  ;;  %v2404_v46 = vpop.f32.mrf.mxu0  ;;  %v6409_v18 = vadd.f32 %v6018_v24, %v3359_v25 }
 0x34e   : > { %v3367_v9 = vmax.f32 %v3222_v14, %v3261_v17  ;;  %v3570_v53 = vadd.f32 %v3568_v4, %v3474_v60  ;;  %v3471_v14 = vsel %vm2587_vm1, %v3411_v42, %v3412_v37  ;;  %v3508_v10 = vrot.slane %v2211_v0, 2 }
 0x34f   : > { %v3700_v17 = vrot.slane %v2404_v46, 4  ;;  %v3364_v34 = vmax.f32 %v3362_v29, %v3363_v12  ;;  %v3475_v38 = vadd.f32 %v3471_v14, %v5943_v6  ;;  %v3663_v23 = vsel %vm3159_vm10, %v3603_v36, %v3604_v40  ;;  %v2213_v60 = vpop.f32.mrf.mxu1  ;;  %v2406_v11 = vpop.f32.mrf.mxu0 }
 0x350   : > { %v3368_v51 = vrot.slane %v3367_v9, 4  ;;  %v3666_v41 = vadd.f32 %v3664_v27, %v3570_v53  ;;  %v3567_v25 = vsel %vm2684_vm0, %v3507_v55, %v3508_v10  ;;  %v3413_v56 = vrot.slane %v2213_v60, 1 }
 0x351   : > { %v3760_v57 = vsel %vm3730_vm12, %v3699_v26, %v3700_v17  ;;  %v3571_v0 = vadd.f32 %v3567_v25, %v3475_v38  ;;  %v3605_v46 = vrot.slane %v2406_v11, 3  ;;  %v2215_v29 = vpop.f32.mrf.mxu1  ;;  %v2408_v27 = vpop.f32.mrf.mxu0  ;;  %v3365_v12 = vrot.slane %v3364_v34, 1 }
 0x352   : > { %v3369_v4 = vmax.f32 %v3367_v9, %v3368_v51  ;;  %v3763_v42 = vadd.f32 %v3761_v13, %v3666_v41  ;;  %v3470_v36 = vsel %vm2587_vm1, %v3412_v37, %v3413_v56  ;;  %v3509_v53 = vrot.slane %v2215_v29, 2  ;;  %v7226_v51 = vld [vmem:[#allocation25_spill] sm:$0xff] }
 0x353   : > { %v3701_v14 = vrot.slane %v2408_v27, 4  ;;  %v3667_v9 = vadd.f32 %v3663_v23, %v3571_v0  ;;  %v3476_v43 = vadd.f32 %v3470_v36, %v7226_v51  ;;  %v3662_v55 = vsel %vm3159_vm10, %v3604_v40, %v3605_v46  ;;  %v2219_v26 = vpop.f32.mrf.mxu1  ;;  %v2412_v60 = vpop.f32.mrf.mxu0 }
 0x354   : > { %v3370_v6 = vrot.slane %v3369_v4, 2  ;;  %v3366_v41 = vmax.f32 %v3364_v34, %v3365_v12  ;;  %v3566_v38 = vsel %vm2684_vm0, %v3508_v10, %v3509_v53  ;;  %v3414_v25 = vrot.slane %v2219_v26, 1 }
 0x355   : > { %v3759_v11 = vsel %vm3730_vm12, %v3700_v17, %v3701_v14  ;;  %v3764_v37 = vadd.f32 %v3760_v57, %v3667_v9  ;;  %v3572_v29 = vadd.f32 %v3566_v38, %v3476_v43  ;;  %v3606_v27 = vrot.slane %v2412_v60, 3  ;;  %v2221_v23 = vpop.f32.mrf.mxu1  ;;  %v2414_v0 = vpop.f32.mrf.mxu0 }
 0x356   : > { %v3371_v13 = vmax.f32 %v3369_v4, %v3370_v6  ;;  %v6430_v36 = vadd.f32 %v6018_v24, %v3366_v41  ;;  %v3469_v40 = vsel %vm2587_vm1, %v3413_v56, %v3414_v25  ;;  %v3510_v34 = vrot.slane %v2221_v23, 2 }
 0x357   : > { %v3702_v4 = vrot.slane %v2414_v0, 4  ;;  %v3802_v10 = vsel %vm3796_vm13, %v3764_v37, -inf  ;;  %v3668_v6 = vadd.f32 %v3662_v55, %v3572_v29  ;;  %v3477_v17 = vadd.f32 %v3469_v40, %v5976_v63  ;;  %v2223_v43 = vpop.f32.mrf.mxu1  ;;  %v2416_v9 = vpop.f32.mrf.mxu0 }
 0x358   : > { %v3372_v12 = vrot.slane %v3371_v13, 1  ;;  %v3661_v57 = vsel %vm3159_vm10, %v3605_v46, %v3606_v27  ;;  %v3833_v51 = vmax.f32 %v3763_v42, %v3802_v10  ;;  %v3565_v26 = vsel %vm2684_vm0, %v3509_v53, %v3510_v34 }
 0x359   : > { %v3758_v56 = vsel %vm3730_vm12, %v3701_v14, %v3702_v4  ;;  %v3415_v60 = vrot.slane %v2223_v43, 1  ;;  %v3765_v41 = vadd.f32 %v3759_v11, %v3668_v6  ;;  %v3573_v38 = vadd.f32 %v3565_v26, %v3477_v17  ;;  %v2225_v37 = vpop.f32.mrf.mxu1  ;;  %v2418_v55 = vpop.f32.mrf.mxu0 }
 0x35a   : > { %v3607_v23 = vrot.slane %v2416_v9, 3  ;;  %v3373_v29 = vmax.f32 %v3371_v13, %v3372_v12  ;;  %v3834_v63 = vrot.slane %v3833_v51, 4  ;;  %v3511_v0 = vrot.slane %v2225_v37, 2 }
 0x35b   : > { %v3468_v46 = vsel %vm2587_vm1, %v3414_v25, %v3415_v60  ;;  %v3703_v40 = vrot.slane %v2418_v55, 4  ;;  %v3669_v42 = vadd.f32 %v3661_v57, %v3573_v38  ;;  %v2229_v14 = vpop.f32.mrf.mxu1  ;;  %v2422_v43 = vpop.f32.mrf.mxu0  ;;  %v3407_v38 = vmax.f32 %v6409_v18, 0.0 }
 0x35c   : > { %v3478_v10 = vadd.f32 %v3468_v46, %v5992_v35  ;;  %v3660_v53 = vsel %vm3159_vm10, %v3606_v27, %v3607_v23  ;;  %v3393_v11 = vadd.f32 %v6018_v24, %v3373_v29  ;;  %v3835_v6 = vmax.f32 %v3833_v51, %v3834_v63 }
 0x35d   : > { %v3564_v13 = vsel %vm2684_vm0, %v3510_v34, %v3511_v0  ;;  %v3757_v12 = vsel %vm3730_vm12, %v3702_v4, %v3703_v40  ;;  %v3416_v25 = vrot.slane %v2229_v14, 1  ;;  %v3766_v17 = vadd.f32 %v3758_v56, %v3669_v42  ;;  %v2231_v26 = vpop.f32.mrf.mxu1  ;;  %v2424_v35 = vpop.f32.mrf.mxu0 }
 0x35e   : > { %v3574_v9 = vadd.f32 %v3564_v13, %v3478_v10  ;;  %v3608_v57 = vrot.slane %v2422_v43, 3  ;;  %v3836_v27 = vrot.slane %v3835_v6, 2  ;;  %v3512_v24 = vrot.slane %v2231_v26, 2 }
 0x35f   : > { %v3467_v37 = vsel %vm2587_vm1, %v3415_v60, %v3416_v25  ;;  %v3704_v51 = vrot.slane %v2424_v35, 4  ;;  %v3804_v34 = vsel %vm3796_vm13, %v3766_v17, -inf  ;;  %v2233_v29 = vpop.f32.mrf.mxu1  ;;  %v2426_v63 = vpop.f32.mrf.mxu0 }
 0x360   : > { %v3670_v55 = vadd.f32 %v3660_v53, %v3574_v9  ;;  %v3479_v4 = vadd.f32 %v3467_v37, %v6002_v59  ;;  %v3659_v56 = vsel %vm3159_vm10, %v3607_v23, %v3608_v57  ;;  %v3837_v46 = vmax.f32 %v3835_v6, %v3836_v27 }
 0x361   : > { %v3840_v42 = vmax.f32 %v3765_v41, %v3804_v34  ;;  %v3563_v18 = vsel %vm2684_vm0, %v3511_v0, %v3512_v24  ;;  %v3756_v60 = vsel %vm3730_vm12, %v3703_v40, %v3704_v51  ;;  %v3417_v43 = vrot.slane %v2233_v29, 1  ;;  %v2235_v53 = vpop.f32.mrf.mxu1  ;;  %v6465_v17 = vpop.f32.mrf.mxu0 }
 0x362   : > { %v3767_v10 = vadd.f32 %v3757_v12, %v3670_v55  ;;  %v3575_v14 = vadd.f32 %v3563_v18, %v3479_v4  ;;  %v3609_v13 = vrot.slane %v2426_v63, 3  ;;  %v3838_v59 = vrot.slane %v3837_v46, 1  ;;  %v7228_v18 = vld [vmem:[#allocation11_spill] sm:$0xff] }
 0x363   : > { %v3841_v9 = vrot.slane %v3840_v42, 4  ;;  %v3513_v23 = vrot.slane %v2235_v53, 2  ;;  %v7169_v26 = vrot.slane %v6465_v17, 4  ;;  %v3466_v41 = vsel %vm2587_vm1, %v3416_v25, %v3417_v43  ;;  %v2239_v12 = vpop.f32.mrf.mxu1  ;;  %v2432_v35 = vpop.f32.mrf.mxu0 }
 0x364   : > { %v3671_v6 = vadd.f32 %v3659_v56, %v3575_v14  ;;  %v3658_v0 = vsel %vm3159_vm10, %v3608_v57, %v3609_v13  ;;  %v3408_v40 = vmax.f32 %v6430_v36, 0.0  ;;  %v3839_v27 = vmax.f32 %v3837_v46, %v3838_v59 }
 0x365   : > { %v3842_v37 = vmax.f32 %v3840_v42, %v3841_v9  ;;  %v3480_v34 = vadd.f32 %v3466_v41, %v6022_v47  ;;  %v3562_v55 = vsel %vm2684_vm0, %v3512_v24, %v3513_v23  ;;  %v3755_v25 = vsel %vm3730_vm12, %v3704_v51, %v7169_v26  ;;  %v2241_v36 = vpop.f32.mrf.mxu1  ;;  %v2434_v63 = vpop.f32.mrf.mxu0 }
 0x366   : > { %v3768_v4 = vadd.f32 %v3756_v60, %v3671_v6  ;;  %v3409_v56 = vmax.f32 %v3393_v11, 0.0  ;;  %v7227_v57 = vmax.f32 %v6372_v62, 0.0  ;;  %v6483_v46 = vadd.f32 %v7228_v18, %v3839_v27 }
 0x367   : > { %v3843_v42 = vrot.slane %v3842_v37, 2  ;;  %v3576_v47 = vadd.f32 %v3562_v55, %v3480_v34  ;;  %v4072_v14 = vrot.slane %v3407_v38, 3  ;;  %v4074_v53 = vrot.slane %v3408_v40, 2  ;;  %v2243_v11 = vpop.f32.mrf.mxu1  ;;  %v2436_v59 = vpop.f32.mrf.mxu0 }
 0x368   : > { %v4070_v29 = vrot.slane %v7227_v57, 4  ;;  %v3806_v24 = vsel %vm3796_vm13, %v3768_v4, -inf  ;;  %v4076_v51 = vrot.slane %v3409_v56, 1  ;;  %v3965_v62 = vmax.f32 %v6483_v46, 0.0 }
 0x369   : > { %v3844_v9 = vmax.f32 %v3842_v37, %v3843_v42  ;;  %v3847_v6 = vmax.f32 %v3767_v10, %v3806_v24  ;;  %v3672_v41 = vadd.f32 %v3658_v0, %v3576_v47  ;;  %v3418_v57 = vrot.slane %v2239_v12, 1  ;;  %v2245_v55 = vpop.f32.mrf.mxu1  ;;  %v2438_v26 = vpop.f32.mrf.mxu0 }
 0x36a   : > { %v4071_v60 = vsel %vm4007_vm6, %v4070_v29, %v6375_v61  ;;  %v3610_v34 = vrot.slane %v2432_v35, 3  ;;  %v3514_v38 = vrot.slane %v2241_v36, 2  ;;  %v3706_v42 = vrot.slane %v2434_v63, 4 }
 0x36b   : > { %v4073_v27 = vsel %vm4010_vm7, %v4072_v14, %v4071_v60  ;;  %v3845_v4 = vrot.slane %v3844_v9, 1  ;;  %v3848_v52 = vrot.slane %v3847_v6, 4  ;;  %v3769_v58 = vadd.f32 %v3755_v25, %v3672_v41  ;;  %v2249_v12 = vpop.f32.mrf.mxu1  ;;  %v6499_v35 = vpop.f32.mrf.mxu0 }
 0x36c   : > { %v4075_v61 = vsel %vm4013_vm8, %v4074_v53, %v4073_v27  ;;  %v3465_v56 = vsel %vm2587_vm1, %v3417_v43, %v3418_v57  ;;  %v3657_v10 = vsel %vm3159_vm10, %v3609_v13, %v3610_v34  ;;  %v3561_v0 = vsel %vm2684_vm0, %v3513_v23, %v3514_v38 }
 0x36d   : > { %v4077_v40 = vsel %vm4016_vm9, %v4076_v51, %v4075_v61  ;;  %v3846_v37 = vmax.f32 %v3844_v9, %v3845_v4  ;;  %v3849_v29 = vmax.f32 %v3847_v6, %v3848_v52  ;;  %v3481_v36 = vadd.f32 %v3465_v56, %v6034_v49  ;;  %v2251_v43 = vpop.f32.mrf.mxu1  ;;  %v2444_v60 = vpop.f32.mrf.mxu0 }
 0x36e   : > { %v4127_v25 = vpack.c.bf16 %v4077_v40, %v6249_v22  ;;  %v3419_v47 = vrot.slane %v2243_v11, 1  ;;  %v3611_v14 = vrot.slane %v2436_v59, 3  ;;  %v3515_v24 = vrot.slane %v2245_v55, 2 }
 0x36f   : > { %v3950_v13 = vadd.f32 %v7228_v18, %v3846_v37  ;;  %v3850_v53 = vrot.slane %v3849_v29, 2  ;;  %v3577_v23 = vadd.f32 %v3561_v0, %v3481_v36  ;;  %v3707_v51 = vrot.slane %v2438_v26, 4  ;;  %v2253_v59 = vpop.f32.mrf.mxu1  ;;  %v6517_v26 = vpop.f32.mrf.mxu0 }
 0x370   : > { %4360 = vmatprep.mubr.bf16.mxu1 %v4127_v25  ;;  %v7229_v9 = vpack.c.bf16 %v6037_v33, %v5832_v16  ;;  %v7230_v22 = vrot.slane %v6465_v17, 4  ;;  %v3464_v52 = vsel %vm2587_vm1, %v3418_v57, %v3419_v47  ;;  %v3656_v63 = vsel %vm3159_vm10, %v3610_v34, %v3611_v14 }
 0x371   : > { %v3560_v11 = vsel %vm2684_vm0, %v3514_v38, %v3515_v24  ;;  %v3966_v6 = vmax.f32 %v3950_v13, 0.0  ;;  %v3851_v16 = vmax.f32 %v3849_v29, %v3850_v53  ;;  %v3673_v33 = vadd.f32 %v3657_v10, %v3577_v23  ;;  %v2255_v4 = vpop.f32.mrf.mxu1  ;;  %v2448_v34 = vpop.f32.mrf.mxu0 }
 0x372   : > { %4361 = vmatmul.mubr.bf16.vlgmr.msra.gmra.mxu1 %v7229_v9  ;;  %v3754_v49 = vsel %vm3730_vm12, %v7230_v22, %v3706_v42  ;;  %v3482_v17 = vadd.f32 %v3464_v52, %v6054_v44  ;;  %v3753_v41 = vsel %vm3730_vm12, %v3706_v42, %v3707_v51  ;;  %v3420_v27 = vrot.slane %v2249_v12, 1 }
 0x373   : > { %v3612_v57 = vrot.slane %v6499_v35, 3  ;;  %v3516_v55 = vrot.slane %v2251_v43, 2  ;;  %v4096_v61 = vrot.slane %v3966_v6, 7  ;;  %v3852_v40 = vrot.slane %v3851_v16, 1  ;;  %v6529_v12 = vpop.f32.mrf.mxu1  ;;  %v6531_v35 = vpop.f32.mrf.mxu0 }
 0x374   : > { %v3770_v38 = vadd.f32 %v3754_v49, %v3673_v33  ;;  %v3578_v56 = vadd.f32 %v3560_v11, %v3482_v17  ;;  %v3463_v0 = vsel %vm2587_vm1, %v3419_v47, %v3420_v27  ;;  %v3708_v37 = vrot.slane %v2444_v60, 4 }
 0x375   : > { %v3655_v10 = vsel %vm3159_vm10, %v3611_v14, %v3612_v57  ;;  %v3559_v44 = vsel %vm2684_vm0, %v3515_v24, %v3516_v55  ;;  %v4097_v29 = vsel %vm3998_vm3, %v4096_v61, %v3965_v62  ;;  %v3853_v25 = vmax.f32 %v3851_v16, %v3852_v40  ;;  %v2261_v60 = vpop.f32.mrf.mxu1  ;;  %v6541_v13 = vpop.f32.mrf.mxu0 }
 0x376   : > { %v3808_v36 = vsel %vm3796_vm13, %v3770_v38, -inf  ;;  %v3674_v42 = vadd.f32 %v3656_v63, %v3578_v56  ;;  %v3483_v14 = vadd.f32 %v3463_v0, %v6066_v39  ;;  %v3752_v24 = vsel %vm3730_vm12, %v3707_v51, %v3708_v37 }
 0x377   : > { %v3854_v47 = vmax.f32 %v3769_v58, %v3808_v36  ;;  %v3421_v43 = vrot.slane %v2253_v59, 1  ;;  %v3951_v53 = vadd.f32 %v7228_v18, %v3853_v25  ;;  %v3613_v62 = vrot.slane %v6517_v26, 3  ;;  %v2263_v39 = vpop.f32.mrf.mxu1  ;;  %v6547_v52 = vpop.f32.mrf.mxu0 }
 0x378   : > { %v3771_v46 = vadd.f32 %v3753_v41, %v3674_v42  ;;  %v3517_v23 = vrot.slane %v2255_v4, 2  ;;  %v3579_v22 = vadd.f32 %v3559_v44, %v3483_v14  ;;  %v3709_v49 = vrot.slane %v2448_v34, 4 }
 0x379   : > { %v3855_v9 = vrot.slane %v3854_v47, 4  ;;  %v3462_v58 = vsel %vm2587_vm1, %v3420_v27, %v3421_v43  ;;  %v3967_v51 = vmax.f32 %v3951_v53, 0.0  ;;  %v3654_v11 = vsel %vm3159_vm10, %v3612_v57, %v3613_v62  ;;  %v6557_v17 = vpop.f32.mrf.mxu1  ;;  %v6559_v41 = vpop.f32.mrf.mxu0 }
 0x37a   : > { %v3484_v63 = vadd.f32 %v3462_v58, %v6081_v50  ;;  %v3558_v59 = vsel %vm2684_vm0, %v3516_v55, %v3517_v23  ;;  %v3675_v6 = vadd.f32 %v3655_v10, %v3579_v22  ;;  %v3751_v16 = vsel %vm3730_vm12, %v3708_v37, %v3709_v49 }
 0x37b   : > { %v3856_v26 = vmax.f32 %v3854_v47, %v3855_v9  ;;  %v3422_v33 = vrot.slane %v6529_v12, 1  ;;  %v4098_v27 = vrot.slane %v3967_v51, 6  ;;  %v3614_v50 = vrot.slane %v6531_v35, 3  ;;  %v6565_v38 = vpop.f32.mrf.mxu1  ;;  %v6567_v56 = vpop.f32.mrf.mxu0 }
 0x37c   : > { %v3580_v4 = vadd.f32 %v3558_v59, %v3484_v63  ;;  %v3518_v34 = vrot.slane %v2261_v60, 2  ;;  %v3772_v61 = vadd.f32 %v3752_v24, %v3675_v6  ;;  %v3710_v40 = vrot.slane %v6541_v13, 4 }
 0x37d   : > { %v3857_v57 = vrot.slane %v3856_v26, 2  ;;  %v3461_v55 = vsel %vm2587_vm1, %v3421_v43, %v3422_v33  ;;  %v6570_v0 = vsel %vm4001_vm4, %v4098_v27, %v4097_v29  ;;  %v3653_v37 = vsel %vm3159_vm10, %v3613_v62, %v3614_v50  ;;  %v6581_v42 = vpop.f32.mrf.mxu1  ;;  %v6583_v29 = vpop.f32.mrf.mxu0 }
 0x37e   : > { %v3676_v10 = vadd.f32 %v3654_v11, %v3580_v4  ;;  %v3485_v44 = vadd.f32 %v3461_v55, %v6092_v31  ;;  %v3810_v35 = vsel %vm3796_vm13, %v3772_v61, -inf  ;;  %v3557_v25 = vsel %vm2684_vm0, %v3517_v23, %v3518_v34 }
 0x37f   : > { %v3858_v12 = vmax.f32 %v3856_v26, %v3857_v57  ;;  %v3750_v36 = vsel %vm3730_vm12, %v3709_v49, %v3710_v40  ;;  %v3861_v47 = vmax.f32 %v3771_v46, %v3810_v35  ;;  %v3423_v24 = vrot.slane %v2263_v39, 1  ;;  %v6588_v62 = vpop.f32.mrf.mxu1  ;;  %v6590_v23 = vpop.f32.mrf.mxu0 }
 0x380   : > { %v3773_v14 = vadd.f32 %v3751_v16, %v3676_v10  ;;  %v3581_v31 = vadd.f32 %v3557_v25, %v3485_v44  ;;  %v3615_v60 = vrot.slane %v6547_v52, 3  ;;  %v3519_v13 = vrot.slane %v6557_v17, 2 }
 0x381   : > { %v3859_v43 = vrot.slane %v3858_v12, 1  ;;  %v3711_v53 = vrot.slane %v6559_v41, 4  ;;  %v3862_v9 = vrot.slane %v3861_v47, 4  ;;  %v3460_v58 = vsel %vm2587_vm1, %v3422_v33, %v3423_v24  ;;  %v6600_v63 = vpop.f32.mrf.mxu1  ;;  %v6602_v11 = vpop.f32.mrf.mxu0 }
 0x382   : > { %v3677_v22 = vadd.f32 %v3653_v37, %v3581_v31  ;;  %v3424_v46 = vrot.slane %v6565_v38, 1  ;;  %v3486_v39 = vadd.f32 %v3460_v58, %v6108_v20  ;;  %v3652_v52 = vsel %vm3159_vm10, %v3614_v50, %v3615_v60 }
 0x383   : > { %v3860_v49 = vmax.f32 %v3858_v12, %v3859_v43  ;;  %v3556_v51 = vsel %vm2684_vm0, %v3518_v34, %v3519_v13  ;;  %v3863_v59 = vmax.f32 %v3861_v47, %v3862_v9  ;;  %v3749_v6 = vsel %vm3730_vm12, %v3710_v40, %v3711_v53  ;;  %v6613_v27 = vpop.f32.mrf.mxu1  ;;  %v6615_v4 = vpop.f32.mrf.mxu0 }
 0x384   : > { %v3774_v26 = vadd.f32 %v3750_v36, %v3677_v22  ;;  %v3459_v16 = vsel %vm2587_vm1, %v3423_v24, %v3424_v46  ;;  %v3582_v33 = vadd.f32 %v3556_v51, %v3486_v39  ;;  %v3616_v41 = vrot.slane %v6567_v56, 3 }
 0x385   : > { %v6609_v20 = vadd.f32 %v7228_v18, %v3860_v49  ;;  %v3487_v17 = vadd.f32 %v3459_v16, %v6118_v45  ;;  %v3864_v50 = vrot.slane %v3863_v59, 2  ;;  %v3520_v57 = vrot.slane %v6581_v42, 2  ;;  %v6623_v45 = vpop.f32.mrf.mxu1  ;;  %v6625_v56 = vpop.f32.mrf.mxu0 }
 0x386   : > { %v3812_v34 = vsel %vm3796_vm13, %v3774_v26, -inf  ;;  %v3712_v61 = vrot.slane %v6583_v29, 4  ;;  %v3678_v40 = vadd.f32 %v3652_v52, %v3582_v33  ;;  %v3651_v38 = vsel %vm3159_vm10, %v3615_v60, %v3616_v41 }
 0x387   : > { %v3868_v55 = vmax.f32 %v3773_v14, %v3812_v34  ;;  %v3865_v10 = vmax.f32 %v3863_v59, %v3864_v50  ;;  %v3555_v44 = vsel %vm2684_vm0, %v3519_v13, %v3520_v57  ;;  %v3425_v12 = vrot.slane %v6588_v62, 1  ;;  %v6632_v42 = vpop.f32.mrf.mxu1  ;;  %v6634_v29 = vpop.f32.mrf.mxu0 }
 0x388   : > { %v3748_v37 = vsel %vm3730_vm12, %v3711_v53, %v3712_v61  ;;  %v3775_v25 = vadd.f32 %v3749_v6, %v3678_v40  ;;  %v3583_v36 = vadd.f32 %v3555_v44, %v3487_v17  ;;  %v3617_v31 = vrot.slane %v6590_v23, 3 }
 0x389   : > { %v3869_v35 = vrot.slane %v3868_v55, 4  ;;  %v3866_v47 = vrot.slane %v3865_v10, 1  ;;  %v3458_v14 = vsel %vm2587_vm1, %v3424_v46, %v3425_v12  ;;  %v3521_v24 = vrot.slane %v6600_v63, 2  ;;  %v6642_v62 = vpop.f32.mrf.mxu1  ;;  %v6644_v9 = vpop.f32.mrf.mxu0 }
 0x38a   : > { %v3679_v60 = vadd.f32 %v3651_v38, %v3583_v36  ;;  %v3488_v13 = vadd.f32 %v3458_v14, %v6131_v2  ;;  %v3713_v53 = vrot.slane %v6602_v11, 4  ;;  %v3650_v58 = vsel %vm3159_vm10, %v3616_v41, %v3617_v31 }
 0x38b   : > { %v3870_v43 = vmax.f32 %v3868_v55, %v3869_v35  ;;  %v3867_v22 = vmax.f32 %v3865_v10, %v3866_v47  ;;  %v3554_v46 = vsel %vm2684_vm0, %v3520_v57, %v3521_v24  ;;  %v3426_v23 = vrot.slane %v6613_v27, 1  ;;  %v6653_v51 = vpop.f32.mrf.mxu1  ;;  %v6655_v63 = vpop.f32.mrf.mxu0 }
 0x38c   : > { %v3776_v39 = vadd.f32 %v3748_v37, %v3679_v60  ;;  %v3584_v52 = vadd.f32 %v3554_v46, %v3488_v13  ;;  %v3747_v2 = vsel %vm3730_vm12, %v3712_v61, %v3713_v53  ;;  %v3618_v26 = vrot.slane %v6615_v4, 3 }
 0x38d   : > { %v3871_v49 = vrot.slane %v3870_v43, 2  ;;  %v6658_v11 = vadd.f32 %v7228_v18, %v3867_v22  ;;  %v3457_v59 = vsel %vm2587_vm1, %v3425_v12, %v3426_v23  ;;  %v3522_v6 = vrot.slane %v6623_v45, 2  ;;  %v6667_v27 = vpop.f32.mrf.mxu1  ;;  %v6669_v50 = vpop.f32.mrf.mxu0 }
 0x38e   : > { %v3814_v33 = vsel %vm3796_vm13, %v3776_v39, -inf  ;;  %v3680_v17 = vadd.f32 %v3650_v58, %v3584_v52  ;;  %v3489_v41 = vadd.f32 %v3457_v59, %v6142_v28  ;;  %v3714_v38 = vrot.slane %v6625_v56, 4 }
 0x38f   : > { %v3872_v16 = vmax.f32 %v3870_v43, %v3871_v49  ;;  %v3875_v34 = vmax.f32 %v3775_v25, %v3814_v33  ;;  %v3553_v57 = vsel %vm2684_vm0, %v3521_v24, %v3522_v6  ;;  %v2293_v10 = vpop.f32.mrf.mxu1  ;;  %v6676_v44 = vpop.f32.mrf.mxu0  ;;  %v3649_v28 = vsel %vm3159_vm10, %v3617_v31, %v3618_v26 }
 0x390   : > { %v3777_v55 = vadd.f32 %v3747_v2, %v3680_v17  ;;  %v3585_v40 = vadd.f32 %v3553_v57, %v3489_v41  ;;  %v3746_v14 = vsel %vm3730_vm12, %v3713_v53, %v3714_v38  ;;  %v3427_v31 = vrot.slane %v6632_v42, 1 }
 0x391   : > { %v3873_v61 = vrot.slane %v3872_v16, 1  ;;  %v3876_v37 = vrot.slane %v3875_v34, 4  ;;  %v6682_v25 = vpop.f32.mrf.mxu1  ;;  %v6684_v36 = vpop.f32.mrf.mxu0  ;;  %v3428_v22 = vrot.slane %v6653_v51, 1  ;;  %v3524_v49 = vrot.slane %v6667_v27, 2 }
 0x392   : > { %v3681_v35 = vadd.f32 %v3649_v28, %v3585_v40  ;;  %v3523_v2 = vrot.slane %v6642_v62, 2  ;;  %v3620_v40 = vrot.slane %v6655_v63, 3  ;;  %v3621_v45 = vrot.slane %v6676_v44, 3 }
 0x393   : > { %v3874_v12 = vmax.f32 %v3872_v16, %v3873_v61  ;;  %v3877_v47 = vmax.f32 %v3875_v34, %v3876_v37  ;;  %v6693_v60 = vpop.f32.mrf.mxu1  ;;  %v3455_v59 = vsel %vm2587_vm1, %v3427_v31, %v3428_v22  ;;  %v3429_v34 = vrot.slane %v2293_v10, 1 }
 0x394   : > { %v3778_v43 = vadd.f32 %v3746_v14, %v3681_v35  ;;  %v6697_v58 = vpop.f32.mrf.mxu0  ;;  %v3491_v42 = vadd.f32 %v3455_v59, %v6165_v30  ;;  %v3551_v41 = vsel %vm2684_vm0, %v3523_v2, %v3524_v49  ;;  %v3968_v37 = vmax.f32 %v6609_v20, 0.0 }
 0x395   : > { %v6691_v24 = vadd.f32 %v7228_v18, %v3874_v12  ;;  %v3878_v13 = vrot.slane %v3877_v47, 2  ;;  %v6702_v39 = vpop.f32.mrf.mxu1  ;;  %v3430_v14 = vrot.slane %v6693_v60, 1  ;;  %v3454_v63 = vsel %vm2587_vm1, %v3428_v22, %v3429_v34 }
 0x396   : > { %v3816_v46 = vsel %vm3796_vm13, %v3778_v43, -inf  ;;  %v6707_v16 = vpop.f32.mrf.mxu0  ;;  %v3587_v28 = vadd.f32 %v3551_v41, %v3491_v42  ;;  %v3525_v20 = vrot.slane %v6682_v25, 2  ;;  %v3969_v44 = vmax.f32 %v6658_v11, 0.0 }
 0x397   : > { %v3879_v53 = vmax.f32 %v3877_v47, %v3878_v13  ;;  %v3882_v52 = vmax.f32 %v3777_v55, %v3816_v46  ;;  %v6710_v51 = vpop.f32.mrf.mxu1  ;;  %v3456_v55 = vsel %vm2587_vm1, %v3426_v23, %v3427_v31  ;;  %v3619_v47 = vrot.slane %v6634_v29, 3 }
 0x398   : > { %v6714_v27 = vpop.f32.mrf.mxu0  ;;  %v3490_v23 = vadd.f32 %v3456_v55, %v6154_v3  ;;  %v3526_v13 = vrot.slane %v6702_v39, 2  ;;  %v3716_v29 = vrot.slane %v6669_v50, 4  ;;  %v3453_v60 = vsel %vm2587_vm1, %v3429_v34, %v3430_v14 }
 0x399   : > { %v3880_v33 = vrot.slane %v3879_v53, 1  ;;  %v3883_v17 = vrot.slane %v3882_v52, 4  ;;  %v6716_v57 = vpop.f32.mrf.mxu1  ;;  %v3552_v3 = vsel %vm2684_vm0, %v3522_v6, %v3523_v2  ;;  %v3493_v22 = vadd.f32 %v3453_v60, %v6188_v15 }
 0x39a   : > { %v6721_v30 = vpop.f32.mrf.mxu0  ;;  %v3622_v39 = vrot.slane %v6697_v58, 3  ;;  %v3549_v41 = vsel %vm2684_vm0, %v3525_v20, %v3526_v13  ;;  %v3550_v6 = vsel %vm2684_vm0, %v3524_v49, %v3525_v20  ;;  %v3431_v2 = vrot.slane %v6710_v51, 1 }
 0x39b   : > { %v3881_v62 = vmax.f32 %v3879_v53, %v3880_v33  ;;  %v3884_v61 = vmax.f32 %v3882_v52, %v3883_v17  ;;  %v6724_v12 = vpop.f32.mrf.mxu1  ;;  %v3647_v53 = vsel %vm3159_vm10, %v3619_v47, %v3620_v40  ;;  %v3715_v33 = vrot.slane %v6644_v9, 4 }
 0x39c   : > { %v6731_v43 = vpop.f32.mrf.mxu0  ;;  %v3683_v25 = vadd.f32 %v3647_v53, %v3587_v28  ;;  %v3492_v17 = vadd.f32 %v3454_v63, %v6176_v7  ;;  %v3589_v15 = vadd.f32 %v3549_v41, %v3493_v22  ;;  %v3586_v55 = vadd.f32 %v3552_v3, %v3490_v23 }
 0x39d   : > { %v6727_v35 = vadd.f32 %v7228_v18, %v3881_v62  ;;  %v3885_v10 = vrot.slane %v3884_v61, 2  ;;  %v6738_v31 = vpop.f32.mrf.mxu1  ;;  %v3744_v7 = vsel %vm3730_vm12, %v3715_v33, %v3716_v29  ;;  %v3645_v49 = vsel %vm3159_vm10, %v3621_v45, %v3622_v39 }
 0x39e   : > { %v6745_v52 = vpop.f32.mrf.mxu0  ;;  %v3718_v51 = vrot.slane %v6707_v16, 4  ;;  %v3648_v63 = vsel %vm3159_vm10, %v3618_v26, %v3619_v47  ;;  %v3588_v20 = vadd.f32 %v3550_v6, %v3492_v17  ;;  %v3685_v11 = vadd.f32 %v3645_v49, %v3589_v15  ;;  %v7231_v17 = vld [vmem:[#allocation12_spill] sm:$0xff] }
 0x39f   : > { %v3886_v46 = vmax.f32 %v3884_v61, %v3885_v10  ;;  %v6753_v59 = vpop.f32.mrf.mxu1  ;;  %v6767_v61 = vrot.slane %v3968_v37, 5  ;;  %v3780_v10 = vadd.f32 %v3744_v7, %v3683_v25  ;;  %v3717_v53 = vrot.slane %v6684_v36, 4 }
 0x3a0   : > { %v6759_v34 = vpop.f32.mrf.mxu0  ;;  %v3452_v60 = vsel %vm2587_vm1, %v3430_v14, %v3431_v2  ;;  %v3527_v3 = vrot.slane %v6716_v57, 2  ;;  %v3432_v25 = vrot.slane %v6724_v12, 1  ;;  %v3970_v4 = vmax.f32 %v6691_v24, 0.0 }
 0x3a1   : > { %v3887_v42 = vrot.slane %v3886_v46, 1  ;;  %v6765_v62 = vpop.f32.mrf.mxu1  ;;  %v3745_v26 = vsel %vm3730_vm12, %v3714_v38, %v3715_v33  ;;  %v3646_v36 = vsel %vm3159_vm10, %v3620_v40, %v3621_v45  ;;  %v3818_v57 = vsel %vm3796_vm13, %v3780_v10, -inf }
 0x3a2   : > { %v6773_v28 = vpop.f32.mrf.mxu0  ;;  %v3742_v12 = vsel %vm3730_vm12, %v3717_v53, %v3718_v51  ;;  %v3451_v24 = vsel %vm2587_vm1, %v3431_v2, %v3432_v25  ;;  %v3528_v56 = vrot.slane %v6738_v31, 2  ;;  %v3684_v38 = vadd.f32 %v3646_v36, %v3588_v20 }
 0x3a3   : > { %v3888_v9 = vmax.f32 %v3886_v46, %v3887_v42  ;;  %v6781_v37 = vpop.f32.mrf.mxu1  ;;  %v3682_v42 = vadd.f32 %v3648_v63, %v3586_v55  ;;  %v3782_v33 = vadd.f32 %v3742_v12, %v3685_v11  ;;  %v3494_v40 = vadd.f32 %v3452_v60, %v6204_v8 }
 0x3a4   : > { %v6790_v46 = vpop.f32.mrf.mxu0  ;;  %v3495_v41 = vadd.f32 %v3451_v24, %v7231_v17  ;;  %v3548_v6 = vsel %vm2684_vm0, %v3526_v13, %v3527_v3  ;;  %v3624_v15 = vrot.slane %v6731_v43, 3  ;;  %v3547_v2 = vsel %vm2684_vm0, %v3527_v3, %v3528_v56 }
 0x3a5   : > { %v6784_v23 = vadd.f32 %v7228_v18, %v3888_v9  ;;  %v6797_v22 = vpop.f32.mrf.mxu1  ;;  %v3433_v31 = vrot.slane %v6753_v59, 1  ;;  %v6831_v55 = vrot.slane %v3969_v44, 4  ;;  %v6833_v7 = vrot.slane %v3970_v4, 3 }
 0x3a6   : > { %v6806_v47 = vpop.f32.mrf.mxu0  ;;  %v3779_v8 = vadd.f32 %v3745_v26, %v3682_v42  ;;  %v3591_v10 = vadd.f32 %v3547_v2, %v3495_v41  ;;  %v3743_v43 = vsel %vm3730_vm12, %v3716_v29, %v3717_v53  ;;  %v3623_v13 = vrot.slane %v6714_v27, 3  ;;  %v7232_v53 = vld [vmem:[#allocation13_spill] sm:$0xff]  ;;  %v7233_v41 = vld [vmem:[#allocation14_spill] sm:$0xff] }
 0x3a7   : > { %v6817_v14 = vpop.f32.mrf.mxu1  ;;  %v3450_v59 = vsel %vm2587_vm1, %v3432_v25, %v3433_v31  ;;  %v3529_v63 = vrot.slane %v6765_v62, 2  ;;  %v3781_v11 = vadd.f32 %v3743_v43, %v3684_v38  ;;  %v3820_v60 = vsel %vm3796_vm13, %v3782_v33, -inf }
 0x3a8   : > { %v6821_v45 = vpop.f32.mrf.mxu0  ;;  %v6847_v20 = vmax.f32 %v3779_v8, %v3818_v57  ;;  %v3590_v3 = vadd.f32 %v3548_v6, %v3494_v40  ;;  %v3643_v29 = vsel %vm3159_vm10, %v3623_v13, %v3624_v15  ;;  %v3720_v27 = vrot.slane %v6745_v52, 4 }
 0x3a9   : > { %v6829_v9 = vpop.f32.mrf.mxu1  ;;  %v3496_v25 = vadd.f32 %v3450_v59, %v7232_v53  ;;  %v3434_v62 = vrot.slane %v6781_v37, 1  ;;  %v3971_v42 = vmax.f32 %v6727_v35, 0.0  ;;  %v3719_v26 = vrot.slane %v6721_v30, 4  ;;  %v7234_v53 = vld [vmem:[#allocation15_spill] sm:$0xff] }
 0x3aa   : > { %v6835_v49 = vpop.f32.mrf.mxu0  ;;  %v3687_v36 = vadd.f32 %v3643_v29, %v3591_v10  ;;  %v3546_v57 = vsel %vm2684_vm0, %v3528_v56, %v3529_v63  ;;  %v3896_v24 = vmax.f32 %v3781_v11, %v3820_v60  ;;  %v3644_v52 = vsel %vm3159_vm10, %v3622_v39, %v3623_v13 }
 0x3ab   : > { %v6845_v44 = vpop.f32.mrf.mxu1  ;;  %v3449_v37 = vsel %vm2587_vm1, %v3433_v31, %v3434_v62  ;;  %v3530_v38 = vrot.slane %v6797_v22, 2  ;;  %v3890_v30 = vrot.slane %v6847_v20, 4  ;;  %v3686_v33 = vadd.f32 %v3644_v52, %v3590_v3 }
 0x3ac   : > { %v6851_v50 = vpop.f32.mrf.mxu0  ;;  %v3625_v56 = vrot.slane %v6759_v34, 3  ;;  %v3626_v40 = vrot.slane %v6790_v46, 3  ;;  %v3740_v58 = vsel %vm3730_vm12, %v3719_v26, %v3720_v27  ;;  %v3592_v39 = vadd.f32 %v3546_v57, %v3496_v25 }
 0x3ad   : > { %v6858_v4 = vpop.f32.mrf.mxu1  ;;  %v3497_v6 = vadd.f32 %v3449_v37, %v7233_v41  ;;  %v3545_v22 = vsel %vm2684_vm0, %v3529_v63, %v3530_v38  ;;  %v3741_v34 = vsel %vm3730_vm12, %v3718_v51, %v3719_v26  ;;  %v3784_v31 = vadd.f32 %v3740_v58, %v3687_v36 }
 0x3ae   : > { %v6864_v12 = vpop.f32.mrf.mxu0  ;;  %v3722_v46 = vrot.slane %v6806_v47, 4  ;;  %v3435_v8 = vrot.slane %v6817_v14, 1  ;;  %v3897_v43 = vrot.slane %v3896_v24, 4  ;;  %v3721_v13 = vrot.slane %v6773_v28, 4 }
 0x3af   : > { %v6873_v35 = vpop.f32.mrf.mxu1  ;;  %v3593_v59 = vadd.f32 %v3545_v22, %v3497_v6  ;;  %v3531_v63 = vrot.slane %v6829_v9, 2  ;;  %v3642_v16 = vsel %vm3159_vm10, %v3624_v15, %v3625_v56  ;;  %v3641_v51 = vsel %vm3159_vm10, %v3625_v56, %v3626_v40 }
 0x3b0   : > { %v6878_v17 = vpop.f32.mrf.mxu0  ;;  %v3448_v47 = vsel %vm2587_vm1, %v3434_v62, %v3435_v8  ;;  %v3436_v14 = vrot.slane %v6845_v44, 1  ;;  %v3783_v3 = vadd.f32 %v3741_v34, %v3686_v33  ;;  %v3688_v28 = vadd.f32 %v3642_v16, %v3592_v39  ;;  %v7235_v33 = vld [vmem:[#allocation16_spill] sm:$0xff] }
 0x3b1   : > { %v6885_v2 = vpop.f32.mrf.mxu1  ;;  %v3689_v29 = vadd.f32 %v3641_v51, %v3593_v59  ;;  %v3498_v9 = vadd.f32 %v3448_v47, %v7234_v53  ;;  %v3822_v15 = vsel %vm3796_vm13, %v3784_v31, -inf  ;;  %v3738_v26 = vsel %vm3730_vm12, %v3721_v13, %v3722_v46  ;;  %v7236_v47 = vld [vmem:[#allocation17_spill] sm:$0xff] }
 0x3b2   : > { %v6893_v10 = vpop.f32.mrf.mxu0  ;;  %v3544_v62 = vsel %vm2684_vm0, %v3530_v38, %v3531_v63  ;;  %v3447_v44 = vsel %vm2587_vm1, %v3435_v8, %v3436_v14  ;;  %v3898_v57 = vmax.f32 %v3896_v24, %v3897_v43  ;;  %v3627_v37 = vrot.slane %v6821_v45, 3 }
 0x3b3   : > { %v6897_v11 = vpop.f32.mrf.mxu1  ;;  %v3786_v52 = vadd.f32 %v3738_v26, %v3689_v29  ;;  %v3499_v56 = vadd.f32 %v3447_v44, %v7235_v33  ;;  %v3739_v39 = vsel %vm3730_vm12, %v3720_v27, %v3721_v13  ;;  %v3594_v41 = vadd.f32 %v3544_v62, %v3498_v9 }
 0x3b4   : > { %v6906_v60 = vpop.f32.mrf.mxu0  ;;  %v3628_v6 = vrot.slane %v6851_v50, 3  ;;  %v3532_v38 = vrot.slane %v6858_v4, 2  ;;  %v3903_v22 = vmax.f32 %v3783_v3, %v3822_v15  ;;  %v3785_v34 = vadd.f32 %v3739_v39, %v3688_v28  ;;  %v7237_v39 = vld [vmem:[#allocation18_spill] sm:$0xff] }
 0x3b5   : > { %v6909_v25 = vpop.f32.mrf.mxu1  ;;  %v3824_v24 = vsel %vm3796_vm13, %v3786_v52, -inf  ;;  %v3437_v31 = vrot.slane %v6873_v35, 1  ;;  %v3891_v45 = vmax.f32 %v6847_v20, %v3890_v30  ;;  %v3723_v8 = vrot.slane %v6835_v49, 4 }
 0x3b6   : > { %v6919_v36 = vpop.f32.mrf.mxu0  ;;  %v3543_v43 = vsel %vm2684_vm0, %v3531_v63, %v3532_v38  ;;  %v3724_v27 = vrot.slane %v6864_v12, 4  ;;  %v6939_v50 = vrot.slane %v3971_v42, 2  ;;  %v3910_v4 = vmax.f32 %v3785_v34, %v3824_v24 }
 0x3b7   : > { %v6923_v58 = vpop.f32.mrf.mxu1  ;;  %v3640_v59 = vsel %vm3159_vm10, %v3626_v40, %v3627_v37  ;;  %v3595_v16 = vadd.f32 %v3543_v43, %v3499_v56  ;;  %v3899_v35 = vrot.slane %v3898_v57, 2  ;;  %v3639_v49 = vsel %vm3159_vm10, %v3627_v37, %v3628_v6 }
 0x3b8   : > { %v6937_v13 = vpop.f32.mrf.mxu0  ;;  %v3690_v20 = vadd.f32 %v3640_v59, %v3594_v41  ;;  %v3446_v30 = vsel %vm2587_vm1, %v3436_v14, %v3437_v31  ;;  %v3904_v12 = vrot.slane %v3903_v22, 4  ;;  %v3533_v3 = vrot.slane %v6885_v2, 2 }
 0x3b9   : > { %v6943_v51 = vpop.f32.mrf.mxu1  ;;  %v3691_v63 = vadd.f32 %v3639_v49, %v3595_v16  ;;  %v3500_v42 = vadd.f32 %v3446_v30, %v7236_v47  ;;  %v3892_v28 = vrot.slane %v3891_v45, 2  ;;  %v3737_v40 = vsel %vm3730_vm12, %v3722_v46, %v3723_v8  ;;  %v7238_v30 = vld [vmem:[#allocation19_spill] sm:$0xff] }
 0x3ba   : > { %v3736_v29 = vsel %vm3730_vm12, %v3723_v8, %v3724_v27  ;;  %v3438_v53 = vrot.slane %v6897_v11, 1  ;;  %v6956_v9 = vpop.f32.mrf.mxu0  ;;  %v3911_v15 = vrot.slane %v3910_v4, 4  ;;  %v3629_v14 = vrot.slane %v6878_v17, 3 }
 0x3bb   : > { %v3788_v26 = vadd.f32 %v3736_v29, %v3691_v63  ;;  %v3542_v62 = vsel %vm2684_vm0, %v3532_v38, %v3533_v3  ;;  %v6961_v44 = vpop.f32.mrf.mxu1  ;;  %v3972_v2 = vmax.f32 %v6784_v23, 0.0  ;;  %v3787_v52 = vadd.f32 %v3737_v40, %v3690_v20 }
 0x3bc   : > { %v3596_v46 = vadd.f32 %v3542_v62, %v3500_v42  ;;  %v3445_v37 = vsel %vm2587_vm1, %v3437_v31, %v3438_v53  ;;  %v6966_v33 = vmax.f32 %v3898_v57, %v3899_v35  ;;  %v3905_v11 = vmax.f32 %v3903_v22, %v3904_v12  ;;  %v6974_v8 = vpop.f32.mrf.mxu0 }
 0x3bd   : > { %v3826_v56 = vsel %vm3796_vm13, %v3788_v26, -inf  ;;  %v3501_v17 = vadd.f32 %v3445_v37, %v7237_v39  ;;  %v3725_v38 = vrot.slane %v6893_v10, 4  ;;  %v3630_v34 = vrot.slane %v6906_v60, 3  ;;  %v2351_v59 = vpop.f32.mrf.mxu1 }
 0x3be   : > { %v3917_v41 = vmax.f32 %v3787_v52, %v3826_v56  ;;  %v3534_v24 = vrot.slane %v6909_v25, 2  ;;  %v6976_v43 = vmax.f32 %v3891_v45, %v3892_v28  ;;  %v3912_v31 = vmax.f32 %v3910_v4, %v3911_v15  ;;  %v6992_v63 = vpop.f32.mrf.mxu0 }
 0x3bf   : > { %v3638_v57 = vsel %vm3159_vm10, %v3628_v6, %v3629_v14  ;;  %v3439_v22 = vrot.slane %v6923_v58, 1  ;;  %v3726_v60 = vrot.slane %v6919_v36, 4  ;;  %v3901_v25 = vrot.slane %v6966_v33, 1  ;;  %v2353_v28 = vpop.f32.mrf.mxu1 }
 0x3c0   : > { %v3918_v16 = vrot.slane %v3917_v41, 4  ;;  %v3692_v35 = vadd.f32 %v3638_v57, %v3596_v46  ;;  %v3541_v10 = vsel %vm2684_vm0, %v3533_v3, %v3534_v24  ;;  %v3906_v20 = vrot.slane %v3905_v11, 2  ;;  %v2546_v46 = vpop.f32.mrf.mxu0 }
 0x3c1   : > { %v3597_v49 = vadd.f32 %v3541_v10, %v3501_v17  ;;  %v3444_v45 = vsel %vm2587_vm1, %v3438_v53, %v3439_v22  ;;  %v3735_v6 = vsel %vm3730_vm12, %v3724_v27, %v3725_v38  ;;  %v3637_v58 = vsel %vm3159_vm10, %v3629_v14, %v3630_v34  ;;  %v2355_v17 = vpop.f32.mrf.mxu1 }
 0x3c2   : > { %v3919_v4 = vmax.f32 %v3917_v41, %v3918_v16  ;;  %v3502_v12 = vadd.f32 %v3444_v45, %v7238_v30  ;;  %v3631_v36 = vrot.slane %v6937_v13, 3  ;;  %v3535_v42 = vrot.slane %v6943_v51, 2  ;;  %v2548_v30 = vpop.f32.mrf.mxu0 }
 0x3c3   : > { %v3693_v47 = vadd.f32 %v3637_v58, %v3597_v49  ;;  %v3440_v3 = vrot.slane %v6961_v44, 1  ;;  %v3913_v40 = vrot.slane %v3912_v31, 2  ;;  %v3789_v29 = vadd.f32 %v3735_v6, %v3692_v35 }
 0x3c4   : > { %v3734_v27 = vsel %vm3730_vm12, %v3725_v38, %v3726_v60  ;;  %v3536_v53 = vrot.slane %v2351_v59, 2  ;;  %v3540_v26 = vsel %vm2684_vm0, %v3534_v24, %v3535_v42  ;;  %v3727_v14 = vrot.slane %v6956_v9, 4 }
 0x3c5   : > { %v3790_v15 = vadd.f32 %v3734_v27, %v3693_v47  ;;  %v3443_v13 = vsel %vm2587_vm1, %v3439_v22, %v3440_v3  ;;  %v3920_v62 = vrot.slane %v3919_v4, 2  ;;  %v3598_v51 = vadd.f32 %v3540_v26, %v3502_v12 }
 0x3c6   : > { %v3503_v44 = vadd.f32 %v3443_v13, %v6322_v21  ;;  %v3632_v52 = vrot.slane %v6974_v8, 3  ;;  %v3636_v56 = vsel %vm3159_vm10, %v3630_v34, %v3631_v36  ;;  %v3539_v39 = vsel %vm2684_vm0, %v3535_v42, %v3536_v53  ;;  %v5081_v42 = vld [vmem:[#allocation5 + $0xb8] sm:$0xff]  }
 0x3c7   : > { %v3828_v37 = vsel %vm3796_vm13, %v3790_v15, -inf  ;;  %v3728_v9 = vrot.slane %v6992_v63, 4  ;;  %v3907_v41 = vmax.f32 %v3905_v11, %v3906_v20  ;;  %v7013_v38 = vmax.f32 %v3912_v31, %v3913_v40 }
 0x3c8   : > { %v3924_v24 = vmax.f32 %v3789_v29, %v3828_v37  ;;  %v3694_v21 = vadd.f32 %v3636_v56, %v3598_v51  ;;  %v3733_v8 = vsel %vm3730_vm12, %v3726_v60, %v3727_v14  ;;  %v3599_v57 = vadd.f32 %v3539_v39, %v3503_v44  ;;  %v7243_v56 = vld [vmem:[#allocation21_spill] sm:$0xff] }
 0x3c9   : > { %v3441_v22 = vrot.slane %v2353_v28, 1  ;;  %v3633_v59 = vrot.slane %v2546_v46, 3  ;;  %v3921_v16 = vmax.f32 %v3919_v4, %v3920_v62  ;;  %v3635_v34 = vsel %vm3159_vm10, %v3631_v36, %v3632_v52  ;;  %v7241_v28 = vld [vmem:[#allocation20_spill] sm:$0xff] }
 0x3ca   : > { %v3925_v35 = vrot.slane %v3924_v24, 4  ;;  %v3537_v10 = vrot.slane %v2355_v17, 2  ;;  %v3695_v49 = vadd.f32 %v3635_v34, %v3599_v57  ;;  %v3732_v11 = vsel %vm3730_vm12, %v3727_v14, %v3728_v9  ;;  %v5083_v34 = vld [vmem:[#allocation5 + $0xa8] sm:$0xff]  }
 0x3cb   : > { %v3442_v31 = vsel %vm2587_vm1, %v3440_v3, %v3441_v22  ;;  %v7239_v20 = vrot.slane %v6360_v5, 1  ;;  %v3791_v6 = vadd.f32 %v3733_v8, %v3694_v21  ;;  %v3634_v63 = vsel %vm3159_vm10, %v3632_v52, %v3633_v59  ;;  %v5082_v52 = vld [vmem:[#allocation5 + $0xb0] sm:$0xff]  }
 0x3cc   : > { %v3926_v45 = vmax.f32 %v3924_v24, %v3925_v35  ;;  %v3504_v4 = vadd.f32 %v3442_v31, %v6332_v54  ;;  %v3792_v12 = vadd.f32 %v3732_v11, %v3695_v49  ;;  %v3538_v47 = vsel %vm2684_vm0, %v3536_v53, %v3537_v10  ;;  %v5084_v31 = vld [vmem:[#allocation5 + $0xa0] sm:$0xff]  }
 0x3cd   : > { %v3473_v60 = vsel %vm2587_vm1, %v3441_v22, %v7239_v20  ;;  %v7240_v36 = vrot.slane %v6367_v32, 2  ;;  %v7242_v40 = vrot.slane %v7241_v28, 3  ;;  %v3729_v15 = vrot.slane %v2548_v30, 4 }
 0x3ce   : > { %v3505_v58 = vadd.f32 %v3473_v60, %v6345_v48  ;;  %v3927_v3 = vrot.slane %v3926_v45, 2  ;;  %v3600_v48 = vadd.f32 %v3538_v47, %v3504_v4  ;;  %v3830_v27 = vsel %vm3796_vm13, %v3792_v12, -inf }
 0x3cf   : > { %v3569_v5 = vsel %vm2684_vm0, %v3537_v10, %v7240_v36  ;;  %v3665_v54 = vsel %vm3159_vm10, %v3633_v59, %v7242_v40  ;;  %v3908_v26 = vrot.slane %v3907_v41, 1  ;;  %v3931_v14 = vmax.f32 %v3791_v6, %v3830_v27 }
 0x3d0   : > { %v3601_v29 = vadd.f32 %v3569_v5, %v3505_v58  ;;  %v3928_v53 = vmax.f32 %v3926_v45, %v3927_v3  ;;  %v3696_v32 = vadd.f32 %v3634_v63, %v3600_v48  ;;  %v5221_v13 = vmov 0.0   ;;  %v5085_v63 = vld [vmem:[#allocation5 + $0x98] sm:$0xff]  }
 0x3d1   : > { %4823 = vmatprep.subr.bf16.mxu1 %v5221_v13  ;;  %4839 = vmatprep.mubr.msk.bf16.mxu1 %vm5222_vm14, %v5221_v13  ;;  %v3915_v62 = vrot.slane %v7013_v38, 1  ;;  %v3731_v44 = vsel %vm3730_vm12, %v3728_v9, %v3729_v15  ;;  %v4101_v46 = vsel %vm4004_vm5, %v6767_v61, %v6570_v0  ;;  %v3932_v37 = vrot.slane %v3931_v14, 4 }
 0x3d2   : > { %v3697_v51 = vadd.f32 %v3665_v54, %v3601_v29  ;;  %4824 = vmatpush3.bf16.msra.mxu1 %v5081_v42  ;;  %v7244_v39 = vrot.slane %v7243_v56, 4  ;;  %v3793_v24 = vadd.f32 %v3731_v44, %v3696_v32  ;;  %v4103_v21 = vsel %vm4007_vm6, %v6831_v55, %v4101_v46  ;;  %v5086_v29 = vld [vmem:[#allocation5 + $0x90] sm:$0xff]  }
 0x3d3   : > { %4825 = vmatprep.subr.bf16.mxu1 %v5221_v13  ;;  %v3922_v8 = vrot.slane %v3921_v16, 1  ;;  %v4105_v57 = vsel %vm4010_vm7, %v6833_v7, %v4103_v21  ;;  %v4108_v0 = vrot.slane %v3972_v2, 1  ;;  %v3902_v61 = vmax.f32 %v6966_v33, %v3901_v25 }
 0x3d4   : > { %v3762_v17 = vsel %vm3730_vm12, %v3729_v15, %v7244_v39  ;;  %v3929_v1 = vrot.slane %v3928_v53, 1  ;;  %v3933_v22 = vmax.f32 %v3931_v14, %v3932_v37  ;;  %v4107_v59 = vsel %vm4013_vm8, %v6939_v50, %v4105_v57 }
 0x3d5   : > { %v3794_v9 = vadd.f32 %v3762_v17, %v3697_v51  ;;  %v3909_v35 = vmax.f32 %v3907_v41, %v3908_v26  ;;  %v7070_v7 = vsel %vm4016_vm9, %v4108_v0, %v4107_v59  ;;  %v3894_v23 = vrot.slane %v6976_v43, 1 }
 0x3d6   : > { %4826 = vmatpush3.bf16.msra.mxu1 %v5082_v52  ;;  %v3916_v2 = vmax.f32 %v7013_v38, %v3915_v62  ;;  %v3934_v10 = vrot.slane %v3933_v22, 2  ;;  %v3923_v25 = vmax.f32 %v3921_v16, %v3922_v8  ;;  %v3958_v50 = vadd.f32 %v7228_v18, %v3902_v61  ;;  %v5087_v52 = vld [vmem:[#allocation5 + $0x88] sm:$0xff]  }
 0x3d7   : > { %v3832_v55 = vsel %vm3796_vm13, %v3794_v9, -inf  ;;  %4827 = vmatprep.subr.bf16.mxu1 %v5221_v13  ;;  %v3930_v41 = vmax.f32 %v3928_v53, %v3929_v1  ;;  %v3959_v11 = vadd.f32 %v7228_v18, %v3909_v35  ;;  %v3895_v20 = vmax.f32 %v6976_v43, %v3894_v23 }
 0x3d8   : > { %v3938_v33 = vmax.f32 %v3793_v24, %v3832_v55  ;;  %v3935_v49 = vmax.f32 %v3933_v22, %v3934_v10  ;;  %v3960_v60 = vadd.f32 %v7228_v18, %v3916_v2  ;;  %v3961_v6 = vadd.f32 %v7228_v18, %v3923_v25  ;;  %v5088_v24 = vld [vmem:[#allocation5 + $0x80] sm:$0xff]  }
 0x3d9   : > { %v3974_v16 = vmax.f32 %v3958_v50, 0.0  ;;  %v3962_v4 = vadd.f32 %v7228_v18, %v3930_v41  ;;  %v3975_v12 = vmax.f32 %v3959_v11, 0.0  ;;  %v3957_v47 = vadd.f32 %v7228_v18, %v3895_v20  ;;  %v4689_v22 = vld [vmem:[%s7154_s5] ss:$0 sm:$0xff] }
 0x3da   : > { %v3939_v19 = vrot.slane %v3938_v33, 4  ;;  %4828 = vmatpush3.bf16.msra.mxu1 %v5083_v34  ;;  %v3936_v45 = vrot.slane %v3935_v49, 1  ;;  %v3976_v36 = vmax.f32 %v3960_v60, 0.0  ;;  %v3977_v42 = vmax.f32 %v3961_v6, 0.0 }
 0x3db   : > { %4829 = vmatprep.subr.bf16.mxu1 %v5221_v13  ;;  %v4110_v3 = vrot.slane %v3974_v16, 7  ;;  %v3978_v28 = vmax.f32 %v3962_v4, 0.0  ;;  %v4112_v54 = vrot.slane %v3975_v12, 6  ;;  %v3973_v27 = vmax.f32 %v3957_v47, 0.0 }
 0x3dc   : > { %v3940_v38 = vmax.f32 %v3938_v33, %v3939_v19  ;;  %v3937_v58 = vmax.f32 %v3935_v49, %v3936_v45  ;;  %v4114_v15 = vrot.slane %v3976_v36, 5  ;;  %v4116_v53 = vrot.slane %v3977_v42, 4 }
 0x3dd   : > { %v4111_v14 = vsel %vm3998_vm3, %v4110_v3, %v3973_v27  ;;  %v4118_v32 = vrot.slane %v3978_v28, 3 }
 0x3de   : > { %v3941_v30 = vrot.slane %v3940_v38, 2  ;;  %4830 = vmatpush3.bf16.msra.mxu1 %v5084_v31  ;;  %v3963_v43 = vadd.f32 %v7228_v18, %v3937_v58  ;;  %v4113_v51 = vsel %vm4001_vm4, %v4112_v54, %v4111_v14 }
 0x3df   : > { %4831 = vmatprep.subr.bf16.mxu1 %v5221_v13  ;;  %v4115_v37 = vsel %vm4004_vm5, %v4114_v15, %v4113_v51 }
 0x3e0   : > { %v3942_v5 = vmax.f32 %v3940_v38, %v3941_v30  ;;  %v3979_v48 = vmax.f32 %v3963_v43, 0.0  ;;  %v4117_v56 = vsel %vm4007_vm6, %v4116_v53, %v4115_v37 }
 0x3e1   : > { %v4119_v17 = vsel %vm4010_vm7, %v4118_v32, %v4117_v56 }
 0x3e2   : > { %v3943_v40 = vrot.slane %v3942_v5, 1  ;;  %4832 = vmatpush3.bf16.msra.mxu1 %v5085_v63  ;;  %v4120_v44 = vrot.slane %v3979_v48, 2 }
 0x3e3   : > { %4833 = vmatprep.subr.bf16.mxu1 %v5221_v13 }
 0x3e4   : > { %v3944_v26 = vmax.f32 %v3942_v5, %v3943_v40 }
 0x3e6   : > { %v3964_v62 = vadd.f32 %v7228_v18, %v3944_v26  ;;  %4834 = vmatpush3.bf16.msra.mxu1 %v5086_v29  ;;  %v4121_v18 = vsel %vm4013_vm8, %v4120_v44, %v4119_v17 }
 0x3e7   : > { %4835 = vmatprep.subr.bf16.mxu1 %v5221_v13 }
 0x3e8   : > { %v3980_v46 = vmax.f32 %v3964_v62, 0.0 }
 0x3ea   : > { %v4122_v39 = vrot.slane %v3980_v46, 1  ;;  %4836 = vmatpush3.bf16.msra.mxu1 %v5087_v52 }
 0x3eb   : > { %4837 = vmatprep.subr.bf16.mxu1 %v5221_v13 }
 0x3ec   : > { %v4123_v21 = vsel %vm4016_vm9, %v4122_v39, %v4121_v18 }
 0x3ed   : > { %v4128_v8 = vpack.c.bf16 %v4123_v21, %v7070_v7 }
 0x3ee   : > { %4838 = vmatpush3.bf16.msra.mxu1 %v5088_v24 }
 0x3f1   : > { %4840 = vmatmul.mubr.bf16.vlgmr.msra.gmra.mxu1 %v4128_v8 }
 0x432   : > { %v4760_v9 = vpop.f32.mrf.mxu1 }
 0x434   : > { %v4761_v57 = vpop.f32.mrf.mxu1 }
 0x435   : > { %v4762_v61 = vadd.f32 %v4761_v57, %v4760_v9 }
 0x436   : > { %v4763_v0 = vpop.f32.mrf.mxu1 }
 0x437   : > { %v4363_v13 = vadd.f32 %v4762_v61, %v4689_v22 }
 0x438   : > { %v4764_v1 = vpop.f32.mrf.mxu1 }
 0x439   : > { %v4765_v59 = vadd.f32 %v4764_v1, %v4763_v0 }
 0x43b   : > { %v4366_v7 = vadd.f32 %v4765_v59, %v4689_v22 }
 0x4b1   : > { %v4403_v35 = vpop.f32.mrf.mxu1 }
 0x4b2   : > { %v4404_v55 = vadd.f32 %v4403_v35, %v4363_v13 }
 0x4b3   : > { %v4841_v34 = vpop.f32.mrf.mxu1 }
 0x4b4   : > { %4410 = vst [vmem:[%s275_s9] sm:$0xff] %v4404_v55 }
 0x4b5   : > { %v4406_v23 = vpop.f32.mrf.mxu1 }
 0x4b6   : > { %v4407_v2 = vadd.f32 %v4406_v23, %v4366_v7 }
 0x4b7   : > { %v4842_v10 = vpop.f32.mrf.mxu1 }
 0x4b8   : > { %4411 = vst [vmem:[%s275_s9 + $0x8] sm:$0xff] %v4407_v2 }
 0x4b9   : > { %5156 = shalt.err (!%p5153_p3)
}
 0x4ba   : > { %s5157_s26 = scalar_lea.hbm %s7107_s17, 256  ;;  %s5161_s10 = scalar_lea.hbm %s7155_s6, 2048 }
 0x4bb   : > { %p5158_p2 = scmp.ne.s32.totalorder %s7107_s17, %s5157_s26  ;;  %p5162_p6 = scmp.lt.s32.totalorder %s7107_s17, %s7155_s6 }
 0x4bc   : > { %p5163_p9 = scmp.lt.s32.totalorder %s5161_s10, %s5157_s26 }
 0x4bd   : > { %p5159_p4 = pnand %p5158_p2, %p5299_p5 }
 0x4be   : > { %p5164_p7 = por %p5163_p9, %p5162_p6 }
 0x4bf   : > { %p5160_p13 = pneg %p5159_p4 }
 0x4c1   : > { %p5165_p10 = pnand %p5164_p7, %p5160_p13 }
 0x4c3   : > { %5168 = shalt.err (!%p5165_p10)
}
 0x4c4   : > { %s5224_s13 = smov 128   ;;  %s5225_s15 = smov 8  }
 0x4c5   : > { %4851 = dma.vmem_to_hbm [thread:$0]  (%p5299_p5), %s7102_s12, 256, %s7107_s17, %s7109_s18, %s5224_s13, %s5224_s13, %s5225_s15  }
 0x4c6 PF: > { %p4868_p12 = scmp.ge.s32.totalorder %s5211_s24, 2  ;;  %s4441_s16 = sand.u32 1, %s5199_s21  }
 0x4c7   : > { %p7245_p8 = scmp.ne.s32.totalorder %s7173_s8, 0  ;;  %s4442_s14 = scalar_lea.sflag [#allocation4], %s4441_s16 }
 0x4c9   : > { %p4861_p11 = pnand %p4868_p12, %p7245_p8 }
 0x4cb   : > { %p4862_p0 = pneg %p4861_p11 }
 0x4cd   : > { %5194 = dma.done.wait (%p4862_p0), %s4442_s14, 256  }
 0x4ce   : > { %5196 = vsyncadd (%p4862_p0), %s4442_s14, 4294967040  ;;  %p18_p1 = scmp.ge.s32.totalorder %s5286_s27, 10   ;;  %s7246_s21 = smov %s5203_s22 }
 0x4cf   : > { %s7247_s22 = smov %s5207_s23  ;;  %s7248_s23 = smov %s5297_s30 }
 0x4d0   : > { %s7249_s24 = smov %s5286_s27  ;;  %20 = sbr.rel (!%p18_p1) target bundleno = 5 (0x5), region = 88 }
 0x4d5   :  { %4447 = vsyncpa [#allocation3], 1 }
 0x4d6   :  { %4449 = vsyncpa [#allocation3 + $0x1], 1 }
 0x4d7   :  { %4450 = vsyncpa [#allocation6], 1 }
 0x4d8   :  { %4451 = vsyncpa [#allocation4], 1 }
 0x4d9   :  { %4453 = vsyncpa [#allocation4 + $0x1], 1 }

</bundles_post_ra>
